<compile_context>
chip_gen: v7x
topology: tpu7x:2x2x1
jax: 0.10.0
libtpu: 0.0.40
codegen_flags: <defaults>
</compile_context>

<pallas_src>
import functools

import jax
import jax.numpy as jnp
from jax import lax
from jax.experimental import pallas as pl
from jax.experimental.pallas import tpu as pltpu


# ---------------------------------------------------------------------------
# LSTM kernel: one grid step == one layer over the full (time-major) sequence.
# ---------------------------------------------------------------------------
def _lstm_layer_kernel(ids_ref, wih_ref, whh_ref, b_ref, h0_ref, c0_ref,
                       x_in_ref, raw_ref, hn_ref, cn_ref, gx_buf, gsem,
                       *, fused_gather):
    """raw_ref (constant block index -> VMEM-resident across layers) doubles as
    the running sequence buffer: layer l reads its input from it and overwrites
    it with its own outputs; only the last layer's contents reach HBM.

    gx_buf : VMEM scratch (seq*bs, 4H) in compute dtype; hoisted input gates.
    gsem   : DMA semaphore for the fused embedding gather (f32 path).
    """
    layer = pl.program_id(0)
    bs = h0_ref.shape[1]
    rows, H = raw_ref.shape
    seq = rows // bs

    # ---- Layer 0: bring the embedded tokens into the resident raw block. ----
    @pl.when(layer == 0)
    def _():
        if fused_gather:
            # Fused gather: DMA row ids_ref[r] of the HBM embedding table
            # straight into row r of raw_ref (row r = t*bs + b, time-major),
            # with a small window of in-flight copies for overlap.
            window = min(16, rows)

            def _issue(r):
                pltpu.make_async_copy(x_in_ref.at[ids_ref[r]],
                                      raw_ref.at[pl.ds(r, 1), :], gsem).start()

            def _wait(r):
                pltpu.make_async_copy(x_in_ref.at[ids_ref[r]],
                                      raw_ref.at[pl.ds(r, 1), :], gsem).wait()

            def _prime(r, c):
                _issue(r)
                return c

            def _pump(r, c):
                _issue(r + window)
                _wait(r)
                return c

            def _drain(r, c):
                _wait(r)
                return c

            lax.fori_loop(0, window, _prime, 0)
            lax.fori_loop(0, rows - window, _pump, 0)
            lax.fori_loop(rows - window, rows, _drain, 0)
        else:
            # bf16 path: embx was gathered in the wrapper (single-row DMA into
            # packed bf16 VMEM is sub-word granularity).
            # TODO(synk): pack bf16 row pairs into u32 and fuse this gather too.
            raw_ref[...] = x_in_ref[...]

    w_ih = wih_ref[0]                    # (H, 4H)  only this layer is resident
    w_hh = whh_ref[0]                    # (H, 4H)
    bias = b_ref[0]                      # (1, 4H)  = b_ih + b_hh (f32)

    # Hoisted input-to-hidden matmul: ONE (seq*bs, H) @ (H, 4H) MXU call per
    # layer, bias folded in.  Stored in compute dtype (bf16 halves VMEM).
    # TODO(synk): chunk this over time-blocks to cap gx_buf at large seq*bs.
    gx_buf[...] = (jnp.dot(raw_ref[...], w_ih,
                           preferred_element_type=jnp.float32)
                   + bias).astype(gx_buf.dtype)

    def step(t, carry):
        h, c = carry                                     # f32 (bs, H)
        row = pl.multiple_of(t * bs, bs)
        # Only the h-recurrence matmul remains on the serial critical path.
        # TODO(synk): hold W_hh stationary on the MXU (matmul_push_rhs) and/or
        # use a (layer, time) wavefront to raise the MXU M-dim beyond bs.
        gates = gx_buf[pl.ds(row, bs), :].astype(jnp.float32) + jnp.dot(
            h.astype(w_hh.dtype), w_hh, preferred_element_type=jnp.float32)
        sig = jax.nn.sigmoid(gates[:, :3 * H])           # [i|f|o] one contiguous slab
        i = sig[:, 0 * H:1 * H]
        f = sig[:, 1 * H:2 * H]
        o = sig[:, 2 * H:3 * H]
        g = jnp.tanh(gates[:, 3 * H:4 * H])
        c_new = f * c + i * g                            # cell state stays f32
        h_new = o * jnp.tanh(c_new)
        raw_ref[pl.ds(row, bs), :] = h_new.astype(raw_ref.dtype)  # next layer's input
        return h_new, c_new

    h_fin, c_fin = lax.fori_loop(
        0, seq, step, (h0_ref[0], c0_ref[0]),
        unroll=True if seq <= 32 else 8)                 # LLO scheduler visibility
    hn_ref[0] = h_fin
    cn_ref[0] = c_fin


def _tied_proj_kernel(h_ref, w_ref, b_ref, out_ref):
    """One (tile_m, H) x (tile_n, H)^T tile of the tied output projection.

    The embedding matrix is used as-is (contraction over the last dim of both
    operands), so emb_w.T is never materialized in HBM."""
    acc = lax.dot_general(h_ref[...], w_ref[...],
                          dimension_numbers=(((1,), (1,)), ((), ())),
                          preferred_element_type=jnp.float32)
    out_ref[...] = (acc + b_ref[...]).astype(out_ref.dtype)


# ---------------------------------------------------------------------------
# Wrapper
# ---------------------------------------------------------------------------
def _pick_tile(dim, unit, max_tile):
    """Largest tile <= max_tile that divides `dim` and is a multiple of `unit`
    (falls back to the full dim, which always satisfies the (8,128) rule).
    NOTE: the VMEM budgets below are computed from the *actual* picked tiles."""
    if dim <= max_tile:
        return dim
    t = (max_tile // unit) * unit
    while t >= unit:
        if dim % t == 0:
            return t
        t -= unit
    return dim


def _vmem_capacity_bytes():
    try:
        return int(pltpu.get_tpu_info().vmem_capacity_bytes)
    except Exception:                                    # pragma: no cover
        return 64 * 2 ** 20                              # conservative (v7x)


def _vmem_budget(nbytes):
    # Generation-aware: >= the 32 MiB scoped default, <= ~85% of physical VMEM
    # (~110 MiB on v5e/v6e, ~54 MiB on v7x) leaving compiler headroom.
    hi = int(_vmem_capacity_bytes() * 0.85)
    return int(min(max(int(nbytes), 32 * 2 ** 20), hi))


def lm_forward(x, params, h0, c0, *, compute_dtype=jnp.float32):
    """Forward pass of LMModel (params in kernel layout, see prepare_kernel_params).

    Returns (logits, raw, out, h_n, c_n)."""
    emb_w = params["emb"]                                 # (vocab, H) tied weight
    bs, seq = x.shape
    vocab, H = emb_w.shape
    n_layers = params["wih_t"].shape[0]
    cd = jnp.dtype(compute_dtype)
    itm = cd.itemsize
    rows = seq * bs
    fused_gather = (itm == 4)                             # f32 path only (see kernel)

    # Time-major flattened row order: row r = t*bs + b.
    ids = x.T.reshape(-1).astype(jnp.int32)               # (seq*bs,) token ids
    emb_cd = emb_w.astype(cd)                             # also feeds the tied projection
    wih = params["wih_t"].astype(cd)                      # (L, H, 4H)  gate order [i|f|o|g]
    whh = params["whh_t"].astype(cd)                      # (L, H, 4H)
    b = params["b"]                                       # (L, 1, 4H) f32

    if fused_gather:
        x_in = emb_cd.reshape(vocab, 1, H)                # raw HBM table; rows DMA'd in-kernel
        x_in_spec = pl.BlockSpec(memory_space=pl.ANY)
        x_in_vmem = 0
    else:
        x_in = jnp.take(emb_cd, ids, axis=0)              # (seq*bs, H) wrapper gather
        x_in_spec = pl.BlockSpec((rows, H), lambda l, ids_r: (0, 0))
        x_in_vmem = 2 * rows * H * itm

    lstm_vmem = _vmem_budget(
        2 * rows * H * itm                                # raw output block (dbl-buffered)
        + rows * 4 * H * itm                              # gx_buf scratch
        + x_in_vmem                                       # embx block (bf16 path only)
        + 2 * 2 * (H * 4 * H * itm)                       # W_ih/W_hh, double-buffered
        + 2 * (4 * H * 4)                                 # bias
        + 8 * bs * H * 4                                  # h0/c0/h_n/c_n blocks
        + (2 << 20))                                      # headroom

    kernel = functools.partial(_lstm_layer_kernel, fused_gather=fused_gather)
    raw_flat, h_n, c_n = pl.pallas_call(
        kernel,
        grid_spec=pltpu.PrefetchScalarGridSpec(
            num_scalar_prefetch=1,                        # token ids -> SMEM
            grid=(n_layers,),
            in_specs=[
                pl.BlockSpec((1, H, 4 * H), lambda l, ids_r: (l, 0, 0)),   # W_ih^T, layer l
                pl.BlockSpec((1, H, 4 * H), lambda l, ids_r: (l, 0, 0)),   # W_hh^T, layer l
                pl.BlockSpec((1, 1, 4 * H), lambda l, ids_r: (l, 0, 0)),   # bias, layer l
                pl.BlockSpec((1, bs, H), lambda l, ids_r: (l, 0, 0)),      # h0, layer l
                pl.BlockSpec((1, bs, H), lambda l, ids_r: (l, 0, 0)),      # c0, layer l
                x_in_spec,                                                 # emb table / embx
            ],
            out_specs=(
                pl.BlockSpec((rows, H), lambda l, ids_r: (0, 0)),          # raw (resident)
                pl.BlockSpec((1, bs, H), lambda l, ids_r: (l, 0, 0)),      # h_n
                pl.BlockSpec((1, bs, H), lambda l, ids_r: (l, 0, 0)),      # c_n
            ),
            scratch_shapes=[
                pltpu.VMEM((rows, 4 * H), cd),            # hoisted input gates
                pltpu.SemaphoreType.DMA,                  # embedding-gather sem
            ]),
        out_shape=(
            jax.ShapeDtypeStruct((rows, H), cd),
            jax.ShapeDtypeStruct((n_layers, bs, H), jnp.float32),
            jax.ShapeDtypeStruct((n_layers, bs, H), jnp.float32),
        ),
        compiler_params=pltpu.CompilerParams(
            dimension_semantics=("arbitrary",),           # layers are sequential
            vmem_limit_bytes=lstm_vmem),
    )(ids, wih, whh, b, h0, c0, x_in)
    # TODO(synk): add a leading "parallel" batch-chunk grid axis so the LSTM
    # recurrence shards across v7x's two TensorCores.

    # Back to batch-first in the wrapper (HBM permute; no in-kernel transpose).
    raw = jnp.transpose(raw_flat.reshape(seq, bs, H), (1, 0, 2))   # (bs, seq, H), cd
    # Dropout(p=0.4) is identity in eval mode -> `out` aliases `raw`.
    # TODO(synk): train-mode dropout via pltpu.prng_random_bits.
    out = raw

    # Tied output projection. Weight tiles are (tile_n, H) slices of emb_w
    # itself; grid is (vocab tiles OUTER, row tiles INNER) so the (typically
    # larger) weight matrix streams from HBM exactly once. Both axes "parallel".
    flat = raw.reshape(rows, H)                           # batch-first rows
    bout = params["bout"]                                 # (1, vocab) f32
    vmem_cap = _vmem_capacity_bytes()
    tile_m = _pick_tile(rows, 8, 512)
    tile_n = _pick_tile(vocab, 128, 4096 if vmem_cap >= 96 * 2 ** 20 else 2048)
    proj_vmem = _vmem_budget(
        2 * (tile_m * H * itm + tile_n * H * itm + tile_m * tile_n * 4 + tile_n * 4)
        + (2 << 20))

    logits_flat = pl.pallas_call(
        _tied_proj_kernel,
        grid=(vocab // tile_n, rows // tile_m),           # j (vocab) outer, i (rows) inner
        in_specs=[
            pl.BlockSpec((tile_m, H), lambda j, i: (i, 0)),
            pl.BlockSpec((tile_n, H), lambda j, i: (j, 0)),
            pl.BlockSpec((1, tile_n), lambda j, i: (0, j)),
        ],
        out_specs=pl.BlockSpec((tile_m, tile_n), lambda j, i: (i, j)),
        out_shape=jax.ShapeDtypeStruct((rows, vocab), jnp.float32),
        compiler_params=pltpu.CompilerParams(
            dimension_semantics=("parallel", "parallel"),
            vmem_limit_bytes=proj_vmem),
    )(flat, emb_cd, bout)

    logits = logits_flat.reshape(bs, seq, vocab)
    return logits, raw, out, h_n, c_n


# ---------------------------------------------------------------------------
# Params + pure-JAX reference
# ---------------------------------------------------------------------------
def init_params(key, vocab_sz, n_hidden, n_layers):
    """PyTorch-layout parameters: LSTM gate order [i|f|g|o], weights stored
    pre-transposed as (in_features, 4H)."""
    H = n_hidden
    k_emb, k_wih, k_whh, k_bih, k_bhh, k_bout = jax.random.split(key, 6)
    bound = 1.0 / jnp.sqrt(H)
    emb = jax.random.normal(k_emb, (vocab_sz, H), jnp.float32)        # nn.Embedding default
    wih_t = jax.random.uniform(k_wih, (n_layers, H, 4 * H), jnp.float32, -bound, bound)
    whh_t = jax.random.uniform(k_whh, (n_layers, H, 4 * H), jnp.float32, -bound, bound)
    b_ih = jax.random.uniform(k_bih, (n_layers, 1, 4 * H), jnp.float32, -bound, bound)
    b_hh = jax.random.uniform(k_bhh, (n_layers, 1, 4 * H), jnp.float32, -bound, bound)
    bout = jax.random.uniform(k_bout, (1, vocab_sz), jnp.float32, -bound, bound)
    return {"emb": emb, "wih_t": wih_t, "whh_t": whh_t, "b": b_ih + b_hh, "bout": bout}


def prepare_kernel_params(params):
    """One-time offline repack: permute gate columns from PyTorch order
    [i|f|g|o] to kernel order [i|f|o|g] (one contiguous sigmoid slab + one tanh
    per timestep).  Pure relabeling -- identical math."""
    H4 = params["wih_t"].shape[-1]
    H = H4 // 4
    perm = jnp.concatenate([jnp.arange(0, 2 * H),          # i, f
                            jnp.arange(3 * H, 4 * H),      # o
                            jnp.arange(2 * H, 3 * H)])     # g
    return {"emb": params["emb"],
            "wih_t": params["wih_t"][..., perm],
            "whh_t": params["whh_t"][..., perm],
            "b": params["b"][..., perm],
            "bout": params["bout"]}


def lm_reference(x, params, h0, c0):
    """Pure-JAX reference mirroring torch semantics (eval-mode dropout)."""
    emb_w = params["emb"]
    seq = x.shape[1]
    n_layers, _, H = h0.shape
    xs = jnp.take(emb_w, x, axis=0)                 # (bs, seq, H)
    hs, cs = [], []
    for l in range(n_layers):
        h, c = h0[l], c0[l]
        outs = []
        for t in range(seq):
            gates = xs[:, t] @ params["wih_t"][l] + h @ params["whh_t"][l] + params["b"][l]
            i = jax.nn.sigmoid(gates[:, :H])
            f = jax.nn.sigmoid(gates[:, H:2 * H])
            g = jnp.tanh(gates[:, 2 * H:3 * H])
            o = jax.nn.sigmoid(gates[:, 3 * H:])
            c = f * c + i * g
            h = o * jnp.tanh(c)
            outs.append(h)
        xs = jnp.stack(outs, axis=1)
        hs.append(h)
        cs.append(c)
    raw = xs
    out = raw
    logits = raw @ emb_w.T + params["bout"][0]
    return logits, raw, out, jnp.stack(hs), jnp.stack(cs)


if __name__ == "__main__":
    # Lane/sublane-friendly small config: H and vocab multiples of 128, bs a
    # multiple of the sublane tile.
    vocab_sz, n_hidden, n_layers, bs, seq = 256, 128, 2, 16, 8

    key = jax.random.PRNGKey(0)
    k_p, k_x = jax.random.split(key)
    params = init_params(k_p, vocab_sz, n_hidden, n_layers)
    kparams = prepare_kernel_params(params)               # offline gate repack
    x = jax.random.randint(k_x, (bs, seq), 0, vocab_sz, dtype=jnp.int32)
    h0 = jnp.zeros((n_layers, bs, n_hidden), jnp.float32)   # self.h[0]
    c0 = jnp.zeros((n_layers, bs, n_hidden), jnp.float32)   # self.h[1]

    ref = lm_reference(x, params, h0, c0)

    # Exact (f32) path -- fused embedding gather.
    fwd_f32 = jax.jit(functools.partial(lm_forward, compute_dtype=jnp.float32))
    got = jax.block_until_ready(fwd_f32(x, kparams, h0, c0))
    for g, w in zip(got, ref):
        assert g.shape == w.shape and g.dtype == w.dtype, (g.shape, w.shape, g.dtype, w.dtype)
        err = float(jnp.max(jnp.abs(g - w)))
        assert err < 2e-3, err

    # bf16 storage path (f32 gate math / f32 accumulation) -- perf config.
    fwd_bf16 = jax.jit(functools.partial(lm_forward, compute_dtype=jnp.bfloat16))
    logits_bf16 = jax.block_until_ready(fwd_bf16(x, kparams, h0, c0))[0]
    rel = float(jnp.linalg.norm(logits_bf16.astype(jnp.float32) - ref[0])
                / jnp.linalg.norm(ref[0]))
    assert rel < 5e-2, rel

    print("KERNEL_OK")
</pallas_src>

<mosaic_0001>
module attributes {stable_mosaic.version = 11 : i64} {
  func.func @_lstm_layer_kernel(%arg0: i32, %arg1: memref<128xi32, #tpu.memory_space<smem>>, %arg2: memref<1x128x512xf32, #tpu.memory_space<vmem>>, %arg3: memref<1x128x512xf32, #tpu.memory_space<vmem>>, %arg4: memref<1x1x512xf32, #tpu.memory_space<vmem>>, %arg5: memref<1x16x128xf32, #tpu.memory_space<vmem>>, %arg6: memref<1x16x128xf32, #tpu.memory_space<vmem>>, %arg7: memref<256x1x128xf32, #tpu.memory_space<any>>, %arg8: memref<128x128xf32, #tpu.memory_space<vmem>>, %arg9: memref<1x16x128xf32, #tpu.memory_space<vmem>>, %arg10: memref<1x16x128xf32, #tpu.memory_space<vmem>>, %arg11: memref<128x512xf32, #tpu.memory_space<vmem>>, %arg12: memref<!tpu.dma_semaphore, #tpu.memory_space<semaphore_mem>>) attributes {dimension_semantics = [#tpu.dimension_semantics<arbitrary>], iteration_bounds = array<i64: 2>, scalar_prefetch = 1 : i64, scratch_operands = 2 : i64, tpu.core_type = #tpu.core_type<tc>, window_params = [{transform_indices = @transform_0, window_bounds = array<i64: 1, 128, 512>}, {transform_indices = @transform_1, window_bounds = array<i64: 1, 128, 512>}, {transform_indices = @transform_2, window_bounds = array<i64: 1, 1, 512>}, {transform_indices = @transform_3, window_bounds = array<i64: 1, 16, 128>}, {transform_indices = @transform_4, window_bounds = array<i64: 1, 16, 128>}, {}, {pipeline_mode = #tpu.pipeline_mode<synchronous>, transform_indices = @transform_6, window_bounds = array<i64: 128, 128>}, {transform_indices = @transform_7, window_bounds = array<i64: 1, 16, 128>}, {transform_indices = @transform_8, window_bounds = array<i64: 1, 16, 128>}]} {
    %c0_i32 = arith.constant 0 : i32
    %0 = arith.cmpi eq, %arg0, %c0_i32 : i32
    %1 = arith.extui %0 : i1 to i32
    %c0_i32_0 = arith.constant 0 : i32
    %2 = arith.cmpi ne, %1, %c0_i32_0 : i32
    scf.if %2 {
      %c0_i32_65 = arith.constant 0 : i32
      %c16_i32_66 = arith.constant 16 : i32
      %216 = arith.addi %c0_i32_65, %c16_i32_66 : i32
      %c1_i32_67 = arith.constant 1 : i32
      scf.for %arg13 = %c0_i32_65 to %216 step %c1_i32_67  : i32 {
        %219 = arith.index_cast %arg13 : i32 to index
        %220 = memref.load %arg1[%219] : memref<128xi32, #tpu.memory_space<smem>>
        %c0_i32_76 = arith.constant 0 : i32
        %c0_i32_77 = arith.constant 0 : i32
        %221 = tpu.memref_slice %arg7[%220, %c0_i32_76, %c0_i32_77] : memref<256x1x128xf32, #tpu.memory_space<any>> -> memref<1x1x128xf32, #tpu.memory_space<any>>
        %222 = tpu.memref_squeeze %221 : memref<1x1x128xf32, #tpu.memory_space<any>> -> memref<1x128xf32, #tpu.memory_space<any>>
        %c0_i32_78 = arith.constant 0 : i32
        %223 = tpu.memref_slice %arg8[%arg13, %c0_i32_78] : memref<128x128xf32, #tpu.memory_space<vmem>> -> memref<1x128xf32, #tpu.memory_space<vmem>>
        tpu.enqueue_dma source(%222 : memref<1x128xf32, #tpu.memory_space<any>>) target(%223 : memref<1x128xf32, #tpu.memory_space<vmem>>) target_semaphore(%arg12 : memref<!tpu.dma_semaphore, #tpu.memory_space<semaphore_mem>>)
      }
      %c16_i32_68 = arith.constant 16 : i32
      %c0_i32_69 = arith.constant 0 : i32
      %c112_i32 = arith.constant 112 : i32
      %217 = arith.addi %c0_i32_69, %c112_i32 : i32
      %c1_i32_70 = arith.constant 1 : i32
      scf.for %arg13 = %c0_i32_69 to %217 step %c1_i32_70  : i32 {
        %c16_i32_76 = arith.constant 16 : i32
        %219 = arith.addi %arg13, %c16_i32_76 : i32
        %220 = arith.index_cast %219 : i32 to index
        %221 = memref.load %arg1[%220] : memref<128xi32, #tpu.memory_space<smem>>
        %c0_i32_77 = arith.constant 0 : i32
        %c0_i32_78 = arith.constant 0 : i32
        %222 = tpu.memref_slice %arg7[%221, %c0_i32_77, %c0_i32_78] : memref<256x1x128xf32, #tpu.memory_space<any>> -> memref<1x1x128xf32, #tpu.memory_space<any>>
        %223 = tpu.memref_squeeze %222 : memref<1x1x128xf32, #tpu.memory_space<any>> -> memref<1x128xf32, #tpu.memory_space<any>>
        %c0_i32_79 = arith.constant 0 : i32
        %224 = tpu.memref_slice %arg8[%219, %c0_i32_79] : memref<128x128xf32, #tpu.memory_space<vmem>> -> memref<1x128xf32, #tpu.memory_space<vmem>>
        tpu.enqueue_dma source(%223 : memref<1x128xf32, #tpu.memory_space<any>>) target(%224 : memref<1x128xf32, #tpu.memory_space<vmem>>) target_semaphore(%arg12 : memref<!tpu.dma_semaphore, #tpu.memory_space<semaphore_mem>>)
        %225 = arith.index_cast %arg13 : i32 to index
        %226 = memref.load %arg1[%225] : memref<128xi32, #tpu.memory_space<smem>>
        %c0_i32_80 = arith.constant 0 : i32
        %c0_i32_81 = arith.constant 0 : i32
        %227 = tpu.memref_slice %arg7[%226, %c0_i32_80, %c0_i32_81] : memref<256x1x128xf32, #tpu.memory_space<any>> -> memref<1x1x128xf32, #tpu.memory_space<any>>
        %228 = tpu.memref_squeeze %227 : memref<1x1x128xf32, #tpu.memory_space<any>> -> memref<1x128xf32, #tpu.memory_space<any>>
        %c0_i32_82 = arith.constant 0 : i32
        %229 = tpu.memref_slice %arg8[%arg13, %c0_i32_82] : memref<128x128xf32, #tpu.memory_space<vmem>> -> memref<1x128xf32, #tpu.memory_space<vmem>>
        tpu.wait_dma2 semaphore(%arg12 : memref<!tpu.dma_semaphore, #tpu.memory_space<semaphore_mem>>) src(%228 : memref<1x128xf32, #tpu.memory_space<any>>) dst(%229 : memref<1x128xf32, #tpu.memory_space<vmem>>)
      }
      %c112_i32_71 = arith.constant 112 : i32
      %c112_i32_72 = arith.constant 112 : i32
      %c16_i32_73 = arith.constant 16 : i32
      %218 = arith.addi %c112_i32_72, %c16_i32_73 : i32
      %c1_i32_74 = arith.constant 1 : i32
      scf.for %arg13 = %c112_i32_72 to %218 step %c1_i32_74  : i32 {
        %219 = arith.index_cast %arg13 : i32 to index
        %220 = memref.load %arg1[%219] : memref<128xi32, #tpu.memory_space<smem>>
        %c0_i32_76 = arith.constant 0 : i32
        %c0_i32_77 = arith.constant 0 : i32
        %221 = tpu.memref_slice %arg7[%220, %c0_i32_76, %c0_i32_77] : memref<256x1x128xf32, #tpu.memory_space<any>> -> memref<1x1x128xf32, #tpu.memory_space<any>>
        %222 = tpu.memref_squeeze %221 : memref<1x1x128xf32, #tpu.memory_space<any>> -> memref<1x128xf32, #tpu.memory_space<any>>
        %c0_i32_78 = arith.constant 0 : i32
        %223 = tpu.memref_slice %arg8[%arg13, %c0_i32_78] : memref<128x128xf32, #tpu.memory_space<vmem>> -> memref<1x128xf32, #tpu.memory_space<vmem>>
        tpu.wait_dma2 semaphore(%arg12 : memref<!tpu.dma_semaphore, #tpu.memory_space<semaphore_mem>>) src(%222 : memref<1x128xf32, #tpu.memory_space<any>>) dst(%223 : memref<1x128xf32, #tpu.memory_space<vmem>>)
      }
      %c16_i32_75 = arith.constant 16 : i32
    } else {
    }
    %c0 = arith.constant 0 : index
    %c0_1 = arith.constant 0 : index
    %c0_2 = arith.constant 0 : index
    %3 = vector.load %arg2[%c0, %c0_1, %c0_2] : memref<1x128x512xf32, #tpu.memory_space<vmem>>, vector<1x128x512xf32>
    %4 = vector.shape_cast %3 : vector<1x128x512xf32> to vector<128x512xf32>
    %c0_3 = arith.constant 0 : index
    %c0_4 = arith.constant 0 : index
    %c0_5 = arith.constant 0 : index
    %5 = vector.load %arg3[%c0_3, %c0_4, %c0_5] : memref<1x128x512xf32, #tpu.memory_space<vmem>>, vector<1x128x512xf32>
    %6 = vector.shape_cast %5 : vector<1x128x512xf32> to vector<128x512xf32>
    %c0_6 = arith.constant 0 : index
    %c0_7 = arith.constant 0 : index
    %c0_8 = arith.constant 0 : index
    %7 = vector.load %arg4[%c0_6, %c0_7, %c0_8] : memref<1x1x512xf32, #tpu.memory_space<vmem>>, vector<1x1x512xf32>
    %8 = vector.shape_cast %7 : vector<1x1x512xf32> to vector<1x512xf32>
    %c0_9 = arith.constant 0 : index
    %c0_10 = arith.constant 0 : index
    %9 = vector.load %arg8[%c0_9, %c0_10] : memref<128x128xf32, #tpu.memory_space<vmem>>, vector<128x128xf32>
    %cst = arith.constant dense<0.000000e+00> : vector<128x512xf32>
    %10 = tpu.matmul %9, %4, %cst {dimension_numbers = #tpu.dot_dimension_numbers<[1], [0], [0], [1], [0, 0, 1, 1], [], []>} : vector<128x128xf32>, vector<128x512xf32>, vector<128x512xf32> -> vector<128x512xf32>
    %11 = vector.broadcast %8 : vector<1x512xf32> to vector<128x512xf32>
    %12 = arith.addf %10, %11 : vector<128x512xf32>
    %c0_11 = arith.constant 0 : index
    %c0_12 = arith.constant 0 : index
    %13 = vector.load %arg11[%c0_11, %c0_12] : memref<128x512xf32, #tpu.memory_space<vmem>>, vector<128x512xf32>
    tpu.vector_store %arg11[%c0_11, %c0_12], %12 {strides = array<i32>} : memref<128x512xf32, #tpu.memory_space<vmem>>, vector<128x512xf32>,
    %c0_13 = arith.constant 0 : index
    %c0_14 = arith.constant 0 : index
    %c0_15 = arith.constant 0 : index
    %14 = vector.load %arg5[%c0_13, %c0_14, %c0_15] : memref<1x16x128xf32, #tpu.memory_space<vmem>>, vector<1x16x128xf32>
    %15 = vector.shape_cast %14 : vector<1x16x128xf32> to vector<16x128xf32>
    %c0_16 = arith.constant 0 : index
    %c0_17 = arith.constant 0 : index
    %c0_18 = arith.constant 0 : index
    %16 = vector.load %arg6[%c0_16, %c0_17, %c0_18] : memref<1x16x128xf32, #tpu.memory_space<vmem>>, vector<1x16x128xf32>
    %17 = vector.shape_cast %16 : vector<1x16x128xf32> to vector<16x128xf32>
    %c0_i32_19 = arith.constant 0 : i32
    %c16_i32 = arith.constant 16 : i32
    %18 = arith.muli %c0_i32_19, %c16_i32 : i32
    %19 = tpu.assume_multiple %18, 16 : i32
    %20 = arith.index_cast %19 : i32 to index
    %c0_20 = arith.constant 0 : index
    %21 = vector.load %arg11[%20, %c0_20] : memref<128x512xf32, #tpu.memory_space<vmem>>, vector<16x512xf32>
    %cst_21 = arith.constant dense<0.000000e+00> : vector<16x512xf32>
    %22 = tpu.matmul %15, %6, %cst_21 {dimension_numbers = #tpu.dot_dimension_numbers<[1], [0], [0], [1], [0, 0, 1, 1], [], []>} : vector<16x128xf32>, vector<128x512xf32>, vector<16x512xf32> -> vector<16x512xf32>
    %23 = arith.addf %21, %22 : vector<16x512xf32>
    %24 = vector.extract_strided_slice %23 {offsets = [0, 0], sizes = [16, 384], strides = [1, 1]} : vector<16x512xf32> to vector<16x384xf32>
    %25 = arith.negf %24 : vector<16x384xf32>
    %26 = math.exp %25 : vector<16x384xf32>
    %cst_22 = arith.constant 1.000000e+00 : f32
    %27 = vector.broadcast %cst_22 : f32 to vector<16x384xf32>
    %28 = arith.addf %27, %26 : vector<16x384xf32>
    %29 = arith.divf %27, %28 : vector<16x384xf32>
    %30 = vector.extract_strided_slice %29 {offsets = [0, 0], sizes = [16, 128], strides = [1, 1]} : vector<16x384xf32> to vector<16x128xf32>
    %31 = vector.extract_strided_slice %29 {offsets = [0, 128], sizes = [16, 128], strides = [1, 1]} : vector<16x384xf32> to vector<16x128xf32>
    %32 = vector.extract_strided_slice %29 {offsets = [0, 256], sizes = [16, 128], strides = [1, 1]} : vector<16x384xf32> to vector<16x128xf32>
    %33 = vector.extract_strided_slice %23 {offsets = [0, 384], sizes = [16, 128], strides = [1, 1]} : vector<16x512xf32> to vector<16x128xf32>
    %34 = math.tanh %33 : vector<16x128xf32>
    %35 = arith.mulf %31, %17 : vector<16x128xf32>
    %36 = arith.mulf %30, %34 : vector<16x128xf32>
    %37 = arith.addf %35, %36 : vector<16x128xf32>
    %38 = math.tanh %37 : vector<16x128xf32>
    %39 = arith.mulf %32, %38 : vector<16x128xf32>
    %40 = arith.index_cast %19 : i32 to index
    %c0_23 = arith.constant 0 : index
    %41 = vector.load %arg8[%40, %c0_23] : memref<128x128xf32, #tpu.memory_space<vmem>>, vector<16x128xf32>
    tpu.vector_store %arg8[%40, %c0_23], %39 {strides = array<i32>} : memref<128x128xf32, #tpu.memory_space<vmem>>, vector<16x128xf32>,
    %c1_i32 = arith.constant 1 : i32
    %c16_i32_24 = arith.constant 16 : i32
    %42 = arith.muli %c1_i32, %c16_i32_24 : i32
    %43 = tpu.assume_multiple %42, 16 : i32
    %44 = arith.index_cast %43 : i32 to index
    %c0_25 = arith.constant 0 : index
    %45 = vector.load %arg11[%44, %c0_25] : memref<128x512xf32, #tpu.memory_space<vmem>>, vector<16x512xf32>
    %cst_26 = arith.constant dense<0.000000e+00> : vector<16x512xf32>
    %46 = tpu.matmul %39, %6, %cst_26 {dimension_numbers = #tpu.dot_dimension_numbers<[1], [0], [0], [1], [0, 0, 1, 1], [], []>} : vector<16x128xf32>, vector<128x512xf32>, vector<16x512xf32> -> vector<16x512xf32>
    %47 = arith.addf %45, %46 : vector<16x512xf32>
    %48 = vector.extract_strided_slice %47 {offsets = [0, 0], sizes = [16, 384], strides = [1, 1]} : vector<16x512xf32> to vector<16x384xf32>
    %49 = arith.negf %48 : vector<16x384xf32>
    %50 = math.exp %49 : vector<16x384xf32>
    %cst_27 = arith.constant 1.000000e+00 : f32
    %51 = vector.broadcast %cst_27 : f32 to vector<16x384xf32>
    %52 = arith.addf %51, %50 : vector<16x384xf32>
    %53 = arith.divf %51, %52 : vector<16x384xf32>
    %54 = vector.extract_strided_slice %53 {offsets = [0, 0], sizes = [16, 128], strides = [1, 1]} : vector<16x384xf32> to vector<16x128xf32>
    %55 = vector.extract_strided_slice %53 {offsets = [0, 128], sizes = [16, 128], strides = [1, 1]} : vector<16x384xf32> to vector<16x128xf32>
    %56 = vector.extract_strided_slice %53 {offsets = [0, 256], sizes = [16, 128], strides = [1, 1]} : vector<16x384xf32> to vector<16x128xf32>
    %57 = vector.extract_strided_slice %47 {offsets = [0, 384], sizes = [16, 128], strides = [1, 1]} : vector<16x512xf32> to vector<16x128xf32>
    %58 = math.tanh %57 : vector<16x128xf32>
    %59 = arith.mulf %55, %37 : vector<16x128xf32>
    %60 = arith.mulf %54, %58 : vector<16x128xf32>
    %61 = arith.addf %59, %60 : vector<16x128xf32>
    %62 = math.tanh %61 : vector<16x128xf32>
    %63 = arith.mulf %56, %62 : vector<16x128xf32>
    %64 = arith.index_cast %43 : i32 to index
    %c0_28 = arith.constant 0 : index
    %65 = vector.load %arg8[%64, %c0_28] : memref<128x128xf32, #tpu.memory_space<vmem>>, vector<16x128xf32>
    tpu.vector_store %arg8[%64, %c0_28], %63 {strides = array<i32>} : memref<128x128xf32, #tpu.memory_space<vmem>>, vector<16x128xf32>,
    %c2_i32 = arith.constant 2 : i32
    %c16_i32_29 = arith.constant 16 : i32
    %66 = arith.muli %c2_i32, %c16_i32_29 : i32
    %67 = tpu.assume_multiple %66, 16 : i32
    %68 = arith.index_cast %67 : i32 to index
    %c0_30 = arith.constant 0 : index
    %69 = vector.load %arg11[%68, %c0_30] : memref<128x512xf32, #tpu.memory_space<vmem>>, vector<16x512xf32>
    %cst_31 = arith.constant dense<0.000000e+00> : vector<16x512xf32>
    %70 = tpu.matmul %63, %6, %cst_31 {dimension_numbers = #tpu.dot_dimension_numbers<[1], [0], [0], [1], [0, 0, 1, 1], [], []>} : vector<16x128xf32>, vector<128x512xf32>, vector<16x512xf32> -> vector<16x512xf32>
    %71 = arith.addf %69, %70 : vector<16x512xf32>
    %72 = vector.extract_strided_slice %71 {offsets = [0, 0], sizes = [16, 384], strides = [1, 1]} : vector<16x512xf32> to vector<16x384xf32>
    %73 = arith.negf %72 : vector<16x384xf32>
    %74 = math.exp %73 : vector<16x384xf32>
    %cst_32 = arith.constant 1.000000e+00 : f32
    %75 = vector.broadcast %cst_32 : f32 to vector<16x384xf32>
    %76 = arith.addf %75, %74 : vector<16x384xf32>
    %77 = arith.divf %75, %76 : vector<16x384xf32>
    %78 = vector.extract_strided_slice %77 {offsets = [0, 0], sizes = [16, 128], strides = [1, 1]} : vector<16x384xf32> to vector<16x128xf32>
    %79 = vector.extract_strided_slice %77 {offsets = [0, 128], sizes = [16, 128], strides = [1, 1]} : vector<16x384xf32> to vector<16x128xf32>
    %80 = vector.extract_strided_slice %77 {offsets = [0, 256], sizes = [16, 128], strides = [1, 1]} : vector<16x384xf32> to vector<16x128xf32>
    %81 = vector.extract_strided_slice %71 {offsets = [0, 384], sizes = [16, 128], strides = [1, 1]} : vector<16x512xf32> to vector<16x128xf32>
    %82 = math.tanh %81 : vector<16x128xf32>
    %83 = arith.mulf %79, %61 : vector<16x128xf32>
    %84 = arith.mulf %78, %82 : vector<16x128xf32>
    %85 = arith.addf %83, %84 : vector<16x128xf32>
    %86 = math.tanh %85 : vector<16x128xf32>
    %87 = arith.mulf %80, %86 : vector<16x128xf32>
    %88 = arith.index_cast %67 : i32 to index
    %c0_33 = arith.constant 0 : index
    %89 = vector.load %arg8[%88, %c0_33] : memref<128x128xf32, #tpu.memory_space<vmem>>, vector<16x128xf32>
    tpu.vector_store %arg8[%88, %c0_33], %87 {strides = array<i32>} : memref<128x128xf32, #tpu.memory_space<vmem>>, vector<16x128xf32>,
    %c3_i32 = arith.constant 3 : i32
    %c16_i32_34 = arith.constant 16 : i32
    %90 = arith.muli %c3_i32, %c16_i32_34 : i32
    %91 = tpu.assume_multiple %90, 16 : i32
    %92 = arith.index_cast %91 : i32 to index
    %c0_35 = arith.constant 0 : index
    %93 = vector.load %arg11[%92, %c0_35] : memref<128x512xf32, #tpu.memory_space<vmem>>, vector<16x512xf32>
    %cst_36 = arith.constant dense<0.000000e+00> : vector<16x512xf32>
    %94 = tpu.matmul %87, %6, %cst_36 {dimension_numbers = #tpu.dot_dimension_numbers<[1], [0], [0], [1], [0, 0, 1, 1], [], []>} : vector<16x128xf32>, vector<128x512xf32>, vector<16x512xf32> -> vector<16x512xf32>
    %95 = arith.addf %93, %94 : vector<16x512xf32>
    %96 = vector.extract_strided_slice %95 {offsets = [0, 0], sizes = [16, 384], strides = [1, 1]} : vector<16x512xf32> to vector<16x384xf32>
    %97 = arith.negf %96 : vector<16x384xf32>
    %98 = math.exp %97 : vector<16x384xf32>
    %cst_37 = arith.constant 1.000000e+00 : f32
    %99 = vector.broadcast %cst_37 : f32 to vector<16x384xf32>
    %100 = arith.addf %99, %98 : vector<16x384xf32>
    %101 = arith.divf %99, %100 : vector<16x384xf32>
    %102 = vector.extract_strided_slice %101 {offsets = [0, 0], sizes = [16, 128], strides = [1, 1]} : vector<16x384xf32> to vector<16x128xf32>
    %103 = vector.extract_strided_slice %101 {offsets = [0, 128], sizes = [16, 128], strides = [1, 1]} : vector<16x384xf32> to vector<16x128xf32>
    %104 = vector.extract_strided_slice %101 {offsets = [0, 256], sizes = [16, 128], strides = [1, 1]} : vector<16x384xf32> to vector<16x128xf32>
    %105 = vector.extract_strided_slice %95 {offsets = [0, 384], sizes = [16, 128], strides = [1, 1]} : vector<16x512xf32> to vector<16x128xf32>
    %106 = math.tanh %105 : vector<16x128xf32>
    %107 = arith.mulf %103, %85 : vector<16x128xf32>
    %108 = arith.mulf %102, %106 : vector<16x128xf32>
    %109 = arith.addf %107, %108 : vector<16x128xf32>
    %110 = math.tanh %109 : vector<16x128xf32>
    %111 = arith.mulf %104, %110 : vector<16x128xf32>
    %112 = arith.index_cast %91 : i32 to index
    %c0_38 = arith.constant 0 : index
    %113 = vector.load %arg8[%112, %c0_38] : memref<128x128xf32, #tpu.memory_space<vmem>>, vector<16x128xf32>
    tpu.vector_store %arg8[%112, %c0_38], %111 {strides = array<i32>} : memref<128x128xf32, #tpu.memory_space<vmem>>, vector<16x128xf32>,
    %c4_i32 = arith.constant 4 : i32
    %c16_i32_39 = arith.constant 16 : i32
    %114 = arith.muli %c4_i32, %c16_i32_39 : i32
    %115 = tpu.assume_multiple %114, 16 : i32
    %116 = arith.index_cast %115 : i32 to index
    %c0_40 = arith.constant 0 : index
    %117 = vector.load %arg11[%116, %c0_40] : memref<128x512xf32, #tpu.memory_space<vmem>>, vector<16x512xf32>
    %cst_41 = arith.constant dense<0.000000e+00> : vector<16x512xf32>
    %118 = tpu.matmul %111, %6, %cst_41 {dimension_numbers = #tpu.dot_dimension_numbers<[1], [0], [0], [1], [0, 0, 1, 1], [], []>} : vector<16x128xf32>, vector<128x512xf32>, vector<16x512xf32> -> vector<16x512xf32>
    %119 = arith.addf %117, %118 : vector<16x512xf32>
    %120 = vector.extract_strided_slice %119 {offsets = [0, 0], sizes = [16, 384], strides = [1, 1]} : vector<16x512xf32> to vector<16x384xf32>
    %121 = arith.negf %120 : vector<16x384xf32>
    %122 = math.exp %121 : vector<16x384xf32>
    %cst_42 = arith.constant 1.000000e+00 : f32
    %123 = vector.broadcast %cst_42 : f32 to vector<16x384xf32>
    %124 = arith.addf %123, %122 : vector<16x384xf32>
    %125 = arith.divf %123, %124 : vector<16x384xf32>
    %126 = vector.extract_strided_slice %125 {offsets = [0, 0], sizes = [16, 128], strides = [1, 1]} : vector<16x384xf32> to vector<16x128xf32>
    %127 = vector.extract_strided_slice %125 {offsets = [0, 128], sizes = [16, 128], strides = [1, 1]} : vector<16x384xf32> to vector<16x128xf32>
    %128 = vector.extract_strided_slice %125 {offsets = [0, 256], sizes = [16, 128], strides = [1, 1]} : vector<16x384xf32> to vector<16x128xf32>
    %129 = vector.extract_strided_slice %119 {offsets = [0, 384], sizes = [16, 128], strides = [1, 1]} : vector<16x512xf32> to vector<16x128xf32>
    %130 = math.tanh %129 : vector<16x128xf32>
    %131 = arith.mulf %127, %109 : vector<16x128xf32>
    %132 = arith.mulf %126, %130 : vector<16x128xf32>
    %133 = arith.addf %131, %132 : vector<16x128xf32>
    %134 = math.tanh %133 : vector<16x128xf32>
    %135 = arith.mulf %128, %134 : vector<16x128xf32>
    %136 = arith.index_cast %115 : i32 to index
    %c0_43 = arith.constant 0 : index
    %137 = vector.load %arg8[%136, %c0_43] : memref<128x128xf32, #tpu.memory_space<vmem>>, vector<16x128xf32>
    tpu.vector_store %arg8[%136, %c0_43], %135 {strides = array<i32>} : memref<128x128xf32, #tpu.memory_space<vmem>>, vector<16x128xf32>,
    %c5_i32 = arith.constant 5 : i32
    %c16_i32_44 = arith.constant 16 : i32
    %138 = arith.muli %c5_i32, %c16_i32_44 : i32
    %139 = tpu.assume_multiple %138, 16 : i32
    %140 = arith.index_cast %139 : i32 to index
    %c0_45 = arith.constant 0 : index
    %141 = vector.load %arg11[%140, %c0_45] : memref<128x512xf32, #tpu.memory_space<vmem>>, vector<16x512xf32>
    %cst_46 = arith.constant dense<0.000000e+00> : vector<16x512xf32>
    %142 = tpu.matmul %135, %6, %cst_46 {dimension_numbers = #tpu.dot_dimension_numbers<[1], [0], [0], [1], [0, 0, 1, 1], [], []>} : vector<16x128xf32>, vector<128x512xf32>, vector<16x512xf32> -> vector<16x512xf32>
    %143 = arith.addf %141, %142 : vector<16x512xf32>
    %144 = vector.extract_strided_slice %143 {offsets = [0, 0], sizes = [16, 384], strides = [1, 1]} : vector<16x512xf32> to vector<16x384xf32>
    %145 = arith.negf %144 : vector<16x384xf32>
    %146 = math.exp %145 : vector<16x384xf32>
    %cst_47 = arith.constant 1.000000e+00 : f32
    %147 = vector.broadcast %cst_47 : f32 to vector<16x384xf32>
    %148 = arith.addf %147, %146 : vector<16x384xf32>
    %149 = arith.divf %147, %148 : vector<16x384xf32>
    %150 = vector.extract_strided_slice %149 {offsets = [0, 0], sizes = [16, 128], strides = [1, 1]} : vector<16x384xf32> to vector<16x128xf32>
    %151 = vector.extract_strided_slice %149 {offsets = [0, 128], sizes = [16, 128], strides = [1, 1]} : vector<16x384xf32> to vector<16x128xf32>
    %152 = vector.extract_strided_slice %149 {offsets = [0, 256], sizes = [16, 128], strides = [1, 1]} : vector<16x384xf32> to vector<16x128xf32>
    %153 = vector.extract_strided_slice %143 {offsets = [0, 384], sizes = [16, 128], strides = [1, 1]} : vector<16x512xf32> to vector<16x128xf32>
    %154 = math.tanh %153 : vector<16x128xf32>
    %155 = arith.mulf %151, %133 : vector<16x128xf32>
    %156 = arith.mulf %150, %154 : vector<16x128xf32>
    %157 = arith.addf %155, %156 : vector<16x128xf32>
    %158 = math.tanh %157 : vector<16x128xf32>
    %159 = arith.mulf %152, %158 : vector<16x128xf32>
    %160 = arith.index_cast %139 : i32 to index
    %c0_48 = arith.constant 0 : index
    %161 = vector.load %arg8[%160, %c0_48] : memref<128x128xf32, #tpu.memory_space<vmem>>, vector<16x128xf32>
    tpu.vector_store %arg8[%160, %c0_48], %159 {strides = array<i32>} : memref<128x128xf32, #tpu.memory_space<vmem>>, vector<16x128xf32>,
    %c6_i32 = arith.constant 6 : i32
    %c16_i32_49 = arith.constant 16 : i32
    %162 = arith.muli %c6_i32, %c16_i32_49 : i32
    %163 = tpu.assume_multiple %162, 16 : i32
    %164 = arith.index_cast %163 : i32 to index
    %c0_50 = arith.constant 0 : index
    %165 = vector.load %arg11[%164, %c0_50] : memref<128x512xf32, #tpu.memory_space<vmem>>, vector<16x512xf32>
    %cst_51 = arith.constant dense<0.000000e+00> : vector<16x512xf32>
    %166 = tpu.matmul %159, %6, %cst_51 {dimension_numbers = #tpu.dot_dimension_numbers<[1], [0], [0], [1], [0, 0, 1, 1], [], []>} : vector<16x128xf32>, vector<128x512xf32>, vector<16x512xf32> -> vector<16x512xf32>
    %167 = arith.addf %165, %166 : vector<16x512xf32>
    %168 = vector.extract_strided_slice %167 {offsets = [0, 0], sizes = [16, 384], strides = [1, 1]} : vector<16x512xf32> to vector<16x384xf32>
    %169 = arith.negf %168 : vector<16x384xf32>
    %170 = math.exp %169 : vector<16x384xf32>
    %cst_52 = arith.constant 1.000000e+00 : f32
    %171 = vector.broadcast %cst_52 : f32 to vector<16x384xf32>
    %172 = arith.addf %171, %170 : vector<16x384xf32>
    %173 = arith.divf %171, %172 : vector<16x384xf32>
    %174 = vector.extract_strided_slice %173 {offsets = [0, 0], sizes = [16, 128], strides = [1, 1]} : vector<16x384xf32> to vector<16x128xf32>
    %175 = vector.extract_strided_slice %173 {offsets = [0, 128], sizes = [16, 128], strides = [1, 1]} : vector<16x384xf32> to vector<16x128xf32>
    %176 = vector.extract_strided_slice %173 {offsets = [0, 256], sizes = [16, 128], strides = [1, 1]} : vector<16x384xf32> to vector<16x128xf32>
    %177 = vector.extract_strided_slice %167 {offsets = [0, 384], sizes = [16, 128], strides = [1, 1]} : vector<16x512xf32> to vector<16x128xf32>
    %178 = math.tanh %177 : vector<16x128xf32>
    %179 = arith.mulf %175, %157 : vector<16x128xf32>
    %180 = arith.mulf %174, %178 : vector<16x128xf32>
    %181 = arith.addf %179, %180 : vector<16x128xf32>
    %182 = math.tanh %181 : vector<16x128xf32>
    %183 = arith.mulf %176, %182 : vector<16x128xf32>
    %184 = arith.index_cast %163 : i32 to index
    %c0_53 = arith.constant 0 : index
    %185 = vector.load %arg8[%184, %c0_53] : memref<128x128xf32, #tpu.memory_space<vmem>>, vector<16x128xf32>
    tpu.vector_store %arg8[%184, %c0_53], %183 {strides = array<i32>} : memref<128x128xf32, #tpu.memory_space<vmem>>, vector<16x128xf32>,
    %c7_i32 = arith.constant 7 : i32
    %c16_i32_54 = arith.constant 16 : i32
    %186 = arith.muli %c7_i32, %c16_i32_54 : i32
    %187 = tpu.assume_multiple %186, 16 : i32
    %188 = arith.index_cast %187 : i32 to index
    %c0_55 = arith.constant 0 : index
    %189 = vector.load %arg11[%188, %c0_55] : memref<128x512xf32, #tpu.memory_space<vmem>>, vector<16x512xf32>
    %cst_56 = arith.constant dense<0.000000e+00> : vector<16x512xf32>
    %190 = tpu.matmul %183, %6, %cst_56 {dimension_numbers = #tpu.dot_dimension_numbers<[1], [0], [0], [1], [0, 0, 1, 1], [], []>} : vector<16x128xf32>, vector<128x512xf32>, vector<16x512xf32> -> vector<16x512xf32>
    %191 = arith.addf %189, %190 : vector<16x512xf32>
    %192 = vector.extract_strided_slice %191 {offsets = [0, 0], sizes = [16, 384], strides = [1, 1]} : vector<16x512xf32> to vector<16x384xf32>
    %193 = arith.negf %192 : vector<16x384xf32>
    %194 = math.exp %193 : vector<16x384xf32>
    %cst_57 = arith.constant 1.000000e+00 : f32
    %195 = vector.broadcast %cst_57 : f32 to vector<16x384xf32>
    %196 = arith.addf %195, %194 : vector<16x384xf32>
    %197 = arith.divf %195, %196 : vector<16x384xf32>
    %198 = vector.extract_strided_slice %197 {offsets = [0, 0], sizes = [16, 128], strides = [1, 1]} : vector<16x384xf32> to vector<16x128xf32>
    %199 = vector.extract_strided_slice %197 {offsets = [0, 128], sizes = [16, 128], strides = [1, 1]} : vector<16x384xf32> to vector<16x128xf32>
    %200 = vector.extract_strided_slice %197 {offsets = [0, 256], sizes = [16, 128], strides = [1, 1]} : vector<16x384xf32> to vector<16x128xf32>
    %201 = vector.extract_strided_slice %191 {offsets = [0, 384], sizes = [16, 128], strides = [1, 1]} : vector<16x512xf32> to vector<16x128xf32>
    %202 = math.tanh %201 : vector<16x128xf32>
    %203 = arith.mulf %199, %181 : vector<16x128xf32>
    %204 = arith.mulf %198, %202 : vector<16x128xf32>
    %205 = arith.addf %203, %204 : vector<16x128xf32>
    %206 = math.tanh %205 : vector<16x128xf32>
    %207 = arith.mulf %200, %206 : vector<16x128xf32>
    %208 = arith.index_cast %187 : i32 to index
    %c0_58 = arith.constant 0 : index
    %209 = vector.load %arg8[%208, %c0_58] : memref<128x128xf32, #tpu.memory_space<vmem>>, vector<16x128xf32>
    tpu.vector_store %arg8[%208, %c0_58], %207 {strides = array<i32>} : memref<128x128xf32, #tpu.memory_space<vmem>>, vector<16x128xf32>,
    %c8_i32 = arith.constant 8 : i32
    %c0_59 = arith.constant 0 : index
    %c0_60 = arith.constant 0 : index
    %c0_61 = arith.constant 0 : index
    %210 = vector.load %arg9[%c0_59, %c0_60, %c0_61] : memref<1x16x128xf32, #tpu.memory_space<vmem>>, vector<1x16x128xf32>
    %211 = vector.shape_cast %210 : vector<1x16x128xf32> to vector<16x128xf32>
    %212 = vector.shape_cast %207 : vector<16x128xf32> to vector<1x16x128xf32>
    tpu.vector_store %arg9[%c0_59, %c0_60, %c0_61], %212 {strides = array<i32>} : memref<1x16x128xf32, #tpu.memory_space<vmem>>, vector<1x16x128xf32>,
    %c0_62 = arith.constant 0 : index
    %c0_63 = arith.constant 0 : index
    %c0_64 = arith.constant 0 : index
    %213 = vector.load %arg10[%c0_62, %c0_63, %c0_64] : memref<1x16x128xf32, #tpu.memory_space<vmem>>, vector<1x16x128xf32>
    %214 = vector.shape_cast %213 : vector<1x16x128xf32> to vector<16x128xf32>
    %215 = vector.shape_cast %205 : vector<16x128xf32> to vector<1x16x128xf32>
    tpu.vector_store %arg10[%c0_62, %c0_63, %c0_64], %215 {strides = array<i32>} : memref<1x16x128xf32, #tpu.memory_space<vmem>>, vector<1x16x128xf32>,
    return
  }
  func.func @transform_0(%arg0: i32, %arg1: memref<128xi32, #tpu.memory_space<smem>>) -> (i32, i32, i32) {
    %c0_i32 = arith.constant 0 : i32
    %c0_i32_0 = arith.constant 0 : i32
    %c0_i32_1 = arith.constant 0 : i32
    return %arg0, %c0_i32, %c0_i32_0 : i32, i32, i32
  }
  func.func @transform_1(%arg0: i32, %arg1: memref<128xi32, #tpu.memory_space<smem>>) -> (i32, i32, i32) {
    %c0_i32 = arith.constant 0 : i32
    %c0_i32_0 = arith.constant 0 : i32
    %c0_i32_1 = arith.constant 0 : i32
    return %arg0, %c0_i32, %c0_i32_0 : i32, i32, i32
  }
  func.func @transform_2(%arg0: i32, %arg1: memref<128xi32, #tpu.memory_space<smem>>) -> (i32, i32, i32) {
    %c0_i32 = arith.constant 0 : i32
    %c0_i32_0 = arith.constant 0 : i32
    %c0_i32_1 = arith.constant 0 : i32
    return %arg0, %c0_i32, %c0_i32_0 : i32, i32, i32
  }
  func.func @transform_3(%arg0: i32, %arg1: memref<128xi32, #tpu.memory_space<smem>>) -> (i32, i32, i32) {
    %c0_i32 = arith.constant 0 : i32
    %c0_i32_0 = arith.constant 0 : i32
    %c0_i32_1 = arith.constant 0 : i32
    return %arg0, %c0_i32, %c0_i32_0 : i32, i32, i32
  }
  func.func @transform_4(%arg0: i32, %arg1: memref<128xi32, #tpu.memory_space<smem>>) -> (i32, i32, i32) {
    %c0_i32 = arith.constant 0 : i32
    %c0_i32_0 = arith.constant 0 : i32
    %c0_i32_1 = arith.constant 0 : i32
    return %arg0, %c0_i32, %c0_i32_0 : i32, i32, i32
  }
  func.func @transform_6(%arg0: i32, %arg1: memref<128xi32, #tpu.memory_space<smem>>) -> (i32, i32) {
    %c0_i32 = arith.constant 0 : i32
    %c0_i32_0 = arith.constant 0 : i32
    %c0_i32_1 = arith.constant 0 : i32
    return %c0_i32, %c0_i32_0 : i32, i32
  }
  func.func @transform_7(%arg0: i32, %arg1: memref<128xi32, #tpu.memory_space<smem>>) -> (i32, i32, i32) {
    %c0_i32 = arith.constant 0 : i32
    %c0_i32_0 = arith.constant 0 : i32
    %c0_i32_1 = arith.constant 0 : i32
    return %arg0, %c0_i32, %c0_i32_0 : i32, i32, i32
  }
  func.func @transform_8(%arg0: i32, %arg1: memref<128xi32, #tpu.memory_space<smem>>) -> (i32, i32, i32) {
    %c0_i32 = arith.constant 0 : i32
    %c0_i32_0 = arith.constant 0 : i32
    %c0_i32_1 = arith.constant 0 : i32
    return %arg0, %c0_i32, %c0_i32_0 : i32, i32, i32
  }
}

module attributes {stable_mosaic.version = 11 : i64} {
  func.func @_tied_proj_kernel(%arg0: i32, %arg1: i32, %arg2: memref<128x128xf32, #tpu.memory_space<vmem>>, %arg3: memref<256x128xf32, #tpu.memory_space<vmem>>, %arg4: memref<1x256xf32, #tpu.memory_space<vmem>>, %arg5: memref<128x256xf32, #tpu.memory_space<vmem>>) attributes {dimension_semantics = [#tpu.dimension_semantics<parallel>, #tpu.dimension_semantics<parallel>], iteration_bounds = array<i64: 1, 1>, scalar_prefetch = 0 : i64, scratch_operands = 0 : i64, tpu.core_type = #tpu.core_type<tc>, window_params = [{transform_indices = @transform_0, window_bounds = array<i64: 128, 128>}, {transform_indices = @transform_1, window_bounds = array<i64: 256, 128>}, {transform_indices = @transform_2, window_bounds = array<i64: 1, 256>}, {transform_indices = @transform_3, window_bounds = array<i64: 128, 256>}]} {
    %c0 = arith.constant 0 : index
    %c0_0 = arith.constant 0 : index
    %0 = vector.load %arg2[%c0, %c0_0] : memref<128x128xf32, #tpu.memory_space<vmem>>, vector<128x128xf32>
    %c0_1 = arith.constant 0 : index
    %c0_2 = arith.constant 0 : index
    %1 = vector.load %arg3[%c0_1, %c0_2] : memref<256x128xf32, #tpu.memory_space<vmem>>, vector<256x128xf32>
    %cst = arith.constant dense<0.000000e+00> : vector<128x256xf32>
    %2 = tpu.matmul %0, %1, %cst {dimension_numbers = #tpu.dot_dimension_numbers<[1], [1], [0], [0], [0, 0, 1, 0], [], []>} : vector<128x128xf32>, vector<256x128xf32>, vector<128x256xf32> -> vector<128x256xf32>
    %c0_3 = arith.constant 0 : index
    %c0_4 = arith.constant 0 : index
    %3 = vector.load %arg4[%c0_3, %c0_4] : memref<1x256xf32, #tpu.memory_space<vmem>>, vector<1x256xf32>
    %4 = vector.broadcast %3 : vector<1x256xf32> to vector<128x256xf32>
    %5 = arith.addf %2, %4 : vector<128x256xf32>
    %c0_5 = arith.constant 0 : index
    %c0_6 = arith.constant 0 : index
    %6 = vector.load %arg5[%c0_5, %c0_6] : memref<128x256xf32, #tpu.memory_space<vmem>>, vector<128x256xf32>
    tpu.vector_store %arg5[%c0_5, %c0_6], %5 {strides = array<i32>} : memref<128x256xf32, #tpu.memory_space<vmem>>, vector<128x256xf32>,
    return
  }
  func.func @transform_0(%arg0: i32, %arg1: i32) -> (i32, i32) {
    %c0_i32 = arith.constant 0 : i32
    %c0_i32_0 = arith.constant 0 : i32
    return %arg1, %c0_i32 : i32, i32
  }
  func.func @transform_1(%arg0: i32, %arg1: i32) -> (i32, i32) {
    %c0_i32 = arith.constant 0 : i32
    %c0_i32_0 = arith.constant 0 : i32
    return %arg0, %c0_i32 : i32, i32
  }
  func.func @transform_2(%arg0: i32, %arg1: i32) -> (i32, i32) {
    %c0_i32 = arith.constant 0 : i32
    %c0_i32_0 = arith.constant 0 : i32
    return %c0_i32, %arg0 : i32, i32
  }
  func.func @transform_3(%arg0: i32, %arg1: i32) -> (i32, i32) {
    %c0_i32 = arith.constant 0 : i32
    return %arg1, %arg0 : i32, i32
  }
}

</mosaic_0001>

<bundles_post_ra>
// kernel: lm_forward.3
= control target key start
LH: loop header
LB: loop body
LE: loop exit
PB: predicated region body
PF: predicated region fallthrough
CT: control target
= control target key end

     0   :  { %s649_s0 = inlined_call_operand.vmem [shape: f32[128,128], index: 0, kind: input, shape index: {}]   ;;  %s650_s1 = inlined_call_operand.vmem [shape: f32[256,128], index: 1, kind: input, shape index: {}]   ;;  %s651_s2 = inlined_call_operand.vmem [shape: f32[1,256], index: 2, kind: input, shape index: {}]   ;;  %s652_s3 = inlined_call_operand.hbm [shape: f32[128,256], index: 3, kind: output, shape index: {}]  }
   0x1   :  { %v47_v0 = vld [vmem:[%s650_s1 + $0x80] sm:$0xff]  ;;  %v48_v1 = vld [vmem:[%s650_s1 + $0x88] sm:$0xff]  ;;  %v49_v5 = vld [vmem:[%s650_s1 + $0x90] sm:$0xff] }
   0x2   :  { %v31_v2 = vld [vmem:[%s650_s1] sm:$0xff]  ;;  %v348_v3 = vpack.c.bf16 %v48_v1, %v47_v0  ;;  %v32_v4 = vld [vmem:[%s650_s1 + $0x8] sm:$0xff]  ;;  %v50_v6 = vld [vmem:[%s650_s1 + $0x98] sm:$0xff] }
   0x3   :  { %v350_v7 = vpack.c.bf16 %v32_v4, %v31_v2  ;;  %v352_v8 = vpack.c.bf16 %v50_v6, %v49_v5  ;;  %v33_v9 = vld [vmem:[%s650_s1 + $0x10] sm:$0xff]  ;;  %v34_v10 = vld [vmem:[%s650_s1 + $0x18] sm:$0xff]  ;;  %v51_v11 = vld [vmem:[%s650_s1 + $0xa0] sm:$0xff] }
   0x4   :  { %349 = vmatprep.subr.bf16.mxu0 %v348_v3  ;;  %380 = vmatprep.subr.bf16.mxu1 %v348_v3  ;;  %v52_v12 = vld [vmem:[%s650_s1 + $0xa8] sm:$0xff]  ;;  %v354_v13 = vpack.c.bf16 %v34_v10, %v33_v9  ;;  %v479_v15 = vld [vmem:[%s649_s0] sm:$0xff]  ;;  %v53_v19 = vld [vmem:[%s650_s1 + $0xb0] sm:$0xff] }
   0x5   :  { %351 = vmatpush3.bf16.xpose.msra.mxu0 %v350_v7  ;;  %388 = vmatpush3.bf16.xpose.msra.mxu1 %v350_v7  ;;  %v356_v14 = vpack.c.bf16 %v52_v12, %v51_v11  ;;  %v485_v16 = vld [vmem:[%s649_s0 + $0x40] sm:$0xff]  ;;  %v36_v18 = vld [vmem:[%s650_s1 + $0x28] sm:$0xff]  ;;  %v54_v20 = vld [vmem:[%s650_s1 + $0xb8] sm:$0xff] }
   0x6   :  { %353 = vmatprep.subr.bf16.mxu0 %v352_v8  ;;  %381 = vmatprep.subr.bf16.mxu1 %v352_v8  ;;  %v35_v17 = vld [vmem:[%s650_s1 + $0x20] sm:$0xff] }
   0x7   :  { %316 = vmatprep.mubr.f32.mxu0 %v479_v15  ;;  %332 = vmatprep.mubr.f32.mxu1 %v485_v16  ;;  %v358_v21 = vpack.c.bf16 %v36_v18, %v35_v17 }
   0xd   :  { %355 = vmatpush3.bf16.xpose.msra.mxu0 %v354_v13  ;;  %389 = vmatpush3.bf16.xpose.msra.mxu1 %v354_v13 }
   0xe   :  { %357 = vmatprep.subr.bf16.mxu0 %v356_v14  ;;  %382 = vmatprep.subr.bf16.mxu1 %v356_v14 }
   0xf   :  { %8 = vsyncpa [#allocation3], 0  ;;  %v360_v22 = vpack.c.bf16 %v54_v20, %v53_v19  ;;  %v37_v23 = vld [vmem:[%s650_s1 + $0x30] sm:$0xff]  ;;  %v38_v24 = vld [vmem:[%s650_s1 + $0x38] sm:$0xff]  ;;  %v65_v0 = vlaneseq }
  0x10   :  { %v55_v25 = vld [vmem:[%s650_s1 + $0xc0] sm:$0xff]  ;;  %v56_v26 = vld [vmem:[%s650_s1 + $0xc8] sm:$0xff]  ;;  %v362_v27 = vpack.c.bf16 %v38_v24, %v37_v23  ;;  %v57_v31 = vld [vmem:[%s650_s1 + $0xd0] sm:$0xff] }
  0x11   :  { %v364_v28 = vpack.c.bf16 %v56_v26, %v55_v25  ;;  %v39_v29 = vld [vmem:[%s650_s1 + $0x40] sm:$0xff]  ;;  %v40_v30 = vld [vmem:[%s650_s1 + $0x48] sm:$0xff]  ;;  %v58_v32 = vld [vmem:[%s650_s1 + $0xd8] sm:$0xff]  ;;  %v66_v1 = vshrl.u32 %v65_v0, 7 }
  0x12   :  { %v366_v33 = vpack.c.bf16 %v40_v30, %v39_v29  ;;  %v368_v34 = vpack.c.bf16 %v58_v32, %v57_v31  ;;  %v41_v35 = vld [vmem:[%s650_s1 + $0x50] sm:$0xff]  ;;  %v42_v36 = vld [vmem:[%s650_s1 + $0x58] sm:$0xff]  ;;  %v59_v37 = vld [vmem:[%s650_s1 + $0xe0] sm:$0xff] }
  0x13   :  { %v60_v38 = vld [vmem:[%s650_s1 + $0xe8] sm:$0xff]  ;;  %v370_v39 = vpack.c.bf16 %v42_v36, %v41_v35  ;;  %v43_v41 = vld [vmem:[%s650_s1 + $0x60] sm:$0xff]  ;;  %v61_v43 = vld [vmem:[%s650_s1 + $0xf0] sm:$0xff]  ;;  %v67_v2 = vsub.s32 0, %v66_v1  ;;  %v71_v4 = vsub.s32 1, %v66_v1 }
  0x14   :  { %v372_v40 = vpack.c.bf16 %v60_v38, %v59_v37  ;;  %v44_v42 = vld [vmem:[%s650_s1 + $0x68] sm:$0xff]  ;;  %v62_v44 = vld [vmem:[%s650_s1 + $0xf8] sm:$0xff]  ;;  %v45_v47 = vld [vmem:[%s650_s1 + $0x70] sm:$0xff] }
  0x15   :  { %359 = vmatpush3.bf16.xpose.msra.mxu0 %v358_v21  ;;  %390 = vmatpush3.bf16.xpose.msra.mxu1 %v358_v21  ;;  %v374_v45 = vpack.c.bf16 %v44_v42, %v43_v41  ;;  %v376_v46 = vpack.c.bf16 %v62_v44, %v61_v43  ;;  %v46_v48 = vld [vmem:[%s650_s1 + $0x78] sm:$0xff]  ;;  %v16_v50 = vld [vmem:[%s649_s0 + $0x8] sm:$0xff]  ;;  %v17_v52 = vld [vmem:[%s649_s0 + $0x10] sm:$0xff] }
  0x16   :  { %361 = vmatprep.subr.bf16.mxu0 %v360_v22  ;;  %383 = vmatprep.subr.bf16.mxu1 %v360_v22  ;;  %v378_v49 = vpack.c.bf16 %v46_v48, %v45_v47  ;;  %v24_v51 = vld [vmem:[%s649_s0 + $0x48] sm:$0xff]  ;;  %v25_v53 = vld [vmem:[%s649_s0 + $0x50] sm:$0xff]  ;;  %v18_v54 = vld [vmem:[%s649_s0 + $0x18] sm:$0xff] }
  0x17   :  { %v26_v55 = vld [vmem:[%s649_s0 + $0x58] sm:$0xff]  ;;  %v19_v56 = vld [vmem:[%s649_s0 + $0x20] sm:$0xff]  ;;  %v20_v58 = vld [vmem:[%s649_s0 + $0x28] sm:$0xff] }
  0x18   :  { %v27_v57 = vld [vmem:[%s649_s0 + $0x60] sm:$0xff]  ;;  %v28_v59 = vld [vmem:[%s649_s0 + $0x68] sm:$0xff]  ;;  %v21_v60 = vld [vmem:[%s649_s0 + $0x30] sm:$0xff] }
  0x19   :  { %v29_v61 = vld [vmem:[%s649_s0 + $0x70] sm:$0xff]  ;;  %v22_v62 = vld [vmem:[%s649_s0 + $0x38] sm:$0xff]  ;;  %v63_v3 = vld [vmem:[%s651_s2] sm:$0x3] }
  0x1a   :  { %v30_v63 = vld [vmem:[%s649_s0 + $0x78] sm:$0xff]  ;;  %v601_v5 = vrot.slane %v63_v3, %v67_v2  ;;  %v603_v6 = vrot.slane %v63_v3, %v71_v4  ;;  %s423_s0 = smov [#allocation2]  }
  0x1b   :  { %s273_s2 = sshll.u32 %s423_s0, 4  ;;  %s274_s2 = int_to_ptr.vmem [resolvable:$true] %s273_s2 }
  0x1c   :  { %s399_s28 = scalar_lea.vmem %s274_s2, 4096  ;;  %p404_p1 = scmp.lt.s32.totalorder %s274_s2, %s274_s2 }
  0x1d   :  { %363 = vmatpush3.bf16.xpose.msra.mxu0 %v362_v27  ;;  %391 = vmatpush3.bf16.xpose.msra.mxu1 %v362_v27  ;;  %p400_p0 = scmp.ne.s32.totalorder %s274_s2, %s399_s28  ;;  %p405_p2 = scmp.lt.s32.totalorder %s399_s28, %s399_s28 }
  0x1e   :  { %365 = vmatprep.subr.bf16.mxu0 %v364_v28  ;;  %384 = vmatprep.subr.bf16.mxu1 %v364_v28 }
  0x1f   :  { %p406_p3 = por %p405_p2, %p404_p1 }
  0x21   :  { %p407_p4 = pnand %p406_p3, %p400_p0 }
  0x25   :  { %367 = vmatpush3.bf16.xpose.msra.mxu0 %v366_v33  ;;  %392 = vmatpush3.bf16.xpose.msra.mxu1 %v366_v33 }
  0x26   :  { %369 = vmatprep.subr.bf16.mxu0 %v368_v34  ;;  %385 = vmatprep.subr.bf16.mxu1 %v368_v34 }
  0x2d   :  { %371 = vmatpush3.bf16.xpose.msra.mxu0 %v370_v39  ;;  %393 = vmatpush3.bf16.xpose.msra.mxu1 %v370_v39 }
  0x2e   :  { %373 = vmatprep.subr.bf16.mxu0 %v372_v40  ;;  %386 = vmatprep.subr.bf16.mxu1 %v372_v40 }
  0x35   :  { %375 = vmatpush3.bf16.xpose.msra.mxu0 %v374_v45  ;;  %394 = vmatpush3.bf16.xpose.msra.mxu1 %v374_v45 }
  0x36   :  { %377 = vmatprep.subr.bf16.mxu0 %v376_v46  ;;  %387 = vmatprep.subr.bf16.mxu1 %v376_v46 }
  0x3d   :  { %379 = vmatpush3.bf16.xpose.msra.mxu0 %v378_v49  ;;  %395 = vmatpush3.bf16.xpose.msra.mxu1 %v378_v49 }
  0x44   :  { %317 = vmatmul.mubr.f32.vlgmr.msra.gmra.mrb[0].mxu0 %v479_v15  ;;  %333 = vmatmul.mubr.f32.vlgmr.msra.gmra.mrb[0].mxu1 %v485_v16 }
  0x45   :  { %318 = vmatprep.mubr.f32.mxu0 %v16_v50  ;;  %334 = vmatprep.mubr.f32.mxu1 %v24_v51 }
  0x48   :  { %319 = vmatmul.mubr.f32.gmra.mrb[2].mxu0 %v16_v50  ;;  %335 = vmatmul.mubr.f32.gmra.mrb[2].mxu1 %v24_v51 }
  0x49   :  { %320 = vmatprep.mubr.f32.mxu0 %v17_v52  ;;  %336 = vmatprep.mubr.f32.mxu1 %v25_v53 }
  0x4c   :  { %321 = vmatmul.mubr.f32.gmra.mrb[4].mxu0 %v17_v52  ;;  %337 = vmatmul.mubr.f32.gmra.mrb[4].mxu1 %v25_v53 }
  0x4d   :  { %322 = vmatprep.mubr.f32.mxu0 %v18_v54  ;;  %338 = vmatprep.mubr.f32.mxu1 %v26_v55 }
  0x50   :  { %323 = vmatmul.mubr.f32.gmra.mrb[6].mxu0 %v18_v54  ;;  %339 = vmatmul.mubr.f32.gmra.mrb[6].mxu1 %v26_v55 }
  0x51   :  { %324 = vmatprep.mubr.f32.mxu0 %v19_v56  ;;  %340 = vmatprep.mubr.f32.mxu1 %v27_v57 }
  0x54   :  { %325 = vmatmul.mubr.f32.gmra.mrb[8].mxu0 %v19_v56  ;;  %341 = vmatmul.mubr.f32.gmra.mrb[8].mxu1 %v27_v57 }
  0x55   :  { %326 = vmatprep.mubr.f32.mxu0 %v20_v58  ;;  %342 = vmatprep.mubr.f32.mxu1 %v28_v59 }
  0x58   :  { %327 = vmatmul.mubr.f32.gmra.mrb[10].mxu0 %v20_v58  ;;  %343 = vmatmul.mubr.f32.gmra.mrb[10].mxu1 %v28_v59 }
  0x59   :  { %328 = vmatprep.mubr.f32.mxu0 %v21_v60  ;;  %344 = vmatprep.mubr.f32.mxu1 %v29_v61 }
  0x5c   :  { %329 = vmatmul.mubr.f32.gmra.mrb[12].mxu0 %v21_v60  ;;  %345 = vmatmul.mubr.f32.gmra.mrb[12].mxu1 %v29_v61 }
  0x5d   :  { %330 = vmatprep.mubr.f32.mxu0 %v22_v62  ;;  %346 = vmatprep.mubr.f32.mxu1 %v30_v63 }
  0x60   :  { %331 = vmatmul.mubr.f32.gmra.mrb[14].mxu0 %v22_v62  ;;  %347 = vmatmul.mubr.f32.gmra.mrb[14].mxu1 %v30_v63 }
 0x117   :  { %v141_v7 = vpop.f32.mrb[0].mxu0  ;;  %v189_v8 = vpop.f32.mrb[0].mxu1 }
 0x118   :  { %v142_v9 = vadd.f32 %v141_v7, %v601_v5  ;;  %v190_v10 = vadd.f32 %v189_v8, %v601_v5  ;;  %v143_v11 = vpop.f32.mrb[1].mxu0  ;;  %v191_v12 = vpop.f32.mrb[1].mxu1 }
 0x119   :  { %v144_v13 = vadd.f32 %v143_v11, %v603_v6  ;;  %v192_v14 = vadd.f32 %v191_v12, %v603_v6 }
 0x11a   :  { %236 = vst [vmem:[#allocation2] sm:$0xff] %v142_v9  ;;  %252 = vst [vmem:[#allocation2 + $0x80] sm:$0xff] %v190_v10 }
 0x11b   :  { %237 = vst [vmem:[#allocation2 + $0x8] sm:$0xff] %v144_v13  ;;  %253 = vst [vmem:[#allocation2 + $0x88] sm:$0xff] %v192_v14  ;;  %v147_v15 = vpop.f32.mrb[2].mxu0  ;;  %v195_v16 = vpop.f32.mrb[2].mxu1 }
 0x11c   :  { %v148_v17 = vadd.f32 %v147_v15, %v601_v5  ;;  %v196_v18 = vadd.f32 %v195_v16, %v601_v5  ;;  %v149_v19 = vpop.f32.mrb[3].mxu0  ;;  %v197_v20 = vpop.f32.mrb[3].mxu1 }
 0x11d   :  { %v150_v21 = vadd.f32 %v149_v19, %v603_v6  ;;  %v198_v22 = vadd.f32 %v197_v20, %v603_v6 }
 0x11e   :  { %238 = vst [vmem:[#allocation2 + $0x10] sm:$0xff] %v148_v17  ;;  %254 = vst [vmem:[#allocation2 + $0x90] sm:$0xff] %v196_v18 }
 0x11f   :  { %239 = vst [vmem:[#allocation2 + $0x18] sm:$0xff] %v150_v21  ;;  %255 = vst [vmem:[#allocation2 + $0x98] sm:$0xff] %v198_v22  ;;  %v153_v23 = vpop.f32.mrb[4].mxu0  ;;  %v201_v24 = vpop.f32.mrb[4].mxu1 }
 0x120   :  { %v154_v25 = vadd.f32 %v153_v23, %v601_v5  ;;  %v202_v26 = vadd.f32 %v201_v24, %v601_v5  ;;  %v155_v27 = vpop.f32.mrb[5].mxu0  ;;  %v203_v28 = vpop.f32.mrb[5].mxu1 }
 0x121   :  { %v156_v29 = vadd.f32 %v155_v27, %v603_v6  ;;  %v204_v30 = vadd.f32 %v203_v28, %v603_v6 }
 0x122   :  { %240 = vst [vmem:[#allocation2 + $0x20] sm:$0xff] %v154_v25  ;;  %256 = vst [vmem:[#allocation2 + $0xa0] sm:$0xff] %v202_v26 }
 0x123   :  { %241 = vst [vmem:[#allocation2 + $0x28] sm:$0xff] %v156_v29  ;;  %257 = vst [vmem:[#allocation2 + $0xa8] sm:$0xff] %v204_v30  ;;  %v159_v31 = vpop.f32.mrb[6].mxu0  ;;  %v207_v32 = vpop.f32.mrb[6].mxu1 }
 0x124   :  { %v160_v33 = vadd.f32 %v159_v31, %v601_v5  ;;  %v208_v34 = vadd.f32 %v207_v32, %v601_v5  ;;  %v161_v35 = vpop.f32.mrb[7].mxu0  ;;  %v209_v36 = vpop.f32.mrb[7].mxu1 }
 0x125   :  { %v162_v37 = vadd.f32 %v161_v35, %v603_v6  ;;  %v210_v38 = vadd.f32 %v209_v36, %v603_v6 }
 0x126   :  { %242 = vst [vmem:[#allocation2 + $0x30] sm:$0xff] %v160_v33  ;;  %258 = vst [vmem:[#allocation2 + $0xb0] sm:$0xff] %v208_v34 }
 0x127   :  { %243 = vst [vmem:[#allocation2 + $0x38] sm:$0xff] %v162_v37  ;;  %259 = vst [vmem:[#allocation2 + $0xb8] sm:$0xff] %v210_v38  ;;  %v165_v39 = vpop.f32.mrb[8].mxu0  ;;  %v213_v40 = vpop.f32.mrb[8].mxu1 }
 0x128   :  { %v166_v41 = vadd.f32 %v165_v39, %v601_v5  ;;  %v214_v42 = vadd.f32 %v213_v40, %v601_v5  ;;  %v167_v43 = vpop.f32.mrb[9].mxu0  ;;  %v215_v44 = vpop.f32.mrb[9].mxu1 }
 0x129   :  { %v168_v45 = vadd.f32 %v167_v43, %v603_v6  ;;  %v216_v46 = vadd.f32 %v215_v44, %v603_v6 }
 0x12a   :  { %244 = vst [vmem:[#allocation2 + $0x40] sm:$0xff] %v166_v41  ;;  %260 = vst [vmem:[#allocation2 + $0xc0] sm:$0xff] %v214_v42 }
 0x12b   :  { %245 = vst [vmem:[#allocation2 + $0x48] sm:$0xff] %v168_v45  ;;  %261 = vst [vmem:[#allocation2 + $0xc8] sm:$0xff] %v216_v46  ;;  %v171_v47 = vpop.f32.mrb[10].mxu0  ;;  %v219_v48 = vpop.f32.mrb[10].mxu1 }
 0x12c   :  { %v172_v49 = vadd.f32 %v171_v47, %v601_v5  ;;  %v220_v50 = vadd.f32 %v219_v48, %v601_v5  ;;  %v173_v51 = vpop.f32.mrb[11].mxu0  ;;  %v221_v52 = vpop.f32.mrb[11].mxu1 }
 0x12d   :  { %v174_v53 = vadd.f32 %v173_v51, %v603_v6  ;;  %v222_v54 = vadd.f32 %v221_v52, %v603_v6 }
 0x12e   :  { %246 = vst [vmem:[#allocation2 + $0x50] sm:$0xff] %v172_v49  ;;  %262 = vst [vmem:[#allocation2 + $0xd0] sm:$0xff] %v220_v50 }
 0x12f   :  { %247 = vst [vmem:[#allocation2 + $0x58] sm:$0xff] %v174_v53  ;;  %263 = vst [vmem:[#allocation2 + $0xd8] sm:$0xff] %v222_v54  ;;  %v177_v55 = vpop.f32.mrb[12].mxu0  ;;  %v225_v56 = vpop.f32.mrb[12].mxu1 }
 0x130   :  { %v178_v57 = vadd.f32 %v177_v55, %v601_v5  ;;  %v226_v58 = vadd.f32 %v225_v56, %v601_v5  ;;  %v179_v59 = vpop.f32.mrb[13].mxu0  ;;  %v227_v60 = vpop.f32.mrb[13].mxu1 }
 0x131   :  { %v180_v61 = vadd.f32 %v179_v59, %v603_v6  ;;  %v228_v62 = vadd.f32 %v227_v60, %v603_v6 }
 0x132   :  { %248 = vst [vmem:[#allocation2 + $0x60] sm:$0xff] %v178_v57  ;;  %264 = vst [vmem:[#allocation2 + $0xe0] sm:$0xff] %v226_v58 }
 0x133   :  { %249 = vst [vmem:[#allocation2 + $0x68] sm:$0xff] %v180_v61  ;;  %265 = vst [vmem:[#allocation2 + $0xe8] sm:$0xff] %v228_v62  ;;  %v183_v63 = vpop.f32.mrb[14].mxu0  ;;  %v231_v0 = vpop.f32.mrb[14].mxu1 }
 0x134   :  { %v184_v1 = vadd.f32 %v183_v63, %v601_v5  ;;  %v232_v2 = vadd.f32 %v231_v0, %v601_v5  ;;  %v185_v3 = vpop.f32.mrb[15].mxu0  ;;  %v233_v4 = vpop.f32.mrb[15].mxu1 }
 0x135   :  { %v186_v7 = vadd.f32 %v185_v3, %v603_v6  ;;  %v234_v8 = vadd.f32 %v233_v4, %v603_v6 }
 0x136   :  { %250 = vst [vmem:[#allocation2 + $0x70] sm:$0xff] %v184_v1  ;;  %266 = vst [vmem:[#allocation2 + $0xf0] sm:$0xff] %v232_v2 }
 0x137   :  { %251 = vst [vmem:[#allocation2 + $0x78] sm:$0xff] %v186_v7  ;;  %267 = vst [vmem:[#allocation2 + $0xf8] sm:$0xff] %v234_v8 }
 0x138   :  { %410 = shalt.err (!%p407_p4)
}
 0x139   :  { %s411_s4 = scalar_lea.hbm %s652_s3, 4096 }
 0x13a   :  { %p412_p5 = scmp.ne.s32.totalorder %s652_s3, %s411_s4  ;;  %p415_p6 = scmp.lt.u32.totalorder %s411_s4, %s652_s3 }
 0x13c   :  { %p417_p7 = pnand %p415_p6, %p412_p5 }
 0x13e   :  { %420 = shalt.err (!%p417_p7)
}
 0x13f   :  { %s424_s8 = smov 256   ;;  %s425_s9 = smov 16  }
 0x140   :  { %279 = dma.vmem_to_hbm [thread:$0]  %s274_s2, 4096, %s652_s3, [#allocation3], %s424_s8, %s424_s8, %s425_s9  }
 0x141   :  { %421 = dma.done.wait [#allocation3], 4096  }
 0x142   :  { %422 = vsyncadd [#allocation3], 4294963200 }
 0x143   :  { %283 = vsyncpa [#allocation3], 1 }

// kernel: lm_forward.2
= control target key start
LH: loop header
LB: loop body
LE: loop exit
PB: predicated region body
PF: predicated region fallthrough
CT: control target
= control target key end

     0   :  { %s5828_s0 = inlined_call_operand.vmem [shape: s32[128], index: 0, kind: input, shape index: {}]   ;;  %s5829_s1 = inlined_call_operand.hbm [shape: f32[2,128,512], index: 1, kind: input, shape index: {}]   ;;  %s5830_s2 = inlined_call_operand.hbm [shape: f32[2,128,512], index: 2, kind: input, shape index: {}]   ;;  %s5831_s3 = inlined_call_operand.hbm [shape: f32[2,1,512], index: 3, kind: input, shape index: {}]   ;;  %s5832_s4 = inlined_call_operand.vmem [shape: f32[2,16,128], index: 4, kind: input, shape index: {}]   ;;  %s5833_s5 = inlined_call_operand.hbm [shape: f32[2,16,128], index: 5, kind: input, shape index: {}]   ;;  %s5834_s6 = inlined_call_operand.hbm [shape: f32[256,1,128], index: 6, kind: input, shape index: {}]   ;;  %s5835_s7 = inlined_call_operand.vmem [shape: f32[128,128], index: 7, kind: output, shape index: {0}]   ;;  %s5836_s8 = inlined_call_operand.hbm [shape: f32[2,16,128], index: 8, kind: output, shape index: {1}]   ;;  %s5837_s9 = inlined_call_operand.hbm [shape: f32[2,16,128], index: 9, kind: output, shape index: {2}]  }
   0x1   :  { %5856 = sst [smem:[#allocation38_spill]] %s5829_s1  ;;  %s15_s11 = sshll.u32 %s5828_s0, 4  ;;  %s16_s11 = int_to_ptr.vmem [resolvable:$true] %s15_s11 }
   0x2   :  { %5857 = sst [smem:[#allocation39_spill]] %s5830_s2  ;;  %s4282_s12 = scalar_lea.vmem %s16_s11, 16 }
   0x3   :  { %5858 = sst [smem:[#allocation40_spill]] %s5831_s3  ;;  %p4283_p0 = scmp.ne.s32.totalorder %s16_s11, %s4282_s12 }
   0x4   :  { %5859 = sst [smem:[#allocation41_spill]] %s5832_s4  ;;  %p4287_p1 = scmp.lt.s32.totalorder %s16_s11, %s16_s11 }
   0x5   :  { %5860 = sst [smem:[#allocation42_spill]] %s5833_s5  ;;  %p4288_p2 = scmp.lt.s32.totalorder %s4282_s12, %s4282_s12 }
   0x6   :  { %5861 = sst [smem:[#allocation43_spill]] %s5836_s8 }
   0x7   :  { %p4289_p3 = por %p4288_p2, %p4287_p1 }
   0x9   :  { %p4290_p4 = pnand %p4289_p3, %p4283_p0 }
   0xb   :  { %4293 = shalt.err (!%p4290_p4)  }
   0xc   :  { %s4600_s13 = smov [#allocation5]  }
   0xd   :  { %18 = dma.vmem_to_smem %s16_s11, 16, %s4600_s13, [#allocation4] }
   0xe   :  { %4546 = dma.done.wait [#allocation4], 16 }
   0xf   :  { %4547 = vsyncadd [#allocation4], 4294967280 }
  0x10   :  { %20 = sfence }
  0x11   :  { %21 = vsyncpa [#allocation7], 0 }
  0x12   :  { %23 = vsyncpa [#allocation7 + $0x1], 0 }
  0x13   :  { %24 = vsyncpa [#allocation10], 0 }
  0x14   :  { %26 = vsyncpa [#allocation10 + $0x1], 0 }
  0x15   :  { %27 = vsyncpa [#allocation13], 0 }
  0x16   :  { %29 = vsyncpa [#allocation13 + $0x1], 0 }
  0x17   :  { %30 = vsyncpa [#allocation8], 0 }
  0x18   :  { %32 = vsyncpa [#allocation8 + $0x1], 0 }
  0x19   :  { %33 = vsyncpa [#allocation16], 0 }
  0x1a   :  { %35 = vsyncpa [#allocation16 + $0x1], 0  ;;  %s4667_s0 = smov 0   ;;  %s4669_s14 = smov 0  }
  0x1b   :  { %s4671_s15 = smov 0   ;;  %s4673_s16 = smov 0  }
  0x1c LB: > { %5862 = sst [smem:[#allocation31_spill]] %s4574_s0  ;;  %s4688_s17 = sadd.s32 4294967295, %s4586_s16   ;;  %s4586_s16 = sphi %s4673_s16, %s5900_s16   ;;  %s4582_s15 = sphi %s4671_s15, %s5903_s15   ;;  %s4578_s14 = sphi %s4669_s14, %s5902_s14   ;;  %s4574_s0 = sphi %s4667_s0, %s5901_s0  }
  0x1d   : > { %5863 = sst [smem:[#allocation32_spill]] %s4578_s14  ;;  %s3119_s18 = sadd.s32 4294967294, %s4586_s16  }
  0x1e   : > { %5864 = sst [smem:[#allocation33_spill]] %s4582_s15  ;;  %s4692_s19 = sadd.s32 1, %s4586_s16  }
  0x1f   : > { %5865 = sst [smem:[#allocation34_spill]] %s4586_s16  ;;  %s48_s20 = sadd.s32 1, %s4582_s15 }
  0x20   : > { %5866 = sst [smem:[#allocation35_spill]] %s4692_s19  ;;  %s45_s21 = ssub.s32 %s4586_s16, %s4692_s19 }
  0x21   : > { %p55_p5 = scmp.ne.s32.totalorder %s4582_s15, %s4578_s14  ;;  %p46_p6 = scmp.eq.s32.totalorder %s45_s21, 0 }
  0x22   : > { %p56_p7 = scmp.eq.s32.totalorder %s4586_s16, 0  ;;  %p61_p8 = scmp.ne.s32.totalorder %s4578_s14, %s4574_s0 }
  0x23   : > { %p62_p9 = scmp.eq.s32.totalorder %s4688_s17, 0  ;;  %p210_p12 = scmp.eq.s32.totalorder %s4688_s17, 1 }
  0x24   : > { %s4704_s22 = scalar_select %p46_p6, %s4582_s15, %s48_s20  }
  0x25   : > { %p57_p10 = por %p56_p7, %p55_p5  ;;  %p4706_p11 = por %p62_p9, %p61_p8 }
  0x26   : > { %5867 = sst [smem:[#allocation36_spill]] %s4704_s22  ;;  %p216_p13 = scmp.eq.s32.totalorder %s3119_s18, 1 }
  0x27   : > { %s5868_s23 = scalar_select %p4706_p11, 1, 0 }
  0x28   : > { %p3960_p1 = scmp.lt.s32.totalorder %s4586_s16, 2  ;;  %p4713_p2 = por %p210_p12, %p55_p5 }
  0x29   : > { %p4717_p3 = por %p216_p13, %p61_p8  ;;  %s4722_s26 = sand.u32 1, %s4582_s15  }
  0x2a   : > { %s5869_s24 = scalar_select %p4713_p2, 1, 0 }
  0x2b   : > { %s5870_s25 = scalar_select %p4717_p3, 1, 0 }
  0x2c   : > { %s5839_s27 = sshll.u32 %s4586_s16, 13  ;;  %s5838_s28 = sshll.u32 %s4722_s26, 9 }
  0x2d   : > { %5871 = sst [smem:[#allocation37_spill]] %s5870_s25  ;;  %p4726_p4 = pnand %p3960_p1, %p57_p10 }
  0x2e   : > { %s283_s30 = sand.u32 1, %s4586_s16   ;;  %s5873_s2 = sld [smem:[#allocation39_spill]] }
  0x2f   : > { %s5872_s29 = scalar_select %p4726_p4, 1, 0 }
  0x30   : > { %s287_s13 = scalar_lea.vmem [#allocation9], %s5838_s28  ;;  %s4743_s20 = scalar_lea.sflag [#allocation10], %s283_s30 }
  0x31   : > { %s294_s18 = sshll.u32 %s287_s13, 4  ;;  %p4749_p7 = pneg %p4726_p4  ;;  %s4740_s18 = int_to_ptr.vmem [resolvable:$true] %s294_s18 }
  0x34   : > { %s4736_s12 = scalar_lea.hbm %s5873_s2, %s5839_s27  ;;  %s4299_s13 = scalar_lea.hbm %s5873_s2, 16384 }
  0x35   : > { %s4294_s21 = scalar_lea.hbm %s4736_s12, 8192  ;;  %p4300_p10 = scmp.lt.u32.totalorder %s4736_s12, %s5873_s2 }
  0x36   : > { %p4295_p6 = scmp.ne.s32.totalorder %s4736_s12, %s4294_s21  ;;  %p4301_p12 = scmp.lt.u32.totalorder %s4299_s13, %s4294_s21 }
  0x37   : > { %p4303_p1 = scmp.lt.u32.totalorder %s4294_s21, %s4736_s12 }
  0x38   : > { %p4297_p8 = pnand %p4749_p7, %p4295_p6  ;;  %p4302_p13 = por %p4301_p12, %p4300_p10 }
  0x3a   : > { %p4298_p9 = pneg %p4297_p8  ;;  %p4304_p0 = por %p4303_p1, %p4302_p13 }
  0x3c   : > { %p4305_p5 = pnand %p4304_p0, %p4298_p9 }
  0x3e   : > { %4308 = shalt.err (!%p4305_p5)
}
  0x3f   : > { %s4309_s30 = scalar_lea.vmem %s4740_s18, 8192  ;;  %s4601_s10 = smov [#allocation9]  }
  0x40   : > { %p4310_p6 = scmp.ne.s32.totalorder %s4740_s18, %s4309_s30  ;;  %s4314_s11 = sshll.u32 %s4601_s10, 4  ;;  %s4315_s11 = int_to_ptr.vmem [resolvable:$false] %s4314_s11 }
  0x41   : > { %s4316_s27 = scalar_lea.vmem %s4315_s11, 16384  ;;  %p4317_p2 = scmp.lt.s32.totalorder %s4740_s18, %s4315_s11 }
  0x42   : > { %p4312_p8 = pnand %p4310_p6, %p4749_p7  ;;  %p4318_p11 = scmp.lt.s32.totalorder %s4316_s27, %s4309_s30 }
  0x44   : > { %p4313_p3 = pneg %p4312_p8  ;;  %p4319_p10 = por %p4318_p11, %p4317_p2 }
  0x46   : > { %p4320_p12 = pnand %p4319_p10, %p4313_p3 }
  0x48   : > { %4323 = shalt.err (!%p4320_p12)
}
  0x49   : > { %s5845_s28 = smov 512   ;;  %s5846_s21 = smov 32  }
  0x4a   : > { %3946 = dma.hbm_to_vmem [thread:$0]  (!%p4726_p4), %s4736_s12, 8192, %s4740_s18, %s4743_s20, %s5845_s28, %s5845_s28, %s5846_s21  }
  0x4b   : > { %p350_p11 = scmp.lt.s32.totalorder %s4586_s16, 3  ;;  %s5875_s13 = sshll.u32 %s4586_s16, 13 }
  0x4c   : > { %s5876_s1 = sld [smem:[#allocation38_spill]]  ;;  %p5877_p0 = scmp.ge.s32.totalorder %s4586_s16, 1 }
  0x4d   : > { %s5879_s2 = sshll.u32 %s4722_s26, 9  ;;  %s3128_s12 = sshll.u32 %s4722_s26, 2 }
  0x4e   : > { %p4786_p2 = pnand %p5877_p0, %p350_p11  ;;  %s266_s15 = scalar_lea.vmem [#allocation6], %s5879_s2 }
  0x4f   : > { %s273_s19 = sshll.u32 %s266_s15, 4  ;;  %s263_s18 = scalar_lea.sflag [#allocation7], %s4722_s26  ;;  %s4792_s19 = int_to_ptr.vmem [resolvable:$true] %s273_s19 }
  0x50   : > { %s5878_s27 = scalar_select %p4786_p2, 1, 0 }
  0x52   : > { %s4782_s11 = scalar_lea.hbm %s5876_s1, %s5875_s13  ;;  %s4329_s10 = scalar_lea.hbm %s5876_s1, 16384 }
  0x53   : > { %s4324_s28 = scalar_lea.hbm %s4782_s11, 8192  ;;  %p4330_p13 = scmp.lt.u32.totalorder %s4782_s11, %s5876_s1 }
  0x54   : > { %p4325_p3 = scmp.ne.s32.totalorder %s4782_s11, %s4324_s28  ;;  %p4331_p1 = scmp.lt.u32.totalorder %s4329_s10, %s4324_s28 }
  0x55   : > { %p4333_p8 = scmp.lt.u32.totalorder %s4324_s28, %s4782_s11 }
  0x56   : > { %p4327_p5 = pnand %p4325_p3, %p4749_p7  ;;  %p4332_p6 = por %p4331_p1, %p4330_p13 }
  0x58   : > { %p4328_p9 = pneg %p4327_p5  ;;  %p4334_p10 = por %p4333_p8, %p4332_p6 }
  0x5a   : > { %p4335_p12 = pnand %p4334_p10, %p4328_p9 }
  0x5c   : > { %4338 = shalt.err (!%p4335_p12)
}
  0x5d   : > { %s4339_s2 = scalar_lea.vmem %s4792_s19, 8192  ;;  %s4604_s15 = smov [#allocation6]  }
  0x5e   : > { %p4340_p11 = scmp.ne.s32.totalorder %s4792_s19, %s4339_s2  ;;  %s4344_s13 = sshll.u32 %s4604_s15, 4  ;;  %s4345_s13 = int_to_ptr.vmem [resolvable:$false] %s4344_s13 }
  0x5f   : > { %s4346_s25 = scalar_lea.vmem %s4345_s13, 16384  ;;  %p4347_p5 = scmp.lt.s32.totalorder %s4792_s19, %s4345_s13 }
  0x60   : > { %p4342_p0 = pnand %p4340_p11, %p4749_p7  ;;  %p4348_p2 = scmp.lt.s32.totalorder %s4346_s25, %s4339_s2 }
  0x62   : > { %p4343_p3 = pneg %p4342_p0  ;;  %p4349_p13 = por %p4348_p2, %p4347_p5 }
  0x64   : > { %p4350_p1 = pnand %p4349_p13, %p4343_p3 }
  0x66   : > { %4353 = shalt.err (!%p4350_p1)
}
  0x67   : > { %s5880_s28 = smov 32   ;;  %s5881_s21 = smov 512  }
  0x68   : > { %3943 = dma.hbm_to_vmem [thread:$0]  (!%p4726_p4), %s4782_s11, 8192, %s4792_s19, %s263_s18, %s5881_s21, %s5881_s21, %s5880_s28  }
  0x69   : > { %s3219_s30 = sshll.u32 %s4586_s16, 6  ;;  %s5882_s3 = sld [smem:[#allocation40_spill]] }
  0x6a   : > { %s308_s13 = scalar_lea.vmem [#allocation11], %s3128_s12 }
  0x6b   : > { %s316_s25 = sshll.u32 %s308_s13, 4  ;;  %s317_s25 = int_to_ptr.vmem [resolvable:$true] %s316_s25 }
  0x6f   : > { %s4826_s2 = scalar_lea.hbm %s5882_s3, %s3219_s30  ;;  %s4359_s18 = scalar_lea.hbm %s5882_s3, 128 }
  0x70   : > { %s4354_s1 = scalar_lea.hbm %s4826_s2, 64  ;;  %p4360_p8 = scmp.lt.u32.totalorder %s4826_s2, %s5882_s3 }
  0x71   : > { %p4355_p2 = scmp.ne.s32.totalorder %s4826_s2, %s4354_s1  ;;  %p4361_p10 = scmp.lt.u32.totalorder %s4359_s18, %s4354_s1 }
  0x72   : > { %p4363_p11 = scmp.lt.u32.totalorder %s4354_s1, %s4826_s2 }
  0x73   : > { %p4357_p9 = pnand %p4355_p2, %p4749_p7  ;;  %p4362_p12 = por %p4361_p10, %p4360_p8 }
  0x75   : > { %p4358_p6 = pneg %p4357_p9  ;;  %p4364_p0 = por %p4363_p11, %p4362_p12 }
  0x77   : > { %p4365_p3 = pnand %p4364_p0, %p4358_p6 }
  0x79   : > { %4368 = shalt.err (!%p4365_p3)
}
  0x7a   : > { %s4369_s12 = scalar_lea.vmem %s317_s25, 64  ;;  %s4605_s30 = smov [#allocation11]  }
  0x7b   : > { %p4370_p5 = scmp.ne.s32.totalorder %s317_s25, %s4369_s12  ;;  %s4374_s10 = sshll.u32 %s4605_s30, 4  ;;  %s4375_s10 = int_to_ptr.vmem [resolvable:$false] %s4374_s10 }
  0x7c   : > { %s4376_s15 = scalar_lea.vmem %s4375_s10, 128  ;;  %p4377_p2 = scmp.lt.s32.totalorder %s317_s25, %s4375_s10 }
  0x7d   : > { %p4372_p13 = pnand %p4370_p5, %p4749_p7  ;;  %p4378_p9 = scmp.lt.s32.totalorder %s4376_s15, %s4369_s12 }
  0x7f   : > { %p4373_p1 = pneg %p4372_p13  ;;  %p4379_p4 = por %p4378_p9, %p4377_p2 }
  0x81   : > { %p4380_p8 = pnand %p4379_p4, %p4373_p1 }
  0x83   : > { %4383 = shalt.err (!%p4380_p8)
}
  0x84   : > { %p5883_p10 = scmp.ne.s32.totalorder %s5872_s29, 0  ;;  %s3131_s1 = sshll.u32 %s4722_s26, 4 }
  0x85   : > { %s3220_s13 = sshll.u32 %s4586_s16, 8  ;;  %s5884_s5 = sld [smem:[#allocation42_spill]] }
  0x86   : > { %3949 = dma.hbm_to_vmem [thread:$0]  (!%p5883_p10), %s4826_s2, 64, %s317_s25, %s4743_s20  }
  0x87   : > { %s335_s28 = scalar_lea.vmem [#allocation12], %s3131_s1  ;;  %s332_s12 = scalar_lea.sflag [#allocation13], %s4722_s26 }
  0x88   : > { %s342_s21 = sshll.u32 %s335_s28, 4  ;;  %s4855_s21 = int_to_ptr.vmem [resolvable:$true] %s342_s21 }
  0x8b   : > { %s4853_s18 = scalar_lea.hbm %s5884_s5, %s3220_s13  ;;  %s4389_s25 = scalar_lea.hbm %s5884_s5, 512 }
  0x8c   : > { %s4384_s30 = scalar_lea.hbm %s4853_s18, 256  ;;  %p4390_p11 = scmp.lt.u32.totalorder %s4853_s18, %s5884_s5 }
  0x8d   : > { %p4385_p4 = scmp.ne.s32.totalorder %s4853_s18, %s4384_s30  ;;  %p4391_p0 = scmp.lt.u32.totalorder %s4389_s25, %s4384_s30 }
  0x8e   : > { %p4393_p5 = scmp.lt.u32.totalorder %s4384_s30, %s4853_s18 }
  0x8f   : > { %p4387_p6 = pnand %p4385_p4, %p4749_p7  ;;  %p4392_p3 = por %p4391_p0, %p4390_p11 }
  0x91   : > { %p4388_p12 = pneg %p4387_p6  ;;  %p4394_p13 = por %p4393_p5, %p4392_p3 }
  0x93   : > { %p4395_p1 = pnand %p4394_p13, %p4388_p12 }
  0x95   : > { %4398 = shalt.err (!%p4395_p1)
}
  0x96   : > { %s4399_s1 = scalar_lea.vmem %s4855_s21, 256  ;;  %s4606_s13 = smov [#allocation12]  }
  0x97   : > { %p4400_p2 = scmp.ne.s32.totalorder %s4855_s21, %s4399_s1  ;;  %s4404_s19 = sshll.u32 %s4606_s13, 4  ;;  %s4405_s19 = int_to_ptr.vmem [resolvable:$false] %s4404_s19 }
  0x98   : > { %s4406_s11 = scalar_lea.vmem %s4405_s19, 512  ;;  %p4407_p4 = scmp.lt.s32.totalorder %s4855_s21, %s4405_s19 }
  0x99   : > { %p4402_p9 = pnand %p4400_p2, %p4749_p7  ;;  %p4408_p6 = scmp.lt.s32.totalorder %s4406_s11, %s4399_s1 }
  0x9b   : > { %p4403_p8 = pneg %p4402_p9  ;;  %p4409_p11 = por %p4408_p6, %p4407_p4 }
  0x9d   : > { %p4410_p0 = pnand %p4409_p11, %p4403_p8 }
  0x9f   : > { %4413 = shalt.err (!%p4410_p0)
}
  0xa0   : > { %s4607_s28 = smov 128   ;;  %s4608_s30 = smov 8  }
  0xa1   : > { %3952 = dma.hbm_to_vmem [thread:$0]  (!%p5883_p10), %s4853_s18, 256, %s4855_s21, %s332_s12, %s4607_s28, %s4607_s28, %s4608_s30  }
  0xa2   : > { %p5885_p7 = scmp.ne.s32.totalorder %s5878_s27, 0 }
  0xa3   : > { %s4884_s22 = sand.u32 (!%p5885_p7), 1, %s4578_s14   ;;  %p5886_p12 = scmp.ne.s32.totalorder (!%p5885_p7), %s5868_s23, 0 }
  0xa4   : > { %354 = sbr.rel (%p5885_p7) target bundleno = 2483 (0x9b3), region = 40  ;;  %s3135_s20 = sshll.u32 (!%p5885_p7), %s4884_s22, 9 }
  0xa5   : > { %s357_s2 = scalar_lea.sflag (!%p5885_p7), [#allocation7], %s4884_s22  ;;  %s4888_s25 = scalar_lea.vmem (!%p5885_p7), [#allocation6], %s3135_s20 }
  0xab   : > { %4549 = dma.done.wait (%p5886_p12), %s357_s2, 8192  }
  0xac   : > { %4551 = vsyncadd (%p5886_p12), %s357_s2, 4294959104  ;;  %s365_s26 = sand.u32 1, %s4688_s17   ;;  %s4895_s27 = scalar_lea.vmem [#allocation9], %s3135_s20 }
  0xad   : > { %s366_s29 = scalar_lea.sflag [#allocation10], %s365_s26 }
  0xae   : > { %4553 = dma.done.wait (%p5886_p12), %s366_s29, 8256  }
  0xaf   : > { %4555 = vsyncadd (%p5886_p12), %s366_s29, 4294959040  ;;  %s3137_s18 = sshll.u32 %s4884_s22, 2  ;;  %s4903_s21 = sshll.u32 %s4884_s22, 4 }
  0xb0   : > { %s4905_s12 = scalar_lea.vmem [#allocation11], %s3137_s18  ;;  %s384_s10 = scalar_lea.sflag [#allocation13], %s4884_s22 }
  0xb1   : > { %4557 = dma.done.wait (%p5886_p12), %s384_s10, 256  }
  0xb2   : > { %4559 = vsyncadd (%p5886_p12), %s384_s10, 4294967040  ;;  %p443_p10 = scmp.lt.s32.totalorder %s4688_s17, 1  ;;  %s5887_s4 = sld [smem:[#allocation41_spill]] }
  0xb3   : > { %s4921_s30 = scalar_lea.vmem [#allocation14], %s4903_s21  ;;  %s4924_s20 = scalar_lea.vmem [#allocation15], %s4903_s21 }
  0xb4   : > { %s444_s1 = scalar_select %p443_p10, %s4688_s17, 1 }
  0xb5   : > { %p3143_p3 = scmp.ne.s32.totalorder %s4688_s17, 0 }
  0xb6   : > { %s3221_s13 = sshll.u32 %s444_s1, 4  ;;  %s4927_s23 = smov (!%p3143_p3), 0  }
  0xb7   : > { %451 = sbr.rel (%p3143_p3) target bundleno = 279 (0x117), region = 60 }
  0xb8   : > { %s4918_s28 = scalar_lea.vmem %s5887_s4, %s3221_s13 }
  0xbe LB: >> { %s458_s2 = sld [smem:[#allocation5 + %s4590_s23]]  ;;  %s461_s18 = scalar_lea.vmem %s5835_s7, %s4590_s23  ;;  %s4590_s23 = sphi %s4927_s23, %s457_s23  }
  0xbf   : >> { %s469_s10 = sshll.u32 %s461_s18, 4  ;;  %s5854_s5 = scalar_lea.hbm %s5834_s6, 4096  ;;  %s470_s10 = int_to_ptr.vmem [resolvable:$true] %s469_s10 }
  0xc4   : >> { %s3144_s1 = sshll.u32 %s458_s2, 4 }
  0xc5   : >> { %s460_s11 = scalar_lea.hbm %s5834_s6, %s3144_s1 }
  0xc6   : >> { %s4414_s15 = scalar_lea.hbm %s460_s11, 16  ;;  %p4417_p13 = scmp.lt.u32.totalorder %s460_s11, %s5834_s6 }
  0xc7   : >> { %p4415_p5 = scmp.ne.s32.totalorder %s460_s11, %s4414_s15  ;;  %p4418_p1 = scmp.lt.u32.totalorder %s5854_s5, %s4414_s15 }
  0xc8   : >> { %p4420_p9 = scmp.lt.u32.totalorder %s4414_s15, %s460_s11 }
  0xc9   : >> { %p4419_p2 = por %p4418_p1, %p4417_p13 }
  0xcb   : >> { %p4421_p8 = por %p4420_p9, %p4419_p2 }
  0xcd   : >> { %p4422_p4 = pnand %p4421_p8, %p4415_p5 }
  0xcf   : >> { %4425 = shalt.err (!%p4422_p4)  }
  0xd0   : >> { %s4426_s2 = scalar_lea.vmem %s470_s10, 16  ;;  %s4428_s3 = sshll.u32 %s5835_s7, 4  ;;  %s4953_s3 = int_to_ptr.vmem [resolvable:$false] %s4428_s3 }
  0xd1   : >> { %p4427_p6 = scmp.ne.s32.totalorder %s470_s10, %s4426_s2  ;;  %s5853_s4 = scalar_lea.vmem %s4953_s3, 2048 }
  0xd2   : >> { %p4431_p11 = scmp.lt.s32.totalorder %s470_s10, %s4953_s3  ;;  %p4432_p0 = scmp.lt.s32.totalorder %s5853_s4, %s4426_s2 }
  0xd4   : >> { %p4433_p7 = por %p4432_p0, %p4431_p11 }
  0xd6   : >> { %p4434_p12 = pnand %p4433_p7, %p4427_p6 }
  0xd8   : >> { %4437 = shalt.err (!%p4434_p12)  }
  0xd9   : >> { %472 = dma.hbm_to_vmem [thread:$0]  %s460_s11, 16, %s470_s10, [#allocation3] }
  0xda   : >> { %s457_s23 = sadd.s32 1, %s4590_s23  }
  0xdb   : >> { %p454_p10 = scmp.ge.s32.totalorder %s457_s23, 16  }
  0xdc   : > { %s4962_s0 = smov (%p454_p10), 0  }
  0xdd   : > { %456 = sbr.rel (!%p454_p10) target bundleno = 190 (0xbe), region = 202 }
  0xe4 LB: >> { %s479_s14 = sadd.s32 16, %s4594_s0  ;;  %s3013_s10 = scalar_lea.vmem %s5835_s7, %s4594_s0  ;;  %s4594_s0 = sphi %s4962_s0, %s478_s0  }
  0xe5   : >> { %s480_s1 = sld [smem:[#allocation5 + %s479_s14]]  ;;  %s3014_s13 = scalar_lea.vmem %s3013_s10, 16 }
  0xe6   : >> { %s491_s19 = sshll.u32 %s3014_s13, 4  ;;  %s5888_s16 = scalar_lea.hbm %s5834_s6, 4096  ;;  %s492_s19 = int_to_ptr.vmem [resolvable:$true] %s491_s19 }
  0xeb   : >> { %s3145_s23 = sshll.u32 %s480_s1, 4 }
  0xec   : >> { %s482_s2 = scalar_lea.hbm %s5834_s6, %s3145_s23 }
  0xed   : >> { %s4438_s29 = scalar_lea.hbm %s482_s2, 16  ;;  %p4441_p5 = scmp.lt.u32.totalorder %s482_s2, %s5834_s6 }
  0xee   : >> { %p4439_p3 = scmp.ne.s32.totalorder %s482_s2, %s4438_s29  ;;  %p4442_p13 = scmp.lt.u32.totalorder %s5888_s16, %s4438_s29 }
  0xef   : >> { %p4444_p2 = scmp.lt.u32.totalorder %s4438_s29, %s482_s2 }
  0xf0   : >> { %p4443_p1 = por %p4442_p13, %p4441_p5 }
  0xf2   : >> { %p4445_p9 = por %p4444_p2, %p4443_p1 }
  0xf4   : >> { %p4446_p8 = pnand %p4445_p9, %p4439_p3 }
  0xf6   : >> { %4449 = shalt.err (!%p4446_p8)  }
  0xf7   : >> { %s4450_s14 = scalar_lea.vmem %s492_s19, 16  ;;  %p4455_p6 = scmp.lt.s32.totalorder %s492_s19, %s4953_s3 }
  0xf8   : >> { %p4451_p4 = scmp.ne.s32.totalorder %s492_s19, %s4450_s14  ;;  %s5889_s15 = scalar_lea.vmem %s4953_s3, 2048 }
  0xf9   : >> { %p4456_p11 = scmp.lt.s32.totalorder %s5889_s15, %s4450_s14 }
  0xfb   : >> { %p4457_p0 = por %p4456_p11, %p4455_p6 }
  0xfd   : >> { %p4458_p7 = pnand %p4457_p0, %p4451_p4 }
  0xff   : >> { %4461 = shalt.err (!%p4458_p7)  }
 0x100   : >> { %494 = dma.hbm_to_vmem [thread:$0]  %s482_s2, 16, %s492_s19, [#allocation3] }
 0x101   : >> { %4560 = dma.done.wait [#allocation3], 16 }
 0x102   : >> { %4561 = vsyncadd [#allocation3], 4294967280  ;;  %s478_s0 = sadd.s32 1, %s4594_s0  }
 0x103   : >> { %p475_p12 = scmp.ge.s32.totalorder %s478_s0, 112  }
 0x104   : > { %s4596_s5 = smov (%p475_p12), 112  }
 0x105   : > { %477 = sbr.rel (!%p475_p12) target bundleno = 228 (0xe4), region = 213 }
 0x10c LB: >> { %4562 = dma.done.wait [#allocation3], 16  ;;  %s4598_s5 = sphi %s4596_s5, %s504_s5  }
 0x10d   : >> { %4563 = vsyncadd [#allocation3], 4294967280  ;;  %s504_s5 = sadd.s32 1, %s4598_s5  }
 0x10e   : >> { %p501_p10 = scmp.ge.s32.totalorder %s504_s5, 128  }
 0x110   : > { %503 = sbr.rel (!%p501_p10) target bundleno = 268 (0x10c), region = 224 }
 0x117 PF: > { %v510_v0 = vld [vmem:[%s4888_s25 + $0x8] sm:$0xff]  ;;  %v512_v2 = vld [vmem:[%s4888_s25 + $0x18] sm:$0xff]  ;;  %v509_v5 = vld [vmem:[%s4888_s25] sm:$0xff]  ;;  %v4609_v7 = vmov 0.0   ;;  %s2898_s14 = sshll.u32 %s4924_s20, 4  ;;  %p5892_p5 = scmp.ne.s32.totalorder %s5869_s24, 0  ;;  %s5735_s14 = int_to_ptr.vmem [resolvable:$true] %s2898_s14 }
 0x118   : > { %v514_v1 = vld [vmem:[%s4888_s25 + $0x28] sm:$0xff]  ;;  %v516_v4 = vld [vmem:[%s4888_s25 + $0x38] sm:$0xff]  ;;  %v513_v6 = vld [vmem:[%s4888_s25 + $0x20] sm:$0xff]  ;;  %739 = vmatprep.mubr.f32.mxu0 %v4609_v7  ;;  %900 = vmatprep.mubr.f32.mxu1 %v4609_v7  ;;  %s4462_s3 = scalar_lea.vmem %s5735_s14, 256  ;;  %s4610_s4 = smov [#allocation15]  }
 0x119   : > { %v3224_v3 = vpack.c.bf16 %v514_v1, %v510_v0  ;;  %v3256_v8 = vpack.c.bf16 %v516_v4, %v512_v2  ;;  %v3226_v9 = vpack.c.bf16 %v513_v6, %v509_v5  ;;  %v511_v10 = vld [vmem:[%s4888_s25 + $0x10] sm:$0xff]  ;;  %v518_v12 = vld [vmem:[%s4888_s25 + $0x48] sm:$0xff]  ;;  %v520_v15 = vld [vmem:[%s4888_s25 + $0x58] sm:$0xff]  ;;  %p4463_p3 = scmp.ne.s32.totalorder %s5735_s14, %s4462_s3  ;;  %s4466_s0 = sshll.u32 %s4610_s4, 4  ;;  %s4467_s0 = int_to_ptr.vmem [resolvable:$false] %s4466_s0 }
 0x11a   : > { %v515_v11 = vld [vmem:[%s4888_s25 + $0x30] sm:$0xff]  ;;  %v522_v14 = vld [vmem:[%s4888_s25 + $0x68] sm:$0xff]  ;;  %v524_v16 = vld [vmem:[%s4888_s25 + $0x78] sm:$0xff]  ;;  %s4468_s10 = scalar_lea.vmem %s4467_s0, 512  ;;  %p4469_p2 = scmp.lt.s32.totalorder %s5735_s14, %s4467_s0 }
 0x11b   : > { %3225 = vmatprep.subr.bf16.mxu0 %v3224_v3  ;;  %v3258_v13 = vpack.c.bf16 %v515_v11, %v511_v10  ;;  %3257 = vmatprep.subr.bf16.mxu1 %v3256_v8  ;;  %v3228_v17 = vpack.c.bf16 %v522_v14, %v518_v12  ;;  %v3260_v18 = vpack.c.bf16 %v524_v16, %v520_v15  ;;  %v517_v19 = vld [vmem:[%s4888_s25 + $0x40] sm:$0xff]  ;;  %v519_v21 = vld [vmem:[%s4888_s25 + $0x50] sm:$0xff]  ;;  %v526_v24 = vld [vmem:[%s4888_s25 + $0x88] sm:$0xff]  ;;  %p4464_p13 = pnand %p4463_p3, %p5892_p5  ;;  %p4470_p9 = scmp.lt.s32.totalorder %s4468_s10, %s4462_s3 }
 0x11c   : > { %3227 = vmatpush1.bf16.msra.mxu0 %v3226_v9  ;;  %v521_v20 = vld [vmem:[%s4888_s25 + $0x60] sm:$0xff]  ;;  %v523_v23 = vld [vmem:[%s4888_s25 + $0x70] sm:$0xff]  ;;  %v530_v25 = vld [vmem:[%s4888_s25 + $0xa8] sm:$0xff] }
 0x11d   : > { %3259 = vmatpush1.bf16.msra.mxu1 %v3258_v13  ;;  %v3230_v22 = vpack.c.bf16 %v521_v20, %v517_v19  ;;  %3229 = vmatprep.subr.bf16.mxu0 %v3228_v17  ;;  %v3262_v26 = vpack.c.bf16 %v523_v23, %v519_v21  ;;  %v3232_v27 = vpack.c.bf16 %v530_v25, %v526_v24  ;;  %v528_v28 = vld [vmem:[%s4888_s25 + $0x98] sm:$0xff]  ;;  %v525_v30 = vld [vmem:[%s4888_s25 + $0x80] sm:$0xff]  ;;  %v527_v33 = vld [vmem:[%s4888_s25 + $0x90] sm:$0xff]  ;;  %p4465_p1 = pneg %p4464_p13  ;;  %p4471_p8 = por %p4470_p9, %p4469_p2 }
 0x11e   : > { %3261 = vmatprep.subr.bf16.mxu1 %v3260_v18  ;;  %v532_v29 = vld [vmem:[%s4888_s25 + $0xb8] sm:$0xff]  ;;  %v529_v32 = vld [vmem:[%s4888_s25 + $0xa0] sm:$0xff]  ;;  %v531_v34 = vld [vmem:[%s4888_s25 + $0xb0] sm:$0xff] }
 0x11f   : > { %v3264_v31 = vpack.c.bf16 %v532_v29, %v528_v28  ;;  %v3234_v35 = vpack.c.bf16 %v529_v32, %v525_v30  ;;  %v534_v36 = vld [vmem:[%s4888_s25 + $0xc8] sm:$0xff]  ;;  %v536_v38 = vld [vmem:[%s4888_s25 + $0xd8] sm:$0xff]  ;;  %v3266_v39 = vpack.c.bf16 %v531_v34, %v527_v33  ;;  %v533_v42 = vld [vmem:[%s4888_s25 + $0xc0] sm:$0xff]  ;;  %p4472_p4 = pnand %p4471_p8, %p4465_p1 }
 0x120   : > { %3231 = vmatpush1.bf16.msra.mxu0 %v3230_v22  ;;  %v538_v37 = vld [vmem:[%s4888_s25 + $0xe8] sm:$0xff]  ;;  %v540_v41 = vld [vmem:[%s4888_s25 + $0xf8] sm:$0xff]  ;;  %v537_v43 = vld [vmem:[%s4888_s25 + $0xe0] sm:$0xff] }
 0x121   : > { %3263 = vmatpush1.bf16.msra.mxu1 %v3262_v26  ;;  %3233 = vmatprep.subr.bf16.mxu0 %v3232_v27  ;;  %v3236_v40 = vpack.c.bf16 %v538_v37, %v534_v36  ;;  %v3268_v44 = vpack.c.bf16 %v540_v41, %v536_v38  ;;  %v535_v45 = vld [vmem:[%s4888_s25 + $0xd0] sm:$0xff]  ;;  %v542_v47 = vld [vmem:[%s4888_s25 + $0x108] sm:$0xff]  ;;  %v544_v49 = vld [vmem:[%s4888_s25 + $0x118] sm:$0xff]  ;;  %v3238_v51 = vpack.c.bf16 %v537_v43, %v533_v42 }
 0x122   : > { %3265 = vmatprep.subr.bf16.mxu1 %v3264_v31  ;;  %v539_v46 = vld [vmem:[%s4888_s25 + $0xf0] sm:$0xff]  ;;  %v546_v48 = vld [vmem:[%s4888_s25 + $0x128] sm:$0xff]  ;;  %v548_v50 = vld [vmem:[%s4888_s25 + $0x138] sm:$0xff] }
 0x123   : > { %v3270_v52 = vpack.c.bf16 %v539_v46, %v535_v45  ;;  %v3240_v53 = vpack.c.bf16 %v546_v48, %v542_v47  ;;  %v541_v54 = vld [vmem:[%s4888_s25 + $0x100] sm:$0xff]  ;;  %v543_v56 = vld [vmem:[%s4888_s25 + $0x110] sm:$0xff]  ;;  %v3272_v57 = vpack.c.bf16 %v548_v50, %v544_v49  ;;  %v550_v59 = vld [vmem:[%s4888_s25 + $0x148] sm:$0xff] }
 0x124   : > { %3235 = vmatpush1.bf16.msra.mxu0 %v3234_v35  ;;  %v545_v55 = vld [vmem:[%s4888_s25 + $0x120] sm:$0xff]  ;;  %v547_v58 = vld [vmem:[%s4888_s25 + $0x130] sm:$0xff]  ;;  %v554_v60 = vld [vmem:[%s4888_s25 + $0x168] sm:$0xff] }
 0x125   : > { %3267 = vmatpush1.bf16.msra.mxu1 %v3266_v39  ;;  %3237 = vmatprep.subr.bf16.mxu0 %v3236_v40  ;;  %v552_v61 = vld [vmem:[%s4888_s25 + $0x158] sm:$0xff]  ;;  %v3242_v63 = vpack.c.bf16 %v545_v55, %v541_v54  ;;  %v3274_v0 = vpack.c.bf16 %v547_v58, %v543_v56  ;;  %v3244_v1 = vpack.c.bf16 %v554_v60, %v550_v59  ;;  %v549_v2 = vld [vmem:[%s4888_s25 + $0x140] sm:$0xff]  ;;  %v551_v4 = vld [vmem:[%s4888_s25 + $0x150] sm:$0xff] }
 0x126   : > { %3269 = vmatprep.subr.bf16.mxu1 %v3268_v44  ;;  %v556_v62 = vld [vmem:[%s4888_s25 + $0x178] sm:$0xff]  ;;  %v553_v3 = vld [vmem:[%s4888_s25 + $0x160] sm:$0xff]  ;;  %v555_v6 = vld [vmem:[%s4888_s25 + $0x170] sm:$0xff] }
 0x127   : > { %v3276_v5 = vpack.c.bf16 %v556_v62, %v552_v61  ;;  %v558_v8 = vld [vmem:[%s4888_s25 + $0x188] sm:$0xff]  ;;  %v560_v10 = vld [vmem:[%s4888_s25 + $0x198] sm:$0xff]  ;;  %v3246_v12 = vpack.c.bf16 %v553_v3, %v549_v2  ;;  %v3278_v13 = vpack.c.bf16 %v555_v6, %v551_v4  ;;  %v557_v15 = vld [vmem:[%s4888_s25 + $0x180] sm:$0xff] }
 0x128   : > { %3239 = vmatpush1.bf16.msra.mxu0 %v3238_v51  ;;  %v562_v9 = vld [vmem:[%s4888_s25 + $0x1a8] sm:$0xff]  ;;  %v564_v11 = vld [vmem:[%s4888_s25 + $0x1b8] sm:$0xff]  ;;  %v561_v16 = vld [vmem:[%s4888_s25 + $0x1a0] sm:$0xff] }
 0x129   : > { %3271 = vmatpush1.bf16.msra.mxu1 %v3270_v52  ;;  %3241 = vmatprep.subr.bf16.mxu0 %v3240_v53  ;;  %v3248_v14 = vpack.c.bf16 %v562_v9, %v558_v8  ;;  %v559_v17 = vld [vmem:[%s4888_s25 + $0x190] sm:$0xff]  ;;  %v3280_v18 = vpack.c.bf16 %v564_v11, %v560_v10  ;;  %v566_v20 = vld [vmem:[%s4888_s25 + $0x1c8] sm:$0xff]  ;;  %v568_v22 = vld [vmem:[%s4888_s25 + $0x1d8] sm:$0xff]  ;;  %v3250_v24 = vpack.c.bf16 %v561_v16, %v557_v15 }
 0x12a   : > { %3273 = vmatprep.subr.bf16.mxu1 %v3272_v57  ;;  %v563_v19 = vld [vmem:[%s4888_s25 + $0x1b0] sm:$0xff]  ;;  %v570_v21 = vld [vmem:[%s4888_s25 + $0x1e8] sm:$0xff]  ;;  %v572_v23 = vld [vmem:[%s4888_s25 + $0x1f8] sm:$0xff] }
 0x12b   : > { %v3282_v25 = vpack.c.bf16 %v563_v19, %v559_v17  ;;  %v3252_v26 = vpack.c.bf16 %v570_v21, %v566_v20  ;;  %v565_v27 = vld [vmem:[%s4888_s25 + $0x1c0] sm:$0xff]  ;;  %v567_v29 = vld [vmem:[%s4888_s25 + $0x1d0] sm:$0xff]  ;;  %v3284_v30 = vpack.c.bf16 %v572_v23, %v568_v22  ;;  %v574_v32 = vld [vmem:[%s4895_s27 + $0x8] sm:$0xff] }
 0x12c   : > { %3243 = vmatpush1.bf16.msra.mxu0 %v3242_v63  ;;  %v569_v28 = vld [vmem:[%s4888_s25 + $0x1e0] sm:$0xff]  ;;  %v571_v31 = vld [vmem:[%s4888_s25 + $0x1f0] sm:$0xff]  ;;  %v578_v33 = vld [vmem:[%s4895_s27 + $0x28] sm:$0xff]  ;;  %s2866_s25 = scalar_lea.sflag [#allocation16], %s4884_s22 }
 0x12d   : > { %3275 = vmatpush1.bf16.msra.mxu1 %v3274_v0  ;;  %3245 = vmatprep.subr.bf16.mxu0 %v3244_v1  ;;  %v576_v34 = vld [vmem:[%s4895_s27 + $0x18] sm:$0xff]  ;;  %v3254_v36 = vpack.c.bf16 %v569_v28, %v565_v27  ;;  %v3286_v37 = vpack.c.bf16 %v571_v31, %v567_v29  ;;  %v5058_v38 = vpack.c.bf16 %v578_v33, %v574_v32  ;;  %v573_v39 = vld [vmem:[%s4895_s27] sm:$0xff]  ;;  %v582_v41 = vld [vmem:[%s4895_s27 + $0x48] sm:$0xff] }
 0x12e   : > { %3277 = vmatprep.subr.bf16.mxu1 %v3276_v5  ;;  %v580_v35 = vld [vmem:[%s4895_s27 + $0x38] sm:$0xff]  ;;  %v577_v40 = vld [vmem:[%s4895_s27 + $0x20] sm:$0xff]  ;;  %v586_v43 = vld [vmem:[%s4895_s27 + $0x68] sm:$0xff] }
 0x12f   : > { %v5063_v42 = vpack.c.bf16 %v580_v35, %v576_v34  ;;  %v575_v44 = vld [vmem:[%s4895_s27 + $0x10] sm:$0xff]  ;;  %v638_v46 = vld [vmem:[%s5835_s7] sm:$0xff]  ;;  %v5071_v47 = vpack.c.bf16 %v577_v40, %v573_v39  ;;  %v584_v48 = vld [vmem:[%s4895_s27 + $0x58] sm:$0xff]  ;;  %v5076_v50 = vpack.c.bf16 %v586_v43, %v582_v41 }
 0x130   : > { %3247 = vmatpush1.bf16.msra.mxu0 %v3246_v12  ;;  %v579_v45 = vld [vmem:[%s4895_s27 + $0x30] sm:$0xff]  ;;  %v588_v49 = vld [vmem:[%s4895_s27 + $0x78] sm:$0xff]  ;;  %v581_v51 = vld [vmem:[%s4895_s27 + $0x40] sm:$0xff] }
 0x131   : > { %3279 = vmatpush1.bf16.msra.mxu1 %v3278_v13  ;;  %3249 = vmatprep.subr.bf16.mxu0 %v3248_v14  ;;  %v585_v52 = vld [vmem:[%s4895_s27 + $0x60] sm:$0xff]  ;;  %v590_v53 = vld [vmem:[%s4895_s27 + $0x88] sm:$0xff]  ;;  %v5082_v54 = vpack.c.bf16 %v579_v45, %v575_v44  ;;  %v5085_v56 = vpack.c.bf16 %v588_v49, %v584_v48  ;;  %v583_v57 = vld [vmem:[%s4895_s27 + $0x50] sm:$0xff] }
 0x132   : > { %3281 = vmatprep.subr.bf16.mxu1 %v3280_v18  ;;  %v594_v55 = vld [vmem:[%s4895_s27 + $0xa8] sm:$0xff]  ;;  %v587_v58 = vld [vmem:[%s4895_s27 + $0x70] sm:$0xff]  ;;  %v592_v60 = vld [vmem:[%s4895_s27 + $0x98] sm:$0xff]  ;;  %v5097_v62 = vpack.c.bf16 %v585_v52, %v581_v51 }
 0x133   : > { %v639_v59 = vld [vmem:[%s5835_s7 + $0x8] sm:$0xff]  ;;  %v596_v61 = vld [vmem:[%s4895_s27 + $0xb8] sm:$0xff]  ;;  %v5100_v63 = vpack.c.bf16 %v594_v55, %v590_v53  ;;  %v589_v0 = vld [vmem:[%s4895_s27 + $0x80] sm:$0xff]  ;;  %v5106_v3 = vpack.c.bf16 %v587_v58, %v583_v57 }
 0x134   : > { %3251 = vmatpush1.bf16.msra.mxu0 %v3250_v24  ;;  %v593_v1 = vld [vmem:[%s4895_s27 + $0xa0] sm:$0xff]  ;;  %v598_v2 = vld [vmem:[%s4895_s27 + $0xc8] sm:$0xff]  ;;  %v5110_v5 = vpack.c.bf16 %v596_v61, %v592_v60  ;;  %v591_v6 = vld [vmem:[%s4895_s27 + $0x90] sm:$0xff] }
 0x135   : > { %3283 = vmatpush1.bf16.msra.mxu1 %v3282_v25  ;;  %3253 = vmatprep.subr.bf16.mxu0 %v3252_v26  ;;  %v602_v4 = vld [vmem:[%s4895_s27 + $0xe8] sm:$0xff]  ;;  %v595_v8 = vld [vmem:[%s4895_s27 + $0xb0] sm:$0xff]  ;;  %v600_v10 = vld [vmem:[%s4895_s27 + $0xd8] sm:$0xff]  ;;  %v5122_v12 = vpack.c.bf16 %v593_v1, %v589_v0 }
 0x136   : > { %3285 = vmatprep.subr.bf16.mxu1 %v3284_v30  ;;  %v640_v9 = vld [vmem:[%s5835_s7 + $0x10] sm:$0xff]  ;;  %v604_v11 = vld [vmem:[%s4895_s27 + $0xf8] sm:$0xff]  ;;  %v5125_v13 = vpack.c.bf16 %v602_v4, %v598_v2  ;;  %v597_v14 = vld [vmem:[%s4895_s27 + $0xc0] sm:$0xff]  ;;  %v5131_v17 = vpack.c.bf16 %v595_v8, %v591_v6 }
 0x137   : > { %v601_v15 = vld [vmem:[%s4895_s27 + $0xe0] sm:$0xff]  ;;  %v606_v16 = vld [vmem:[%s4895_s27 + $0x108] sm:$0xff]  ;;  %v5135_v19 = vpack.c.bf16 %v604_v11, %v600_v10  ;;  %v599_v20 = vld [vmem:[%s4895_s27 + $0xd0] sm:$0xff] }
 0x138   : > { %3255 = vmatpush1.bf16.msra.mxu0 %v3254_v36  ;;  %v610_v18 = vld [vmem:[%s4895_s27 + $0x128] sm:$0xff]  ;;  %v603_v21 = vld [vmem:[%s4895_s27 + $0xf0] sm:$0xff]  ;;  %v641_v22 = vld [vmem:[%s5835_s7 + $0x18] sm:$0xff]  ;;  %v5147_v25 = vpack.c.bf16 %v601_v15, %v597_v14 }
 0x139   : > { %3287 = vmatpush1.bf16.msra.mxu1 %v3286_v37  ;;  %3289 = vmatprep.subr.bf16.mxu0 %v5058_v38  ;;  %v608_v23 = vld [vmem:[%s4895_s27 + $0x118] sm:$0xff]  ;;  %v5150_v26 = vpack.c.bf16 %v610_v18, %v606_v16  ;;  %v605_v27 = vld [vmem:[%s4895_s27 + $0x100] sm:$0xff]  ;;  %v614_v29 = vld [vmem:[%s4895_s27 + $0x148] sm:$0xff]  ;;  %v5156_v30 = vpack.c.bf16 %v603_v21, %v599_v20 }
 0x13a   : > { %3321 = vmatprep.subr.bf16.mxu1 %v5063_v42  ;;  %v612_v24 = vld [vmem:[%s4895_s27 + $0x138] sm:$0xff]  ;;  %v609_v28 = vld [vmem:[%s4895_s27 + $0x120] sm:$0xff]  ;;  %v618_v31 = vld [vmem:[%s4895_s27 + $0x168] sm:$0xff] }
 0x13b   : > { %740 = vmatmul.mubr.f32.vlgmr.msra.gmra.mrb[0].mxu0 %v638_v46  ;;  %v5160_v32 = vpack.c.bf16 %v612_v24, %v608_v23  ;;  %v607_v33 = vld [vmem:[%s4895_s27 + $0x110] sm:$0xff]  ;;  %v642_v35 = vld [vmem:[%s5835_s7 + $0x20] sm:$0xff]  ;;  %v616_v36 = vld [vmem:[%s4895_s27 + $0x158] sm:$0xff]  ;;  %v5172_v39 = vpack.c.bf16 %v609_v28, %v605_v27  ;;  %v5175_v40 = vpack.c.bf16 %v618_v31, %v614_v29 }
 0x13c   : > { %901 = vmatmul.mubr.f32.vlgmr.msra.gmra.mrb[0].mxu1 %v638_v46  ;;  %3291 = vmatpush1.bf16.msra.mxu0 %v5071_v47  ;;  %v611_v34 = vld [vmem:[%s4895_s27 + $0x130] sm:$0xff]  ;;  %v620_v37 = vld [vmem:[%s4895_s27 + $0x178] sm:$0xff]  ;;  %v613_v41 = vld [vmem:[%s4895_s27 + $0x140] sm:$0xff] }
 0x13d   : > { %745 = vmatprep.mubr.f32.mxu0 %v4609_v7  ;;  %906 = vmatprep.mubr.f32.mxu1 %v4609_v7  ;;  %v617_v43 = vld [vmem:[%s4895_s27 + $0x160] sm:$0xff]  ;;  %v622_v44 = vld [vmem:[%s4895_s27 + $0x188] sm:$0xff]  ;;  %v5181_v45 = vpack.c.bf16 %v611_v34, %v607_v33  ;;  %v5185_v48 = vpack.c.bf16 %v620_v37, %v616_v36  ;;  %v615_v49 = vld [vmem:[%s4895_s27 + $0x150] sm:$0xff] }
 0x13e   : > { %3293 = vmatprep.subr.bf16.mxu0 %v5076_v50  ;;  %3323 = vmatpush1.bf16.msra.mxu1 %v5082_v54  ;;  %v626_v46 = vld [vmem:[%s4895_s27 + $0x1a8] sm:$0xff]  ;;  %v619_v51 = vld [vmem:[%s4895_s27 + $0x170] sm:$0xff]  ;;  %v624_v53 = vld [vmem:[%s4895_s27 + $0x198] sm:$0xff]  ;;  %v5197_v57 = vpack.c.bf16 %v617_v43, %v613_v41 }
 0x13f   : > { %746 = vmatmul.mubr.f32.gmra.mrb[2].mxu0 %v639_v59  ;;  %3325 = vmatprep.subr.bf16.mxu1 %v5085_v56  ;;  %v643_v52 = vld [vmem:[%s5835_s7 + $0x28] sm:$0xff]  ;;  %v628_v55 = vld [vmem:[%s4895_s27 + $0x1b8] sm:$0xff]  ;;  %v5200_v58 = vpack.c.bf16 %v626_v46, %v622_v44  ;;  %v625_v60 = vld [vmem:[%s4895_s27 + $0x1a0] sm:$0xff]  ;;  %v5205_v61 = vpack.c.bf16 %v619_v51, %v615_v49  ;;  %v655_v44 = vlaneseq }
 0x140   : > { %907 = vmatmul.mubr.f32.gmra.mrb[2].mxu1 %v639_v59  ;;  %751 = vmatprep.mubr.f32.mxu0 %v4609_v7  ;;  %v621_v59 = vld [vmem:[%s4895_s27 + $0x180] sm:$0xff]  ;;  %v630_v0 = vld [vmem:[%s4895_s27 + $0x1c8] sm:$0xff]  ;;  %v5210_v2 = vpack.c.bf16 %v628_v55, %v624_v53  ;;  %v623_v4 = vld [vmem:[%s4895_s27 + $0x190] sm:$0xff] }
 0x141   : > { %912 = vmatprep.mubr.f32.mxu1 %v4609_v7  ;;  %3295 = vmatpush1.bf16.msra.mxu0 %v5097_v62  ;;  %v634_v1 = vld [vmem:[%s4895_s27 + $0x1e8] sm:$0xff]  ;;  %v627_v6 = vld [vmem:[%s4895_s27 + $0x1b0] sm:$0xff]  ;;  %v636_v10 = vld [vmem:[%s4895_s27 + $0x1f8] sm:$0xff]  ;;  %v5222_v11 = vpack.c.bf16 %v625_v60, %v621_v59  ;;  %v656_v46 = vshrl.u32 %v655_v44, 7 }
 0x142   : > { %3297 = vmatprep.subr.bf16.mxu0 %v5100_v63  ;;  %3327 = vmatpush1.bf16.msra.mxu1 %v5106_v3  ;;  %v644_v8 = vld [vmem:[%s5835_s7 + $0x30] sm:$0xff]  ;;  %v5226_v14 = vpack.c.bf16 %v634_v1, %v630_v0  ;;  %v629_v15 = vld [vmem:[%s4895_s27 + $0x1c0] sm:$0xff]  ;;  %v5230_v18 = vpack.c.bf16 %v627_v6, %v623_v4  ;;  %v645_v23 = vld [vmem:[%s5835_s7 + $0x38] sm:$0xff] }
 0x143   : > { %752 = vmatmul.mubr.f32.gmra.mrb[4].mxu0 %v640_v9  ;;  %3329 = vmatprep.subr.bf16.mxu1 %v5110_v5  ;;  %v633_v16 = vld [vmem:[%s4895_s27 + $0x1e0] sm:$0xff]  ;;  %v631_v21 = vld [vmem:[%s4895_s27 + $0x1d0] sm:$0xff]  ;;  %v647_v29 = vld [vmem:[%s5835_s7 + $0x48] sm:$0xff]  ;;  %v657_v49 = vsub.s32 0, %v656_v46  ;;  %v665_v60 = vsub.s32 2, %v656_v46 }
 0x144   : > { %913 = vmatmul.mubr.f32.gmra.mrb[4].mxu1 %v640_v9  ;;  %757 = vmatprep.mubr.f32.mxu0 %v4609_v7  ;;  %v632_v9 = vld [vmem:[%s4895_s27 + $0x1d8] sm:$0xff]  ;;  %v5243_v24 = vpack.c.bf16 %v633_v16, %v629_v15  ;;  %v646_v28 = vld [vmem:[%s5835_s7 + $0x40] sm:$0xff]  ;;  %v648_v31 = vld [vmem:[%s5835_s7 + $0x50] sm:$0xff] }
 0x145   : > { %918 = vmatprep.mubr.f32.mxu1 %v4609_v7  ;;  %3299 = vmatpush1.bf16.msra.mxu0 %v5122_v12  ;;  %v5233_v20 = vpack.c.bf16 %v636_v10, %v632_v9  ;;  %v649_v33 = vld [vmem:[%s5835_s7 + $0x58] sm:$0xff]  ;;  %v650_v34 = vld [vmem:[%s5835_s7 + $0x60] sm:$0xff]  ;;  %v652_v36 = vld [vmem:[%s5835_s7 + $0x70] sm:$0xff] }
 0x146   : > { %3301 = vmatprep.subr.bf16.mxu0 %v5125_v13  ;;  %3331 = vmatpush1.bf16.msra.mxu1 %v5131_v17  ;;  %v653_v37 = vld [vmem:[%s5835_s7 + $0x78] sm:$0xff]  ;;  %v1061_v41 = vld [vmem:[%s4918_s28] sm:$0xff]  ;;  %v1062_v43 = vld [vmem:[%s4918_s28 + $0x8] sm:$0xff] }
 0x147   : > { %758 = vmatmul.mubr.f32.gmra.mrb[6].mxu0 %v641_v22  ;;  %3333 = vmatprep.subr.bf16.mxu1 %v5135_v19  ;;  %v637_v51 = vld [vmem:[%s4905_s12] sm:$0xf]  ;;  %s5890_s12 = scalar_lea.vmem [#allocation12], %s4903_s21 }
 0x148   : > { %919 = vmatmul.mubr.f32.gmra.mrb[6].mxu1 %v641_v22  ;;  %763 = vmatprep.mubr.f32.mxu0 %v4609_v7  ;;  %v635_v22 = vld [vmem:[%s4895_s27 + $0x1f0] sm:$0xff]  ;;  %v5335_v53 = vrot.slane %v637_v51, %v657_v49  ;;  %v5341_v10 = vrot.slane %v637_v51, %v665_v60  ;;  %s5891_s28 = smov %s5890_s12  ;;  %s3222_s27 = sshll.u32 %s4688_s17, 8 }
 0x149   : > { %924 = vmatprep.mubr.f32.mxu1 %v4609_v7  ;;  %3303 = vmatpush1.bf16.msra.mxu0 %v5147_v25  ;;  %v5247_v27 = vpack.c.bf16 %v635_v22, %v631_v21  ;;  %v669_v21 = vsub.s32 3, %v656_v46  ;;  %s5733_s8 = scalar_lea.hbm %s5837_s9, %s3222_s27 }
 0x14a   : > { %3305 = vmatprep.subr.bf16.mxu0 %v5150_v26  ;;  %3335 = vmatpush1.bf16.msra.mxu1 %v5156_v30 }
 0x14b   : > { %764 = vmatmul.mubr.f32.gmra.mrb[8].mxu0 %v642_v35  ;;  %3337 = vmatprep.subr.bf16.mxu1 %v5160_v32 }
 0x14c   : > { %925 = vmatmul.mubr.f32.gmra.mrb[8].mxu1 %v642_v35  ;;  %769 = vmatprep.mubr.f32.mxu0 %v4609_v7  ;;  %v651_v35 = vld [vmem:[%s5835_s7 + $0x68] sm:$0xff] }
 0x14d   : > { %930 = vmatprep.mubr.f32.mxu1 %v4609_v7  ;;  %3307 = vmatpush1.bf16.msra.mxu0 %v5172_v39 }
 0x14e   : > { %3309 = vmatprep.subr.bf16.mxu0 %v5175_v40  ;;  %3339 = vmatpush1.bf16.msra.mxu1 %v5181_v45 }
 0x14f   : > { %770 = vmatmul.mubr.f32.gmra.mrb[10].mxu0 %v643_v52  ;;  %3341 = vmatprep.subr.bf16.mxu1 %v5185_v48 }
 0x150   : > { %931 = vmatmul.mubr.f32.gmra.mrb[10].mxu1 %v643_v52  ;;  %775 = vmatprep.mubr.f32.mxu0 %v4609_v7  ;;  %v661_v52 = vsub.s32 1, %v656_v46 }
 0x151   : > { %936 = vmatprep.mubr.f32.mxu1 %v4609_v7  ;;  %3311 = vmatpush1.bf16.msra.mxu0 %v5197_v57 }
 0x152   : > { %3313 = vmatprep.subr.bf16.mxu0 %v5200_v58  ;;  %3343 = vmatpush1.bf16.msra.mxu1 %v5205_v61  ;;  %v5337_v55 = vrot.slane %v637_v51, %v661_v52 }
 0x153   : > { %776 = vmatmul.mubr.f32.gmra.mrb[12].mxu0 %v644_v8  ;;  %3345 = vmatprep.subr.bf16.mxu1 %v5210_v2 }
 0x154   : > { %937 = vmatmul.mubr.f32.gmra.mrb[12].mxu1 %v644_v8  ;;  %781 = vmatprep.mubr.f32.mxu0 %v4609_v7 }
 0x155   : > { %942 = vmatprep.mubr.f32.mxu1 %v4609_v7  ;;  %3315 = vmatpush1.bf16.msra.mxu0 %v5222_v11 }
 0x156   : > { %3317 = vmatprep.subr.bf16.mxu0 %v5226_v14  ;;  %3347 = vmatpush1.bf16.msra.mxu1 %v5230_v18 }
 0x157   : > { %782 = vmatmul.mubr.f32.gmra.mrb[14].mxu0 %v645_v23  ;;  %3349 = vmatprep.subr.bf16.mxu1 %v5233_v20 }
 0x158   : > { %943 = vmatmul.mubr.f32.gmra.mrb[14].mxu1 %v645_v23  ;;  %787 = vmatprep.mubr.f32.mxu0 %v4609_v7 }
 0x159   : > { %948 = vmatprep.mubr.f32.mxu1 %v4609_v7  ;;  %3319 = vmatpush1.bf16.msra.mxu0 %v5243_v24 }
 0x15a   : > { %3351 = vmatpush1.bf16.msra.mxu1 %v5247_v27  ;;  %3353 = vmatprep.subr.bf16.mxu0 %v5058_v38 }
 0x15b   : > { %788 = vmatmul.mubr.f32.gmra.mrb[16].mxu0 %v646_v28  ;;  %3385 = vmatprep.subr.bf16.mxu1 %v5063_v42 }
 0x15c   : > { %949 = vmatmul.mubr.f32.gmra.mrb[16].mxu1 %v646_v28  ;;  %793 = vmatprep.mubr.f32.mxu0 %v4609_v7 }
 0x15d   : > { %954 = vmatprep.mubr.f32.mxu1 %v4609_v7 }
 0x15f   : > { %794 = vmatmul.mubr.f32.gmra.mrb[18].mxu0 %v647_v29 }
 0x160   : > { %955 = vmatmul.mubr.f32.gmra.mrb[18].mxu1 %v647_v29  ;;  %799 = vmatprep.mubr.f32.mxu0 %v4609_v7 }
 0x161   : > { %960 = vmatprep.mubr.f32.mxu1 %v4609_v7 }
 0x163   : > { %800 = vmatmul.mubr.f32.gmra.mrb[20].mxu0 %v648_v31 }
 0x164   : > { %961 = vmatmul.mubr.f32.gmra.mrb[20].mxu1 %v648_v31  ;;  %805 = vmatprep.mubr.f32.mxu0 %v4609_v7 }
 0x165   : > { %966 = vmatprep.mubr.f32.mxu1 %v4609_v7 }
 0x167   : > { %806 = vmatmul.mubr.f32.gmra.mrb[22].mxu0 %v649_v33 }
 0x168   : > { %967 = vmatmul.mubr.f32.gmra.mrb[22].mxu1 %v649_v33  ;;  %811 = vmatprep.mubr.f32.mxu0 %v4609_v7 }
 0x169   : > { %972 = vmatprep.mubr.f32.mxu1 %v4609_v7 }
 0x16b   : > { %812 = vmatmul.mubr.f32.gmra.mrb[24].mxu0 %v650_v34 }
 0x16c   : > { %973 = vmatmul.mubr.f32.gmra.mrb[24].mxu1 %v650_v34  ;;  %817 = vmatprep.mubr.f32.mxu0 %v4609_v7 }
 0x16d   : > { %978 = vmatprep.mubr.f32.mxu1 %v4609_v7 }
 0x16f   : > { %818 = vmatmul.mubr.f32.gmra.mrb[26].mxu0 %v651_v35 }
 0x170   : > { %979 = vmatmul.mubr.f32.gmra.mrb[26].mxu1 %v651_v35  ;;  %823 = vmatprep.mubr.f32.mxu0 %v4609_v7 }
 0x171   : > { %984 = vmatprep.mubr.f32.mxu1 %v4609_v7 }
 0x173   : > { %824 = vmatmul.mubr.f32.gmra.mrb[28].mxu0 %v652_v36 }
 0x174   : > { %985 = vmatmul.mubr.f32.gmra.mrb[28].mxu1 %v652_v36  ;;  %829 = vmatprep.mubr.f32.mxu0 %v4609_v7  ;;  %v5346_v36 = vrot.slane %v637_v51, %v669_v21 }
 0x175   : > { %990 = vmatprep.mubr.f32.mxu1 %v4609_v7 }
 0x177   : > { %830 = vmatmul.mubr.f32.gmra.mrb[30].mxu0 %v653_v37 }
 0x178   : > { %991 = vmatmul.mubr.f32.gmra.mrb[30].mxu1 %v653_v37  ;;  %1140 = vmatprep.mubr.f32.mxu0 %v4609_v7 }
 0x179   : > { %1217 = vmatprep.mubr.f32.mxu1 %v4609_v7 }
 0x17b   : > { %1141 = vmatmul.mubr.f32.vlgmr.msra.gmra.mrb[0].mxu0 %v1061_v41 }
 0x17c   : > { %1218 = vmatmul.mubr.f32.vlgmr.msra.gmra.mrb[0].mxu1 %v1061_v41  ;;  %1146 = vmatprep.mubr.f32.mxu0 %v4609_v7 }
 0x17d   : > { %1223 = vmatprep.mubr.f32.mxu1 %v4609_v7  ;;  %3355 = vmatpush1.bf16.msra.mxu0 %v5071_v47 }
 0x17e   : > { %3387 = vmatpush1.bf16.msra.mxu1 %v5082_v54  ;;  %3357 = vmatprep.subr.bf16.mxu0 %v5076_v50 }
 0x17f   : > { %1147 = vmatmul.mubr.f32.gmra.mrb[2].mxu0 %v1062_v43  ;;  %3389 = vmatprep.subr.bf16.mxu1 %v5085_v56 }
 0x180   : > { %1224 = vmatmul.mubr.f32.gmra.mrb[2].mxu1 %v1062_v43  ;;  %1363 = vmatprep.mubr.f32.mxu0 %v4609_v7 }
 0x181   : > { %3359 = vmatpush1.bf16.msra.mxu0 %v5097_v62  ;;  %1440 = vmatprep.mubr.f32.mxu1 %v4609_v7 }
 0x182   : > { %3391 = vmatpush1.bf16.msra.mxu1 %v5106_v3  ;;  %3361 = vmatprep.subr.bf16.mxu0 %v5100_v63 }
 0x183   : > { %3393 = vmatprep.subr.bf16.mxu1 %v5110_v5 }
 0x185   : > { %3363 = vmatpush1.bf16.msra.mxu0 %v5122_v12 }
 0x186   : > { %3395 = vmatpush1.bf16.msra.mxu1 %v5131_v17  ;;  %3365 = vmatprep.subr.bf16.mxu0 %v5125_v13 }
 0x187   : > { %3397 = vmatprep.subr.bf16.mxu1 %v5135_v19 }
 0x189   : > { %3367 = vmatpush1.bf16.msra.mxu0 %v5147_v25 }
 0x18a   : > { %3399 = vmatpush1.bf16.msra.mxu1 %v5156_v30  ;;  %3369 = vmatprep.subr.bf16.mxu0 %v5150_v26 }
 0x18b   : > { %3401 = vmatprep.subr.bf16.mxu1 %v5160_v32 }
 0x18d   : > { %3371 = vmatpush1.bf16.msra.mxu0 %v5172_v39 }
 0x18e   : > { %3403 = vmatpush1.bf16.msra.mxu1 %v5181_v45  ;;  %3373 = vmatprep.subr.bf16.mxu0 %v5175_v40 }
 0x18f   : > { %3405 = vmatprep.subr.bf16.mxu1 %v5185_v48 }
 0x191   : > { %3375 = vmatpush1.bf16.msra.mxu0 %v5197_v57 }
 0x192   : > { %3407 = vmatpush1.bf16.msra.mxu1 %v5205_v61  ;;  %3377 = vmatprep.subr.bf16.mxu0 %v5200_v58 }
 0x193   : > { %3409 = vmatprep.subr.bf16.mxu1 %v5210_v2 }
 0x195   : > { %3379 = vmatpush1.bf16.msra.mxu0 %v5222_v11 }
 0x196   : > { %3411 = vmatpush1.bf16.msra.mxu1 %v5230_v18  ;;  %3381 = vmatprep.subr.bf16.mxu0 %v5226_v14 }
 0x197   : > { %3413 = vmatprep.subr.bf16.mxu1 %v5233_v20 }
 0x199   : > { %3383 = vmatpush1.bf16.msra.mxu0 %v5243_v24 }
 0x19a   : > { %3415 = vmatpush1.bf16.msra.mxu1 %v5247_v27  ;;  %3417 = vmatprep.subr.bf16.mxu0 %v5058_v38 }
 0x19b   : > { %3449 = vmatprep.subr.bf16.mxu1 %v5063_v42 }
 0x24e   : > { %v1142_v59 = vpop.f32.mrb[0].mxu0 }
 0x24f   : > { %v3800_v0 = vadd.f32 %v1142_v59, %v5335_v53  ;;  %v1219_v1 = vpop.f32.mrb[0].mxu1  ;;  %v1144_v4 = vpop.f32.mrb[1].mxu0 }
 0x250   : > { %v3801_v6 = vadd.f32 %v1144_v4, %v5337_v55  ;;  %v1221_v8 = vpop.f32.mrb[1].mxu1  ;;  %v3832_v34 = vadd.f32 %v1219_v1, %v5341_v10 }
 0x251   : > { %v3146_v9 = vmul.f32 -1.442695, %v3800_v0  ;;  %v3833_v43 = vadd.f32 %v1221_v8, %v5346_v36 }
 0x252   : > { %v3147_v15 = vmul.f32 -1.442695, %v3801_v6  ;;  %v1148_v16 = vpop.f32.mrb[2].mxu0  ;;  %v3148_v41 = vmul.f32 -1.442695, %v3832_v34 }
 0x253   : > { %4026 = vpow2.f32 %v3146_v9  ;;  %v3802_v22 = vadd.f32 %v1148_v16, %v5335_v53  ;;  %v1225_v23 = vpop.f32.mrb[2].mxu1  ;;  %v1150_v28 = vpop.f32.mrb[3].mxu0 }
 0x254   : > { %v3803_v29 = vadd.f32 %v1150_v28, %v5337_v55  ;;  %v1227_v31 = vpop.f32.mrb[3].mxu1  ;;  %4028 = vpow2.f32 %v3147_v15  ;;  %v3834_v37 = vadd.f32 %v1225_v23, %v5341_v10  ;;  %v1063_v15 = vld [vmem:[%s5890_s12] sm:$0xff] }
 0x255   : > { %v3149_v33 = vmul.f32 -1.442695, %v3802_v22  ;;  %v3835_v59 = vadd.f32 %v1227_v31, %v5346_v36 }
 0x256   : > { %v3150_v35 = vmul.f32 -1.442695, %v3803_v29  ;;  %v3151_v46 = vmul.f32 -1.442695, %v3834_v37 }
 0x257   : > { %4030 = vpow2.f32 %v3149_v33  ;;  %v1064_v33 = vld [vmem:[%s5891_s28 + $0x8] sm:$0xff] }
 0x258   : > { %4032 = vpow2.f32 %v3150_v35 }
 0x259   : > { %4034 = vpow2.f32 %v3148_v41 }
 0x25a   : > { %4036 = vtanh.f32 %v3833_v43 }
 0x25d   : > { %v4027_v44 = vpop.eup %4026 }
 0x25e   : > { %v1256_v49 = vadd.f32 1.0, %v4027_v44  ;;  %v4029_v52 = vpop.eup %4028 }
 0x25f   : > { %v1257_v60 = vadd.f32 1.0, %v4029_v52 }
 0x260   : > { %4038 = vrcp.f32 %v1256_v49 }
 0x261   : > { %v4031_v51 = vpop.eup %4030  ;;  %4040 = vpow2.f32 %v3151_v46 }
 0x262   : > { %4042 = vrcp.f32 %v1257_v60  ;;  %v1259_v0 = vadd.f32 1.0, %v4031_v51  ;;  %v4033_v1 = vpop.eup %4032 }
 0x263   : > { %4044 = vtanh.f32 %v3835_v59  ;;  %v1260_v4 = vadd.f32 1.0, %v4033_v1  ;;  %v4035_v6 = vpop.eup %4034 }
 0x264   : > { %4046 = vrcp.f32 %v1259_v0  ;;  %v4037_v8 = vpop.eup %4036  ;;  %v1258_v23 = vadd.f32 1.0, %v4035_v6 }
 0x265   : > { %4048 = vrcp.f32 %v1260_v4 }
 0x266   : > { %4050 = vrcp.f32 %v1258_v23 }
 0x26a   : > { %v4039_v9 = vpop.eup %4038 }
 0x26b   : > { %v4041_v16 = vpop.eup %4040  ;;  %v1278_v21 = vmul.f32 %v4039_v9, %v4037_v8 }
 0x26c   : > { %v4043_v22 = vpop.eup %4042  ;;  %v1261_v41 = vadd.f32 1.0, %v4041_v16 }
 0x26d   : > { %v4045_v28 = vpop.eup %4044  ;;  %v1276_v29 = vmul.f32 %v4043_v22, %v1063_v15 }
 0x26e   : > { %v4047_v31 = vpop.eup %4046 }
 0x26f   : > { %v5355_v34 = vadd.f32 %v1278_v21, %v1276_v29  ;;  %v1279_v35 = vmul.f32 %v4047_v31, %v4045_v28  ;;  %v4049_v37 = vpop.eup %4048 }
 0x270   : > { %v1277_v43 = vmul.f32 %v4049_v37, %v1064_v33  ;;  %v4051_v46 = vpop.eup %4050 }
 0x271   : > { %4052 = vtanh.f32 %v5355_v34 }
 0x272   : > { %v5358_v44 = vadd.f32 %v1279_v35, %v1277_v43  ;;  %4054 = vrcp.f32 %v1261_v41 }
 0x274   : > { %4056 = vtanh.f32 %v5358_v44 }
 0x27b   : > { %v4053_v49 = vpop.eup %4052 }
 0x27c   : > { %v1284_v52 = vmul.f32 %v4053_v49, %v4051_v46  ;;  %v4055_v59 = vpop.eup %4054 }
 0x27e   : > { %1286 = vst [vmem:[%s5835_s7] sm:$0xff] %v1284_v52  ;;  %1364 = vmatmul.mubr.f32.vlgmr.msra.gmra.mrb[4].mxu0 %v1284_v52  ;;  %1441 = vmatmul.mubr.f32.vlgmr.msra.gmra.mrb[4].mxu1 %v1284_v52  ;;  %v4057_v60 = vpop.eup %4056 }
 0x27f   : > { %1369 = vmatprep.mubr.f32.mxu0 %v4609_v7  ;;  %1446 = vmatprep.mubr.f32.mxu1 %v4609_v7  ;;  %v1285_v51 = vmul.f32 %v4057_v60, %v4055_v59 }
 0x280   : > { %3419 = vmatpush1.bf16.msra.mxu0 %v5071_v47  ;;  %3451 = vmatpush1.bf16.msra.mxu1 %v5082_v54 }
 0x281   : > { %3421 = vmatprep.subr.bf16.mxu0 %v5076_v50  ;;  %3453 = vmatprep.subr.bf16.mxu1 %v5085_v56  ;;  %1287 = vst [vmem:[%s5835_s7 + $0x8] sm:$0xff] %v1285_v51 }
 0x282   : > { %1370 = vmatmul.mubr.f32.gmra.mrb[6].mxu0 %v1285_v51  ;;  %1447 = vmatmul.mubr.f32.gmra.mrb[6].mxu1 %v1285_v51 }
 0x283   : > { %1587 = vmatprep.mubr.f32.mxu0 %v4609_v7  ;;  %1664 = vmatprep.mubr.f32.mxu1 %v4609_v7 }
 0x284   : > { %3423 = vmatpush1.bf16.msra.mxu0 %v5097_v62  ;;  %3455 = vmatpush1.bf16.msra.mxu1 %v5106_v3 }
 0x285   : > { %3425 = vmatprep.subr.bf16.mxu0 %v5100_v63  ;;  %3457 = vmatprep.subr.bf16.mxu1 %v5110_v5 }
 0x288   : > { %3427 = vmatpush1.bf16.msra.mxu0 %v5122_v12  ;;  %3459 = vmatpush1.bf16.msra.mxu1 %v5131_v17 }
 0x289   : > { %3429 = vmatprep.subr.bf16.mxu0 %v5125_v13  ;;  %3461 = vmatprep.subr.bf16.mxu1 %v5135_v19 }
 0x28c   : > { %3431 = vmatpush1.bf16.msra.mxu0 %v5147_v25  ;;  %3463 = vmatpush1.bf16.msra.mxu1 %v5156_v30 }
 0x28d   : > { %3433 = vmatprep.subr.bf16.mxu0 %v5150_v26  ;;  %3465 = vmatprep.subr.bf16.mxu1 %v5160_v32 }
 0x290   : > { %3435 = vmatpush1.bf16.msra.mxu0 %v5172_v39  ;;  %3467 = vmatpush1.bf16.msra.mxu1 %v5181_v45 }
 0x291   : > { %3437 = vmatprep.subr.bf16.mxu0 %v5175_v40  ;;  %3469 = vmatprep.subr.bf16.mxu1 %v5185_v48 }
 0x294   : > { %3439 = vmatpush1.bf16.msra.mxu0 %v5197_v57  ;;  %3471 = vmatpush1.bf16.msra.mxu1 %v5205_v61 }
 0x295   : > { %3441 = vmatprep.subr.bf16.mxu0 %v5200_v58  ;;  %3473 = vmatprep.subr.bf16.mxu1 %v5210_v2 }
 0x298   : > { %3443 = vmatpush1.bf16.msra.mxu0 %v5222_v11  ;;  %3475 = vmatpush1.bf16.msra.mxu1 %v5230_v18 }
 0x299   : > { %3445 = vmatprep.subr.bf16.mxu0 %v5226_v14  ;;  %3477 = vmatprep.subr.bf16.mxu1 %v5233_v20 }
 0x29c   : > { %3447 = vmatpush1.bf16.msra.mxu0 %v5243_v24  ;;  %3479 = vmatpush1.bf16.msra.mxu1 %v5247_v27 }
 0x29d   : > { %3481 = vmatprep.subr.bf16.mxu0 %v5058_v38  ;;  %3513 = vmatprep.subr.bf16.mxu1 %v5063_v42 }
 0x351   : > { %v1365_v0 = vpop.f32.mrb[4].mxu0  ;;  %v1442_v1 = vpop.f32.mrb[4].mxu1 }
 0x352   : > { %v3804_v4 = vadd.f32 %v1365_v0, %v5335_v53  ;;  %v1367_v6 = vpop.f32.mrb[5].mxu0  ;;  %v1444_v8 = vpop.f32.mrb[5].mxu1  ;;  %v3836_v37 = vadd.f32 %v1442_v1, %v5341_v10 }
 0x353   : > { %v3805_v9 = vadd.f32 %v1367_v6, %v5337_v55  ;;  %v3837_v41 = vadd.f32 %v1444_v8, %v5346_v36 }
 0x354   : > { %v3152_v15 = vmul.f32 -1.442695, %v3804_v4  ;;  %v3154_v43 = vmul.f32 -1.442695, %v3836_v37 }
 0x355   : > { %v3153_v16 = vmul.f32 -1.442695, %v3805_v9  ;;  %v1371_v21 = vpop.f32.mrb[6].mxu0  ;;  %v1448_v22 = vpop.f32.mrb[6].mxu1 }
 0x356   : > { %4058 = vpow2.f32 %v3152_v15  ;;  %v3806_v23 = vadd.f32 %v1371_v21, %v5335_v53  ;;  %v1373_v28 = vpop.f32.mrb[7].mxu0  ;;  %v1450_v29 = vpop.f32.mrb[7].mxu1  ;;  %v3838_v46 = vadd.f32 %v1448_v22, %v5341_v10 }
 0x357   : > { %v3807_v31 = vadd.f32 %v1373_v28, %v5337_v55  ;;  %4060 = vpow2.f32 %v3153_v16  ;;  %v3839_v52 = vadd.f32 %v1450_v29, %v5346_v36 }
 0x358   : > { %v3155_v33 = vmul.f32 -1.442695, %v3806_v23  ;;  %v3157_v51 = vmul.f32 -1.442695, %v3838_v46 }
 0x359   : > { %v3156_v35 = vmul.f32 -1.442695, %v3807_v31 }
 0x35a   : > { %4062 = vpow2.f32 %v3155_v33 }
 0x35b   : > { %4064 = vpow2.f32 %v3156_v35 }
 0x35c   : > { %4066 = vtanh.f32 %v3837_v41 }
 0x35d   : > { %4068 = vpow2.f32 %v3154_v43 }
 0x360   : > { %v4059_v49 = vpop.eup %4058 }
 0x361   : > { %v1479_v59 = vadd.f32 1.0, %v4059_v49  ;;  %v4061_v60 = vpop.eup %4060 }
 0x362   : > { %v1480_v0 = vadd.f32 1.0, %v4061_v60 }
 0x363   : > { %4070 = vrcp.f32 %v1479_v59 }
 0x364   : > { %v4063_v4 = vpop.eup %4062  ;;  %4072 = vtanh.f32 %v3839_v52 }
 0x365   : > { %4074 = vrcp.f32 %v1480_v0  ;;  %v1482_v1 = vadd.f32 1.0, %v4063_v4  ;;  %v4065_v6 = vpop.eup %4064 }
 0x366   : > { %4076 = vpow2.f32 %v3157_v51  ;;  %v1483_v8 = vadd.f32 1.0, %v4065_v6  ;;  %v4067_v9 = vpop.eup %4066 }
 0x367   : > { %4078 = vrcp.f32 %v1482_v1  ;;  %v4069_v15 = vpop.eup %4068 }
 0x368   : > { %4080 = vrcp.f32 %v1483_v8  ;;  %v1481_v28 = vadd.f32 1.0, %v4069_v15 }
 0x36a   : > { %4082 = vrcp.f32 %v1481_v28 }
 0x36d   : > { %v4071_v16 = vpop.eup %4070 }
 0x36e   : > { %v4073_v21 = vpop.eup %4072  ;;  %v1501_v22 = vmul.f32 %v4071_v16, %v4067_v9 }
 0x36f   : > { %v4075_v23 = vpop.eup %4074 }
 0x370   : > { %v4077_v29 = vpop.eup %4076  ;;  %v1499_v31 = vmul.f32 %v4075_v23, %v5355_v34 }
 0x371   : > { %v4079_v33 = vpop.eup %4078  ;;  %v1484_v43 = vadd.f32 1.0, %v4077_v29 }
 0x372   : > { %v5412_v35 = vadd.f32 %v1501_v22, %v1499_v31  ;;  %v1502_v37 = vmul.f32 %v4079_v33, %v4073_v21  ;;  %v4081_v41 = vpop.eup %4080 }
 0x373   : > { %v1500_v46 = vmul.f32 %v4081_v41, %v5358_v44 }
 0x374   : > { %4084 = vtanh.f32 %v5412_v35  ;;  %v4083_v52 = vpop.eup %4082 }
 0x375   : > { %v5416_v49 = vadd.f32 %v1502_v37, %v1500_v46  ;;  %4086 = vrcp.f32 %v1484_v43 }
 0x377   : > { %4088 = vtanh.f32 %v5416_v49 }
 0x37e   : > { %v4085_v59 = vpop.eup %4084 }
 0x37f   : > { %v1507_v60 = vmul.f32 %v4085_v59, %v4083_v52  ;;  %v4087_v34 = vpop.eup %4086 }
 0x381   : > { %3158 = vst [vmem:[%s5835_s7 + $0x10] sm:$0xff] %v1507_v60  ;;  %1588 = vmatmul.mubr.f32.vlgmr.msra.gmra.mrb[8].mxu0 %v1507_v60  ;;  %1665 = vmatmul.mubr.f32.vlgmr.msra.gmra.mrb[8].mxu1 %v1507_v60  ;;  %v4089_v51 = vpop.eup %4088 }
 0x382   : > { %1593 = vmatprep.mubr.f32.mxu0 %v4609_v7  ;;  %1670 = vmatprep.mubr.f32.mxu1 %v4609_v7  ;;  %v1508_v44 = vmul.f32 %v4089_v51, %v4087_v34 }
 0x383   : > { %3483 = vmatpush1.bf16.msra.mxu0 %v5071_v47  ;;  %3515 = vmatpush1.bf16.msra.mxu1 %v5082_v54 }
 0x384   : > { %3485 = vmatprep.subr.bf16.mxu0 %v5076_v50  ;;  %3517 = vmatprep.subr.bf16.mxu1 %v5085_v56  ;;  %3159 = vst [vmem:[%s5835_s7 + $0x18] sm:$0xff] %v1508_v44 }
 0x385   : > { %1594 = vmatmul.mubr.f32.gmra.mrb[10].mxu0 %v1508_v44  ;;  %1671 = vmatmul.mubr.f32.gmra.mrb[10].mxu1 %v1508_v44 }
 0x386   : > { %1811 = vmatprep.mubr.f32.mxu0 %v4609_v7  ;;  %1888 = vmatprep.mubr.f32.mxu1 %v4609_v7 }
 0x387   : > { %3487 = vmatpush1.bf16.msra.mxu0 %v5097_v62  ;;  %3519 = vmatpush1.bf16.msra.mxu1 %v5106_v3 }
 0x388   : > { %3489 = vmatprep.subr.bf16.mxu0 %v5100_v63  ;;  %3521 = vmatprep.subr.bf16.mxu1 %v5110_v5 }
 0x38b   : > { %3491 = vmatpush1.bf16.msra.mxu0 %v5122_v12  ;;  %3523 = vmatpush1.bf16.msra.mxu1 %v5131_v17 }
 0x38c   : > { %3493 = vmatprep.subr.bf16.mxu0 %v5125_v13  ;;  %3525 = vmatprep.subr.bf16.mxu1 %v5135_v19 }
 0x38f   : > { %3495 = vmatpush1.bf16.msra.mxu0 %v5147_v25  ;;  %3527 = vmatpush1.bf16.msra.mxu1 %v5156_v30 }
 0x390   : > { %3497 = vmatprep.subr.bf16.mxu0 %v5150_v26  ;;  %3529 = vmatprep.subr.bf16.mxu1 %v5160_v32 }
 0x393   : > { %3499 = vmatpush1.bf16.msra.mxu0 %v5172_v39  ;;  %3531 = vmatpush1.bf16.msra.mxu1 %v5181_v45 }
 0x394   : > { %3501 = vmatprep.subr.bf16.mxu0 %v5175_v40  ;;  %3533 = vmatprep.subr.bf16.mxu1 %v5185_v48 }
 0x397   : > { %3503 = vmatpush1.bf16.msra.mxu0 %v5197_v57  ;;  %3535 = vmatpush1.bf16.msra.mxu1 %v5205_v61 }
 0x398   : > { %3505 = vmatprep.subr.bf16.mxu0 %v5200_v58  ;;  %3537 = vmatprep.subr.bf16.mxu1 %v5210_v2 }
 0x39b   : > { %3507 = vmatpush1.bf16.msra.mxu0 %v5222_v11  ;;  %3539 = vmatpush1.bf16.msra.mxu1 %v5230_v18 }
 0x39c   : > { %3509 = vmatprep.subr.bf16.mxu0 %v5226_v14  ;;  %3541 = vmatprep.subr.bf16.mxu1 %v5233_v20 }
 0x39f   : > { %3511 = vmatpush1.bf16.msra.mxu0 %v5243_v24  ;;  %3543 = vmatpush1.bf16.msra.mxu1 %v5247_v27 }
 0x3a0   : > { %3545 = vmatprep.subr.bf16.mxu0 %v5058_v38  ;;  %3577 = vmatprep.subr.bf16.mxu1 %v5063_v42 }
 0x454   : > { %v1589_v0 = vpop.f32.mrb[8].mxu0  ;;  %v1666_v4 = vpop.f32.mrb[8].mxu1 }
 0x455   : > { %v3808_v1 = vadd.f32 %v1589_v0, %v5335_v53  ;;  %v1591_v6 = vpop.f32.mrb[9].mxu0  ;;  %v1668_v8 = vpop.f32.mrb[9].mxu1  ;;  %v3840_v41 = vadd.f32 %v1666_v4, %v5341_v10 }
 0x456   : > { %v3809_v9 = vadd.f32 %v1591_v6, %v5337_v55  ;;  %v3841_v43 = vadd.f32 %v1668_v8, %v5346_v36 }
 0x457   : > { %v3160_v15 = vmul.f32 -1.442695, %v3808_v1  ;;  %v3162_v46 = vmul.f32 -1.442695, %v3840_v41 }
 0x458   : > { %v3161_v16 = vmul.f32 -1.442695, %v3809_v9  ;;  %v1595_v21 = vpop.f32.mrb[10].mxu0  ;;  %v1672_v22 = vpop.f32.mrb[10].mxu1 }
 0x459   : > { %4090 = vpow2.f32 %v3160_v15  ;;  %v3810_v23 = vadd.f32 %v1595_v21, %v5335_v53  ;;  %v1597_v28 = vpop.f32.mrb[11].mxu0  ;;  %v1674_v29 = vpop.f32.mrb[11].mxu1  ;;  %v3842_v52 = vadd.f32 %v1672_v22, %v5341_v10 }
 0x45a   : > { %v3811_v31 = vadd.f32 %v1597_v28, %v5337_v55  ;;  %4092 = vpow2.f32 %v3161_v16  ;;  %v3843_v60 = vadd.f32 %v1674_v29, %v5346_v36 }
 0x45b   : > { %v3163_v33 = vmul.f32 -1.442695, %v3810_v23  ;;  %v3165_v44 = vmul.f32 -1.442695, %v3842_v52 }
 0x45c   : > { %v3164_v37 = vmul.f32 -1.442695, %v3811_v31 }
 0x45d   : > { %4094 = vpow2.f32 %v3163_v33 }
 0x45e   : > { %4096 = vpow2.f32 %v3164_v37 }
 0x45f   : > { %4098 = vtanh.f32 %v3841_v43 }
 0x460   : > { %4100 = vpow2.f32 %v3162_v46 }
 0x463   : > { %v4091_v59 = vpop.eup %4090 }
 0x464   : > { %v1703_v34 = vadd.f32 1.0, %v4091_v59  ;;  %v4093_v51 = vpop.eup %4092 }
 0x465   : > { %v1704_v0 = vadd.f32 1.0, %v4093_v51 }
 0x466   : > { %4102 = vrcp.f32 %v1703_v34 }
 0x467   : > { %v4095_v1 = vpop.eup %4094  ;;  %4104 = vtanh.f32 %v3843_v60 }
 0x468   : > { %4106 = vrcp.f32 %v1704_v0  ;;  %v1706_v4 = vadd.f32 1.0, %v4095_v1  ;;  %v4097_v6 = vpop.eup %4096 }
 0x469   : > { %4108 = vpow2.f32 %v3165_v44  ;;  %v1707_v8 = vadd.f32 1.0, %v4097_v6  ;;  %v4099_v9 = vpop.eup %4098 }
 0x46a   : > { %4110 = vrcp.f32 %v1706_v4  ;;  %v4101_v15 = vpop.eup %4100 }
 0x46b   : > { %4112 = vrcp.f32 %v1707_v8  ;;  %v1705_v28 = vadd.f32 1.0, %v4101_v15 }
 0x46d   : > { %4114 = vrcp.f32 %v1705_v28 }
 0x470   : > { %v4103_v16 = vpop.eup %4102 }
 0x471   : > { %v4105_v21 = vpop.eup %4104  ;;  %v1725_v22 = vmul.f32 %v4103_v16, %v4099_v9 }
 0x472   : > { %v4107_v23 = vpop.eup %4106 }
 0x473   : > { %v4109_v29 = vpop.eup %4108  ;;  %v1723_v31 = vmul.f32 %v4107_v23, %v5412_v35 }
 0x474   : > { %v4111_v33 = vpop.eup %4110  ;;  %v1708_v46 = vadd.f32 1.0, %v4109_v29 }
 0x475   : > { %v5470_v37 = vadd.f32 %v1725_v22, %v1723_v31  ;;  %v1726_v41 = vmul.f32 %v4111_v33, %v4105_v21  ;;  %v4113_v43 = vpop.eup %4112 }
 0x476   : > { %v1724_v52 = vmul.f32 %v4113_v43, %v5416_v49 }
 0x477   : > { %4116 = vtanh.f32 %v5470_v37  ;;  %v4115_v60 = vpop.eup %4114 }
 0x478   : > { %v5474_v59 = vadd.f32 %v1726_v41, %v1724_v52  ;;  %4118 = vrcp.f32 %v1708_v46 }
 0x47a   : > { %4120 = vtanh.f32 %v5474_v59 }
 0x481   : > { %v4117_v34 = vpop.eup %4116 }
 0x482   : > { %v1731_v51 = vmul.f32 %v4117_v34, %v4115_v60  ;;  %v4119_v35 = vpop.eup %4118 }
 0x484   : > { %3166 = vst [vmem:[%s5835_s7 + $0x20] sm:$0xff] %v1731_v51  ;;  %1812 = vmatmul.mubr.f32.vlgmr.msra.gmra.mrb[12].mxu0 %v1731_v51  ;;  %1889 = vmatmul.mubr.f32.vlgmr.msra.gmra.mrb[12].mxu1 %v1731_v51  ;;  %v4121_v44 = vpop.eup %4120 }
 0x485   : > { %1817 = vmatprep.mubr.f32.mxu0 %v4609_v7  ;;  %1894 = vmatprep.mubr.f32.mxu1 %v4609_v7  ;;  %v1732_v49 = vmul.f32 %v4121_v44, %v4119_v35 }
 0x486   : > { %3547 = vmatpush1.bf16.msra.mxu0 %v5071_v47  ;;  %3579 = vmatpush1.bf16.msra.mxu1 %v5082_v54 }
 0x487   : > { %3549 = vmatprep.subr.bf16.mxu0 %v5076_v50  ;;  %3581 = vmatprep.subr.bf16.mxu1 %v5085_v56  ;;  %3167 = vst [vmem:[%s5835_s7 + $0x28] sm:$0xff] %v1732_v49 }
 0x488   : > { %1818 = vmatmul.mubr.f32.gmra.mrb[14].mxu0 %v1732_v49  ;;  %1895 = vmatmul.mubr.f32.gmra.mrb[14].mxu1 %v1732_v49 }
 0x489   : > { %2035 = vmatprep.mubr.f32.mxu0 %v4609_v7  ;;  %2112 = vmatprep.mubr.f32.mxu1 %v4609_v7 }
 0x48a   : > { %3551 = vmatpush1.bf16.msra.mxu0 %v5097_v62  ;;  %3583 = vmatpush1.bf16.msra.mxu1 %v5106_v3 }
 0x48b   : > { %3553 = vmatprep.subr.bf16.mxu0 %v5100_v63  ;;  %3585 = vmatprep.subr.bf16.mxu1 %v5110_v5 }
 0x48e   : > { %3555 = vmatpush1.bf16.msra.mxu0 %v5122_v12  ;;  %3587 = vmatpush1.bf16.msra.mxu1 %v5131_v17 }
 0x48f   : > { %3557 = vmatprep.subr.bf16.mxu0 %v5125_v13  ;;  %3589 = vmatprep.subr.bf16.mxu1 %v5135_v19 }
 0x492   : > { %3559 = vmatpush1.bf16.msra.mxu0 %v5147_v25  ;;  %3591 = vmatpush1.bf16.msra.mxu1 %v5156_v30 }
 0x493   : > { %3561 = vmatprep.subr.bf16.mxu0 %v5150_v26  ;;  %3593 = vmatprep.subr.bf16.mxu1 %v5160_v32 }
 0x496   : > { %3563 = vmatpush1.bf16.msra.mxu0 %v5172_v39  ;;  %3595 = vmatpush1.bf16.msra.mxu1 %v5181_v45 }
 0x497   : > { %3565 = vmatprep.subr.bf16.mxu0 %v5175_v40  ;;  %3597 = vmatprep.subr.bf16.mxu1 %v5185_v48 }
 0x49a   : > { %3567 = vmatpush1.bf16.msra.mxu0 %v5197_v57  ;;  %3599 = vmatpush1.bf16.msra.mxu1 %v5205_v61 }
 0x49b   : > { %3569 = vmatprep.subr.bf16.mxu0 %v5200_v58  ;;  %3601 = vmatprep.subr.bf16.mxu1 %v5210_v2 }
 0x49e   : > { %3571 = vmatpush1.bf16.msra.mxu0 %v5222_v11  ;;  %3603 = vmatpush1.bf16.msra.mxu1 %v5230_v18 }
 0x49f   : > { %3573 = vmatprep.subr.bf16.mxu0 %v5226_v14  ;;  %3605 = vmatprep.subr.bf16.mxu1 %v5233_v20 }
 0x4a2   : > { %3575 = vmatpush1.bf16.msra.mxu0 %v5243_v24  ;;  %3607 = vmatpush1.bf16.msra.mxu1 %v5247_v27 }
 0x4a3   : > { %3609 = vmatprep.subr.bf16.mxu0 %v5058_v38  ;;  %3641 = vmatprep.subr.bf16.mxu1 %v5063_v42 }
 0x557   : > { %v1813_v0 = vpop.f32.mrb[12].mxu0  ;;  %v1890_v1 = vpop.f32.mrb[12].mxu1 }
 0x558   : > { %v3812_v4 = vadd.f32 %v1813_v0, %v5335_v53  ;;  %v1815_v6 = vpop.f32.mrb[13].mxu0  ;;  %v1892_v8 = vpop.f32.mrb[13].mxu1  ;;  %v3844_v43 = vadd.f32 %v1890_v1, %v5341_v10 }
 0x559   : > { %v3813_v9 = vadd.f32 %v1815_v6, %v5337_v55  ;;  %v3845_v46 = vadd.f32 %v1892_v8, %v5346_v36 }
 0x55a   : > { %v3168_v15 = vmul.f32 -1.442695, %v3812_v4  ;;  %v3170_v52 = vmul.f32 -1.442695, %v3844_v43 }
 0x55b   : > { %v3169_v16 = vmul.f32 -1.442695, %v3813_v9  ;;  %v1819_v21 = vpop.f32.mrb[14].mxu0  ;;  %v1896_v22 = vpop.f32.mrb[14].mxu1 }
 0x55c   : > { %4122 = vpow2.f32 %v3168_v15  ;;  %v3814_v23 = vadd.f32 %v1819_v21, %v5335_v53  ;;  %v1821_v28 = vpop.f32.mrb[15].mxu0  ;;  %v1898_v29 = vpop.f32.mrb[15].mxu1  ;;  %v3846_v60 = vadd.f32 %v1896_v22, %v5341_v10 }
 0x55d   : > { %v3815_v31 = vadd.f32 %v1821_v28, %v5337_v55  ;;  %4124 = vpow2.f32 %v3169_v16  ;;  %v3847_v51 = vadd.f32 %v1898_v29, %v5346_v36 }
 0x55e   : > { %v3171_v33 = vmul.f32 -1.442695, %v3814_v23  ;;  %v3173_v49 = vmul.f32 -1.442695, %v3846_v60 }
 0x55f   : > { %v3172_v41 = vmul.f32 -1.442695, %v3815_v31 }
 0x560   : > { %4126 = vpow2.f32 %v3171_v33 }
 0x561   : > { %4128 = vpow2.f32 %v3172_v41 }
 0x562   : > { %4130 = vtanh.f32 %v3845_v46 }
 0x563   : > { %4132 = vpow2.f32 %v3170_v52 }
 0x566   : > { %v4123_v34 = vpop.eup %4122 }
 0x567   : > { %v1927_v35 = vadd.f32 1.0, %v4123_v34  ;;  %v4125_v44 = vpop.eup %4124 }
 0x568   : > { %v1928_v0 = vadd.f32 1.0, %v4125_v44 }
 0x569   : > { %4134 = vrcp.f32 %v1927_v35 }
 0x56a   : > { %v4127_v4 = vpop.eup %4126  ;;  %4136 = vtanh.f32 %v3847_v51 }
 0x56b   : > { %4138 = vrcp.f32 %v1928_v0  ;;  %v1930_v1 = vadd.f32 1.0, %v4127_v4  ;;  %v4129_v6 = vpop.eup %4128 }
 0x56c   : > { %4140 = vpow2.f32 %v3173_v49  ;;  %v1931_v8 = vadd.f32 1.0, %v4129_v6  ;;  %v4131_v9 = vpop.eup %4130 }
 0x56d   : > { %4142 = vrcp.f32 %v1930_v1  ;;  %v4133_v15 = vpop.eup %4132 }
 0x56e   : > { %4144 = vrcp.f32 %v1931_v8  ;;  %v1929_v28 = vadd.f32 1.0, %v4133_v15 }
 0x570   : > { %4146 = vrcp.f32 %v1929_v28 }
 0x573   : > { %v4135_v16 = vpop.eup %4134 }
 0x574   : > { %v4137_v21 = vpop.eup %4136  ;;  %v1949_v22 = vmul.f32 %v4135_v16, %v4131_v9 }
 0x575   : > { %v4139_v23 = vpop.eup %4138 }
 0x576   : > { %v4141_v29 = vpop.eup %4140  ;;  %v1947_v31 = vmul.f32 %v4139_v23, %v5470_v37 }
 0x577   : > { %v4143_v33 = vpop.eup %4142  ;;  %v1932_v52 = vadd.f32 1.0, %v4141_v29 }
 0x578   : > { %v5528_v41 = vadd.f32 %v1949_v22, %v1947_v31  ;;  %v1950_v43 = vmul.f32 %v4143_v33, %v4137_v21  ;;  %v4145_v46 = vpop.eup %4144 }
 0x579   : > { %v1948_v60 = vmul.f32 %v4145_v46, %v5474_v59 }
 0x57a   : > { %4148 = vtanh.f32 %v5528_v41  ;;  %v4147_v51 = vpop.eup %4146 }
 0x57b   : > { %v5532_v34 = vadd.f32 %v1950_v43, %v1948_v60  ;;  %4150 = vrcp.f32 %v1932_v52 }
 0x57d   : > { %4152 = vtanh.f32 %v5532_v34 }
 0x584   : > { %v4149_v35 = vpop.eup %4148 }
 0x585   : > { %v1955_v44 = vmul.f32 %v4149_v35, %v4147_v51  ;;  %v4151_v37 = vpop.eup %4150 }
 0x587   : > { %3174 = vst [vmem:[%s5835_s7 + $0x30] sm:$0xff] %v1955_v44  ;;  %2036 = vmatmul.mubr.f32.vlgmr.msra.gmra.mrb[16].mxu0 %v1955_v44  ;;  %2113 = vmatmul.mubr.f32.vlgmr.msra.gmra.mrb[16].mxu1 %v1955_v44  ;;  %v4153_v49 = vpop.eup %4152 }
 0x588   : > { %2041 = vmatprep.mubr.f32.mxu0 %v4609_v7  ;;  %2118 = vmatprep.mubr.f32.mxu1 %v4609_v7  ;;  %v1956_v59 = vmul.f32 %v4153_v49, %v4151_v37 }
 0x589   : > { %3611 = vmatpush1.bf16.msra.mxu0 %v5071_v47  ;;  %3643 = vmatpush1.bf16.msra.mxu1 %v5082_v54 }
 0x58a   : > { %3613 = vmatprep.subr.bf16.mxu0 %v5076_v50  ;;  %3645 = vmatprep.subr.bf16.mxu1 %v5085_v56  ;;  %3175 = vst [vmem:[%s5835_s7 + $0x38] sm:$0xff] %v1956_v59 }
 0x58b   : > { %2042 = vmatmul.mubr.f32.gmra.mrb[18].mxu0 %v1956_v59  ;;  %2119 = vmatmul.mubr.f32.gmra.mrb[18].mxu1 %v1956_v59 }
 0x58c   : > { %2259 = vmatprep.mubr.f32.mxu0 %v4609_v7  ;;  %2336 = vmatprep.mubr.f32.mxu1 %v4609_v7 }
 0x58d   : > { %3615 = vmatpush1.bf16.msra.mxu0 %v5097_v62  ;;  %3647 = vmatpush1.bf16.msra.mxu1 %v5106_v3 }
 0x58e   : > { %3617 = vmatprep.subr.bf16.mxu0 %v5100_v63  ;;  %3649 = vmatprep.subr.bf16.mxu1 %v5110_v5 }
 0x591   : > { %3619 = vmatpush1.bf16.msra.mxu0 %v5122_v12  ;;  %3651 = vmatpush1.bf16.msra.mxu1 %v5131_v17 }
 0x592   : > { %3621 = vmatprep.subr.bf16.mxu0 %v5125_v13  ;;  %3653 = vmatprep.subr.bf16.mxu1 %v5135_v19 }
 0x595   : > { %3623 = vmatpush1.bf16.msra.mxu0 %v5147_v25  ;;  %3655 = vmatpush1.bf16.msra.mxu1 %v5156_v30 }
 0x596   : > { %3625 = vmatprep.subr.bf16.mxu0 %v5150_v26  ;;  %3657 = vmatprep.subr.bf16.mxu1 %v5160_v32 }
 0x599   : > { %3627 = vmatpush1.bf16.msra.mxu0 %v5172_v39  ;;  %3659 = vmatpush1.bf16.msra.mxu1 %v5181_v45 }
 0x59a   : > { %3629 = vmatprep.subr.bf16.mxu0 %v5175_v40  ;;  %3661 = vmatprep.subr.bf16.mxu1 %v5185_v48 }
 0x59d   : > { %3631 = vmatpush1.bf16.msra.mxu0 %v5197_v57  ;;  %3663 = vmatpush1.bf16.msra.mxu1 %v5205_v61 }
 0x59e   : > { %3633 = vmatprep.subr.bf16.mxu0 %v5200_v58  ;;  %3665 = vmatprep.subr.bf16.mxu1 %v5210_v2 }
 0x5a1   : > { %3635 = vmatpush1.bf16.msra.mxu0 %v5222_v11  ;;  %3667 = vmatpush1.bf16.msra.mxu1 %v5230_v18 }
 0x5a2   : > { %3637 = vmatprep.subr.bf16.mxu0 %v5226_v14  ;;  %3669 = vmatprep.subr.bf16.mxu1 %v5233_v20 }
 0x5a5   : > { %3639 = vmatpush1.bf16.msra.mxu0 %v5243_v24  ;;  %3671 = vmatpush1.bf16.msra.mxu1 %v5247_v27 }
 0x5a6   : > { %3673 = vmatprep.subr.bf16.mxu0 %v5058_v38  ;;  %3705 = vmatprep.subr.bf16.mxu1 %v5063_v42 }
 0x65a   : > { %v2037_v0 = vpop.f32.mrb[16].mxu0  ;;  %v2114_v4 = vpop.f32.mrb[16].mxu1 }
 0x65b   : > { %v3816_v1 = vadd.f32 %v2037_v0, %v5335_v53  ;;  %v2039_v6 = vpop.f32.mrb[17].mxu0  ;;  %v2116_v8 = vpop.f32.mrb[17].mxu1  ;;  %v3848_v46 = vadd.f32 %v2114_v4, %v5341_v10 }
 0x65c   : > { %v3817_v9 = vadd.f32 %v2039_v6, %v5337_v55  ;;  %v3849_v52 = vadd.f32 %v2116_v8, %v5346_v36 }
 0x65d   : > { %v3176_v15 = vmul.f32 -1.442695, %v3816_v1  ;;  %v3178_v60 = vmul.f32 -1.442695, %v3848_v46 }
 0x65e   : > { %v3177_v16 = vmul.f32 -1.442695, %v3817_v9  ;;  %v2043_v21 = vpop.f32.mrb[18].mxu0  ;;  %v2120_v22 = vpop.f32.mrb[18].mxu1 }
 0x65f   : > { %4154 = vpow2.f32 %v3176_v15  ;;  %v3818_v23 = vadd.f32 %v2043_v21, %v5335_v53  ;;  %v2045_v28 = vpop.f32.mrb[19].mxu0  ;;  %v2122_v29 = vpop.f32.mrb[19].mxu1  ;;  %v3850_v51 = vadd.f32 %v2120_v22, %v5341_v10 }
 0x660   : > { %v3819_v31 = vadd.f32 %v2045_v28, %v5337_v55  ;;  %4156 = vpow2.f32 %v3177_v16  ;;  %v3851_v44 = vadd.f32 %v2122_v29, %v5346_v36 }
 0x661   : > { %v3179_v33 = vmul.f32 -1.442695, %v3818_v23  ;;  %v3181_v59 = vmul.f32 -1.442695, %v3850_v51 }
 0x662   : > { %v3180_v43 = vmul.f32 -1.442695, %v3819_v31 }
 0x663   : > { %4158 = vpow2.f32 %v3179_v33 }
 0x664   : > { %4160 = vpow2.f32 %v3180_v43 }
 0x665   : > { %4162 = vtanh.f32 %v3849_v52 }
 0x666   : > { %4164 = vpow2.f32 %v3178_v60 }
 0x669   : > { %v4155_v35 = vpop.eup %4154 }
 0x66a   : > { %v2151_v37 = vadd.f32 1.0, %v4155_v35  ;;  %v4157_v49 = vpop.eup %4156 }
 0x66b   : > { %v2152_v0 = vadd.f32 1.0, %v4157_v49 }
 0x66c   : > { %4166 = vrcp.f32 %v2151_v37 }
 0x66d   : > { %v4159_v1 = vpop.eup %4158  ;;  %4168 = vtanh.f32 %v3851_v44 }
 0x66e   : > { %4170 = vrcp.f32 %v2152_v0  ;;  %v2154_v4 = vadd.f32 1.0, %v4159_v1  ;;  %v4161_v6 = vpop.eup %4160 }
 0x66f   : > { %4172 = vpow2.f32 %v3181_v59  ;;  %v2155_v8 = vadd.f32 1.0, %v4161_v6  ;;  %v4163_v9 = vpop.eup %4162 }
 0x670   : > { %4174 = vrcp.f32 %v2154_v4  ;;  %v4165_v15 = vpop.eup %4164 }
 0x671   : > { %4176 = vrcp.f32 %v2155_v8  ;;  %v2153_v28 = vadd.f32 1.0, %v4165_v15 }
 0x673   : > { %4178 = vrcp.f32 %v2153_v28 }
 0x676   : > { %v4167_v16 = vpop.eup %4166 }
 0x677   : > { %v4169_v21 = vpop.eup %4168  ;;  %v2173_v22 = vmul.f32 %v4167_v16, %v4163_v9 }
 0x678   : > { %v4171_v23 = vpop.eup %4170 }
 0x679   : > { %v4173_v29 = vpop.eup %4172  ;;  %v2171_v31 = vmul.f32 %v4171_v23, %v5528_v41 }
 0x67a   : > { %v4175_v33 = vpop.eup %4174  ;;  %v2156_v60 = vadd.f32 1.0, %v4173_v29 }
 0x67b   : > { %v5586_v43 = vadd.f32 %v2173_v22, %v2171_v31  ;;  %v2174_v46 = vmul.f32 %v4175_v33, %v4169_v21  ;;  %v4177_v52 = vpop.eup %4176 }
 0x67c   : > { %v2172_v51 = vmul.f32 %v4177_v52, %v5532_v34 }
 0x67d   : > { %4180 = vtanh.f32 %v5586_v43  ;;  %v4179_v44 = vpop.eup %4178 }
 0x67e   : > { %v5590_v35 = vadd.f32 %v2174_v46, %v2172_v51  ;;  %4182 = vrcp.f32 %v2156_v60 }
 0x680   : > { %4184 = vtanh.f32 %v5590_v35 }
 0x687   : > { %v4181_v37 = vpop.eup %4180 }
 0x688   : > { %v2179_v49 = vmul.f32 %v4181_v37, %v4179_v44  ;;  %v4183_v41 = vpop.eup %4182 }
 0x68a   : > { %3182 = vst [vmem:[%s5835_s7 + $0x40] sm:$0xff] %v2179_v49  ;;  %2260 = vmatmul.mubr.f32.vlgmr.msra.gmra.mrb[20].mxu0 %v2179_v49  ;;  %2337 = vmatmul.mubr.f32.vlgmr.msra.gmra.mrb[20].mxu1 %v2179_v49  ;;  %v4185_v59 = vpop.eup %4184 }
 0x68b   : > { %2265 = vmatprep.mubr.f32.mxu0 %v4609_v7  ;;  %2342 = vmatprep.mubr.f32.mxu1 %v4609_v7  ;;  %v2180_v34 = vmul.f32 %v4185_v59, %v4183_v41 }
 0x68c   : > { %3675 = vmatpush1.bf16.msra.mxu0 %v5071_v47  ;;  %3707 = vmatpush1.bf16.msra.mxu1 %v5082_v54 }
 0x68d   : > { %3677 = vmatprep.subr.bf16.mxu0 %v5076_v50  ;;  %3709 = vmatprep.subr.bf16.mxu1 %v5085_v56  ;;  %3183 = vst [vmem:[%s5835_s7 + $0x48] sm:$0xff] %v2180_v34 }
 0x68e   : > { %2266 = vmatmul.mubr.f32.gmra.mrb[22].mxu0 %v2180_v34  ;;  %2343 = vmatmul.mubr.f32.gmra.mrb[22].mxu1 %v2180_v34 }
 0x68f   : > { %2483 = vmatprep.mubr.f32.mxu0 %v4609_v7  ;;  %2560 = vmatprep.mubr.f32.mxu1 %v4609_v7 }
 0x690   : > { %3679 = vmatpush1.bf16.msra.mxu0 %v5097_v62  ;;  %3711 = vmatpush1.bf16.msra.mxu1 %v5106_v3 }
 0x691   : > { %3681 = vmatprep.subr.bf16.mxu0 %v5100_v63  ;;  %3713 = vmatprep.subr.bf16.mxu1 %v5110_v5 }
 0x694   : > { %3683 = vmatpush1.bf16.msra.mxu0 %v5122_v12  ;;  %3715 = vmatpush1.bf16.msra.mxu1 %v5131_v17 }
 0x695   : > { %3685 = vmatprep.subr.bf16.mxu0 %v5125_v13  ;;  %3717 = vmatprep.subr.bf16.mxu1 %v5135_v19 }
 0x698   : > { %3687 = vmatpush1.bf16.msra.mxu0 %v5147_v25  ;;  %3719 = vmatpush1.bf16.msra.mxu1 %v5156_v30 }
 0x699   : > { %3689 = vmatprep.subr.bf16.mxu0 %v5150_v26  ;;  %3721 = vmatprep.subr.bf16.mxu1 %v5160_v32 }
 0x69c   : > { %3691 = vmatpush1.bf16.msra.mxu0 %v5172_v39  ;;  %3723 = vmatpush1.bf16.msra.mxu1 %v5181_v45 }
 0x69d   : > { %3693 = vmatprep.subr.bf16.mxu0 %v5175_v40  ;;  %3725 = vmatprep.subr.bf16.mxu1 %v5185_v48 }
 0x6a0   : > { %3695 = vmatpush1.bf16.msra.mxu0 %v5197_v57  ;;  %3727 = vmatpush1.bf16.msra.mxu1 %v5205_v61 }
 0x6a1   : > { %3697 = vmatprep.subr.bf16.mxu0 %v5200_v58  ;;  %3729 = vmatprep.subr.bf16.mxu1 %v5210_v2 }
 0x6a4   : > { %3699 = vmatpush1.bf16.msra.mxu0 %v5222_v11  ;;  %3731 = vmatpush1.bf16.msra.mxu1 %v5230_v18 }
 0x6a5   : > { %3701 = vmatprep.subr.bf16.mxu0 %v5226_v14  ;;  %3733 = vmatprep.subr.bf16.mxu1 %v5233_v20 }
 0x6a8   : > { %3703 = vmatpush1.bf16.msra.mxu0 %v5243_v24  ;;  %3735 = vmatpush1.bf16.msra.mxu1 %v5247_v27 }
 0x6a9   : > { %3737 = vmatprep.subr.bf16.mxu0 %v5058_v38  ;;  %3769 = vmatprep.subr.bf16.mxu1 %v5063_v42 }
 0x75d   : > { %v2261_v0 = vpop.f32.mrb[20].mxu0  ;;  %v2338_v1 = vpop.f32.mrb[20].mxu1 }
 0x75e   : > { %v3820_v4 = vadd.f32 %v2261_v0, %v5335_v53  ;;  %v2263_v6 = vpop.f32.mrb[21].mxu0  ;;  %v2340_v8 = vpop.f32.mrb[21].mxu1  ;;  %v3852_v33 = vadd.f32 %v2338_v1, %v5341_v10 }
 0x75f   : > { %v3821_v9 = vadd.f32 %v2263_v6, %v5337_v55  ;;  %v3853_v46 = vadd.f32 %v2340_v8, %v5346_v36 }
 0x760   : > { %v3184_v15 = vmul.f32 -1.442695, %v3820_v4  ;;  %v3186_v52 = vmul.f32 -1.442695, %v3852_v33 }
 0x761   : > { %v3185_v16 = vmul.f32 -1.442695, %v3821_v9  ;;  %v2267_v21 = vpop.f32.mrb[22].mxu0  ;;  %v2344_v22 = vpop.f32.mrb[22].mxu1 }
 0x762   : > { %4186 = vpow2.f32 %v3184_v15  ;;  %v3822_v23 = vadd.f32 %v2267_v21, %v5335_v53  ;;  %v2269_v28 = vpop.f32.mrb[23].mxu0  ;;  %v2346_v29 = vpop.f32.mrb[23].mxu1  ;;  %v3854_v60 = vadd.f32 %v2344_v22, %v5341_v10 }
 0x763   : > { %v3823_v38 = vadd.f32 %v2269_v28, %v5337_v55  ;;  %4188 = vpow2.f32 %v3185_v16  ;;  %v3855_v44 = vadd.f32 %v2346_v29, %v5346_v36 }
 0x764   : > { %v3187_v42 = vmul.f32 -1.442695, %v3822_v23  ;;  %v3189_v41 = vmul.f32 -1.442695, %v3854_v60 }
 0x765   : > { %v3188_v31 = vmul.f32 -1.442695, %v3823_v38 }
 0x766   : > { %4190 = vpow2.f32 %v3187_v42 }
 0x767   : > { %4192 = vpow2.f32 %v3188_v31 }
 0x768   : > { %4194 = vtanh.f32 %v3853_v46 }
 0x769   : > { %4196 = vpow2.f32 %v3186_v52 }
 0x76c   : > { %v4187_v51 = vpop.eup %4186 }
 0x76d   : > { %v2375_v37 = vadd.f32 1.0, %v4187_v51  ;;  %v4189_v49 = vpop.eup %4188 }
 0x76e   : > { %v2376_v59 = vadd.f32 1.0, %v4189_v49 }
 0x76f   : > { %4198 = vrcp.f32 %v2375_v37 }
 0x770   : > { %v4191_v34 = vpop.eup %4190  ;;  %4200 = vtanh.f32 %v3855_v44 }
 0x771   : > { %4202 = vrcp.f32 %v2376_v59  ;;  %v2378_v0 = vadd.f32 1.0, %v4191_v34  ;;  %v4193_v1 = vpop.eup %4192 }
 0x772   : > { %4204 = vpow2.f32 %v3189_v41  ;;  %v2379_v4 = vadd.f32 1.0, %v4193_v1  ;;  %v4195_v6 = vpop.eup %4194 }
 0x773   : > { %4206 = vrcp.f32 %v2378_v0  ;;  %v4197_v8 = vpop.eup %4196 }
 0x774   : > { %4208 = vrcp.f32 %v2379_v4  ;;  %v2377_v22 = vadd.f32 1.0, %v4197_v8 }
 0x776   : > { %4210 = vrcp.f32 %v2377_v22 }
 0x779   : > { %v4199_v9 = vpop.eup %4198 }
 0x77a   : > { %v4201_v15 = vpop.eup %4200  ;;  %v2397_v16 = vmul.f32 %v4199_v9, %v4195_v6 }
 0x77b   : > { %v4203_v21 = vpop.eup %4202 }
 0x77c   : > { %v4205_v23 = vpop.eup %4204  ;;  %v2395_v28 = vmul.f32 %v4203_v21, %v5586_v43 }
 0x77d   : > { %v4207_v29 = vpop.eup %4206  ;;  %v2380_v33 = vadd.f32 1.0, %v4205_v23 }
 0x77e   : > { %v5644_v38 = vadd.f32 %v2397_v16, %v2395_v28  ;;  %v2398_v42 = vmul.f32 %v4207_v29, %v4201_v15  ;;  %v4209_v31 = vpop.eup %4208 }
 0x77f   : > { %v2396_v46 = vmul.f32 %v4209_v31, %v5590_v35 }
 0x780   : > { %4212 = vtanh.f32 %v5644_v38  ;;  %v4211_v60 = vpop.eup %4210 }
 0x781   : > { %v5648_v52 = vadd.f32 %v2398_v42, %v2396_v46  ;;  %4214 = vrcp.f32 %v2380_v33 }
 0x783   : > { %4216 = vtanh.f32 %v5648_v52 }
 0x78a   : > { %v4213_v51 = vpop.eup %4212 }
 0x78b   : > { %v2403_v44 = vmul.f32 %v4213_v51, %v4211_v60  ;;  %v4215_v43 = vpop.eup %4214 }
 0x78d   : > { %3190 = vst [vmem:[%s5835_s7 + $0x50] sm:$0xff] %v2403_v44  ;;  %2484 = vmatmul.mubr.f32.vlgmr.msra.gmra.mrb[24].mxu0 %v2403_v44  ;;  %2561 = vmatmul.mubr.f32.vlgmr.msra.gmra.mrb[24].mxu1 %v2403_v44  ;;  %v4217_v37 = vpop.eup %4216 }
 0x78e   : > { %2489 = vmatprep.mubr.f32.mxu0 %v4609_v7  ;;  %2566 = vmatprep.mubr.f32.mxu1 %v4609_v7  ;;  %v2404_v35 = vmul.f32 %v4217_v37, %v4215_v43 }
 0x78f   : > { %3739 = vmatpush1.bf16.msra.mxu0 %v5071_v47  ;;  %3771 = vmatpush1.bf16.msra.mxu1 %v5082_v54 }
 0x790   : > { %3741 = vmatprep.subr.bf16.mxu0 %v5076_v50  ;;  %3773 = vmatprep.subr.bf16.mxu1 %v5085_v56  ;;  %3191 = vst [vmem:[%s5835_s7 + $0x58] sm:$0xff] %v2404_v35 }
 0x791   : > { %2490 = vmatmul.mubr.f32.gmra.mrb[26].mxu0 %v2404_v35  ;;  %2567 = vmatmul.mubr.f32.gmra.mrb[26].mxu1 %v2404_v35 }
 0x792   : > { %2707 = vmatprep.mubr.f32.mxu0 %v4609_v7  ;;  %2784 = vmatprep.mubr.f32.mxu1 %v4609_v7 }
 0x793   : > { %3743 = vmatpush1.bf16.msra.mxu0 %v5097_v62  ;;  %3775 = vmatpush1.bf16.msra.mxu1 %v5106_v3 }
 0x794   : > { %3745 = vmatprep.subr.bf16.mxu0 %v5100_v63  ;;  %3777 = vmatprep.subr.bf16.mxu1 %v5110_v5 }
 0x797   : > { %3747 = vmatpush1.bf16.msra.mxu0 %v5122_v12  ;;  %3779 = vmatpush1.bf16.msra.mxu1 %v5131_v17 }
 0x798   : > { %3749 = vmatprep.subr.bf16.mxu0 %v5125_v13  ;;  %3781 = vmatprep.subr.bf16.mxu1 %v5135_v19 }
 0x79b   : > { %3751 = vmatpush1.bf16.msra.mxu0 %v5147_v25  ;;  %3783 = vmatpush1.bf16.msra.mxu1 %v5156_v30 }
 0x79c   : > { %3753 = vmatprep.subr.bf16.mxu0 %v5150_v26  ;;  %3785 = vmatprep.subr.bf16.mxu1 %v5160_v32 }
 0x79f   : > { %3755 = vmatpush1.bf16.msra.mxu0 %v5172_v39  ;;  %3787 = vmatpush1.bf16.msra.mxu1 %v5181_v45 }
 0x7a0   : > { %3757 = vmatprep.subr.bf16.mxu0 %v5175_v40  ;;  %3789 = vmatprep.subr.bf16.mxu1 %v5185_v48 }
 0x7a3   : > { %3759 = vmatpush1.bf16.msra.mxu0 %v5197_v57  ;;  %3791 = vmatpush1.bf16.msra.mxu1 %v5205_v61 }
 0x7a4   : > { %3761 = vmatprep.subr.bf16.mxu0 %v5200_v58  ;;  %3793 = vmatprep.subr.bf16.mxu1 %v5210_v2 }
 0x7a7   : > { %3763 = vmatpush1.bf16.msra.mxu0 %v5222_v11  ;;  %3795 = vmatpush1.bf16.msra.mxu1 %v5230_v18 }
 0x7a8   : > { %3765 = vmatprep.subr.bf16.mxu0 %v5226_v14  ;;  %3797 = vmatprep.subr.bf16.mxu1 %v5233_v20 }
 0x7ab   : > { %3767 = vmatpush1.bf16.msra.mxu0 %v5243_v24  ;;  %3799 = vmatpush1.bf16.msra.mxu1 %v5247_v27 }
 0x860   : > { %v2485_v47 = vpop.f32.mrb[24].mxu0  ;;  %v2562_v50 = vpop.f32.mrb[24].mxu1 }
 0x861   : > { %v3824_v54 = vadd.f32 %v2485_v47, %v5335_v53  ;;  %v2487_v56 = vpop.f32.mrb[25].mxu0  ;;  %v2564_v62 = vpop.f32.mrb[25].mxu1  ;;  %v3856_v39 = vadd.f32 %v2562_v50, %v5341_v10 }
 0x862   : > { %v3825_v63 = vadd.f32 %v2487_v56, %v5337_v55  ;;  %v3857_v40 = vadd.f32 %v2564_v62, %v5346_v36 }
 0x863   : > { %v3192_v3 = vmul.f32 -1.442695, %v3824_v54  ;;  %v3194_v45 = vmul.f32 -1.442695, %v3856_v39 }
 0x864   : > { %v3193_v5 = vmul.f32 -1.442695, %v3825_v63  ;;  %v2491_v12 = vpop.f32.mrb[26].mxu0  ;;  %v2568_v13 = vpop.f32.mrb[26].mxu1 }
 0x865   : > { %4218 = vpow2.f32 %v3192_v3  ;;  %v3826_v17 = vadd.f32 %v2491_v12, %v5335_v53  ;;  %v2493_v19 = vpop.f32.mrb[27].mxu0  ;;  %v2570_v25 = vpop.f32.mrb[27].mxu1  ;;  %v3858_v48 = vadd.f32 %v2568_v13, %v5341_v10 }
 0x866   : > { %v3827_v26 = vadd.f32 %v2493_v19, %v5337_v55  ;;  %4220 = vpow2.f32 %v3193_v5  ;;  %v3859_v58 = vadd.f32 %v2570_v25, %v5346_v36 }
 0x867   : > { %v3195_v30 = vmul.f32 -1.442695, %v3826_v17  ;;  %v3197_v11 = vmul.f32 -1.442695, %v3858_v48 }
 0x868   : > { %v3196_v32 = vmul.f32 -1.442695, %v3827_v26 }
 0x869   : > { %4222 = vpow2.f32 %v3195_v30 }
 0x86a   : > { %4224 = vpow2.f32 %v3196_v32 }
 0x86b   : > { %4226 = vtanh.f32 %v3857_v40 }
 0x86c   : > { %4228 = vpow2.f32 %v3194_v45 }
 0x86f   : > { %v4219_v57 = vpop.eup %4218 }
 0x870   : > { %v2599_v61 = vadd.f32 1.0, %v4219_v57  ;;  %v4221_v2 = vpop.eup %4220 }
 0x871   : > { %v2600_v14 = vadd.f32 1.0, %v4221_v2 }
 0x872   : > { %4230 = vrcp.f32 %v2599_v61 }
 0x873   : > { %v4223_v18 = vpop.eup %4222  ;;  %4232 = vtanh.f32 %v3859_v58 }
 0x874   : > { %4234 = vrcp.f32 %v2600_v14  ;;  %v2602_v20 = vadd.f32 1.0, %v4223_v18  ;;  %v4225_v24 = vpop.eup %4224 }
 0x875   : > { %4236 = vpow2.f32 %v3197_v11  ;;  %v2603_v27 = vadd.f32 1.0, %v4225_v24  ;;  %v4227_v49 = vpop.eup %4226 }
 0x876   : > { %4238 = vrcp.f32 %v2602_v20  ;;  %v4229_v41 = vpop.eup %4228 }
 0x877   : > { %4240 = vrcp.f32 %v2603_v27  ;;  %v2601_v4 = vadd.f32 1.0, %v4229_v41 }
 0x879   : > { %4242 = vrcp.f32 %v2601_v4 }
 0x87c   : > { %v4231_v59 = vpop.eup %4230 }
 0x87d   : > { %v4233_v34 = vpop.eup %4232  ;;  %v2621_v0 = vmul.f32 %v4231_v59, %v4227_v49 }
 0x87e   : > { %v4235_v1 = vpop.eup %4234 }
 0x87f   : > { %v4237_v6 = vpop.eup %4236  ;;  %v2619_v8 = vmul.f32 %v4235_v1, %v5644_v38 }
 0x880   : > { %v4239_v9 = vpop.eup %4238  ;;  %v2604_v22 = vadd.f32 1.0, %v4237_v6 }
 0x881   : > { %v5700_v15 = vadd.f32 %v2621_v0, %v2619_v8  ;;  %v2622_v16 = vmul.f32 %v4239_v9, %v4233_v34  ;;  %v4241_v21 = vpop.eup %4240 }
 0x882   : > { %v2620_v23 = vmul.f32 %v4241_v21, %v5648_v52 }
 0x883   : > { %4244 = vtanh.f32 %v5700_v15  ;;  %v4243_v29 = vpop.eup %4242 }
 0x884   : > { %v5704_v28 = vadd.f32 %v2622_v16, %v2620_v23  ;;  %4246 = vrcp.f32 %v2604_v22 }
 0x886   : > { %4248 = vtanh.f32 %v5704_v28 }
 0x88d   : > { %v4245_v42 = vpop.eup %4244 }
 0x88e   : > { %v2627_v31 = vmul.f32 %v4245_v42, %v4243_v29  ;;  %v4247_v38 = vpop.eup %4246 }
 0x890   : > { %3198 = vst [vmem:[%s5835_s7 + $0x60] sm:$0xff] %v2627_v31  ;;  %2708 = vmatmul.mubr.f32.vlgmr.msra.gmra.mrb[28].mxu0 %v2627_v31  ;;  %2785 = vmatmul.mubr.f32.vlgmr.msra.gmra.mrb[28].mxu1 %v2627_v31  ;;  %v4249_v33 = vpop.eup %4248 }
 0x891   : > { %2713 = vmatprep.mubr.f32.mxu0 %v4609_v7  ;;  %2790 = vmatprep.mubr.f32.mxu1 %v4609_v7  ;;  %v2628_v46 = vmul.f32 %v4249_v33, %v4247_v38 }
 0x893   : > { %3199 = vst [vmem:[%s5835_s7 + $0x68] sm:$0xff] %v2628_v46 }
 0x894   : > { %2714 = vmatmul.mubr.f32.gmra.mrb[30].mxu0 %v2628_v46  ;;  %2791 = vmatmul.mubr.f32.gmra.mrb[30].mxu1 %v2628_v46 }
 0x963   : > { %v2709_v52 = vpop.f32.mrb[28].mxu0  ;;  %v2786_v60 = vpop.f32.mrb[28].mxu1 }
 0x964   : > { %v3828_v51 = vadd.f32 %v2709_v52, %v5335_v53  ;;  %v2711_v44 = vpop.f32.mrb[29].mxu0  ;;  %v2788_v43 = vpop.f32.mrb[29].mxu1  ;;  %v3860_v12 = vadd.f32 %v2786_v60, %v5341_v10 }
 0x965   : > { %v3829_v37 = vadd.f32 %v2711_v44, %v5337_v55  ;;  %v3861_v13 = vadd.f32 %v2788_v43, %v5346_v36 }
 0x966   : > { %v3200_v35 = vmul.f32 -1.442695, %v3828_v51  ;;  %v3202_v17 = vmul.f32 -1.442695, %v3860_v12 }
 0x967   : > { %v3201_v47 = vmul.f32 -1.442695, %v3829_v37  ;;  %v2715_v50 = vpop.f32.mrb[30].mxu0  ;;  %v2792_v54 = vpop.f32.mrb[30].mxu1 }
 0x968   : > { %4250 = vpow2.f32 %v3200_v35  ;;  %v3830_v7 = vadd.f32 %v2715_v50, %v5335_v53  ;;  %v2717_v56 = vpop.f32.mrb[31].mxu0  ;;  %v2794_v62 = vpop.f32.mrb[31].mxu1  ;;  %v3862_v19 = vadd.f32 %v2792_v54, %v5341_v10 }
 0x969   : > { %v3831_v63 = vadd.f32 %v2717_v56, %v5337_v55  ;;  %4252 = vpow2.f32 %v3201_v47  ;;  %v3863_v26 = vadd.f32 %v2794_v62, %v5346_v36 }
 0x96a   : > { %v3203_v3 = vmul.f32 -1.442695, %v3830_v7  ;;  %v3205_v55 = vmul.f32 -1.442695, %v3862_v19 }
 0x96b   : > { %v3204_v5 = vmul.f32 -1.442695, %v3831_v63 }
 0x96c   : > { %4254 = vpow2.f32 %v3203_v3 }
 0x96d   : > { %4256 = vpow2.f32 %v3204_v5 }
 0x96e   : > { %4258 = vtanh.f32 %v3861_v13 }
 0x96f   : > { %4260 = vpow2.f32 %v3202_v17 }
 0x972   : > { %v4251_v25 = vpop.eup %4250 }
 0x973   : > { %v2823_v53 = vadd.f32 1.0, %v4251_v25  ;;  %v4253_v30 = vpop.eup %4252 }
 0x974   : > { %v2824_v32 = vadd.f32 1.0, %v4253_v30 }
 0x975   : > { %4262 = vrcp.f32 %v2823_v53 }
 0x976   : > { %v4255_v39 = vpop.eup %4254  ;;  %4264 = vtanh.f32 %v3863_v26 }
 0x977   : > { %4266 = vrcp.f32 %v2824_v32  ;;  %v2826_v40 = vadd.f32 1.0, %v4255_v39  ;;  %v4257_v45 = vpop.eup %4256 }
 0x978   : > { %4268 = vpow2.f32 %v3205_v55  ;;  %v2827_v48 = vadd.f32 1.0, %v4257_v45  ;;  %v4259_v10 = vpop.eup %4258 }
 0x979   : > { %4270 = vrcp.f32 %v2826_v40  ;;  %v4261_v36 = vpop.eup %4260 }
 0x97a   : > { %4272 = vrcp.f32 %v2827_v48  ;;  %v2825_v11 = vadd.f32 1.0, %v4261_v36 }
 0x97c   : > { %4274 = vrcp.f32 %v2825_v11 }
 0x97f   : > { %v4263_v57 = vpop.eup %4262 }
 0x980   : > { %v4265_v58 = vpop.eup %4264  ;;  %v2845_v61 = vmul.f32 %v4263_v57, %v4259_v10 }
 0x981   : > { %v4267_v2 = vpop.eup %4266 }
 0x982   : > { %v4269_v14 = vpop.eup %4268  ;;  %v2843_v18 = vmul.f32 %v4267_v2, %v5700_v15 }
 0x983   : > { %v4271_v20 = vpop.eup %4270  ;;  %v2828_v41 = vadd.f32 1.0, %v4269_v14 }
 0x984   : > { %v2847_v24 = vadd.f32 %v2845_v61, %v2843_v18  ;;  %v2846_v27 = vmul.f32 %v4271_v20, %v4265_v58  ;;  %v4273_v49 = vpop.eup %4272 }
 0x985   : > { %v2844_v59 = vmul.f32 %v4273_v49, %v5704_v28 }
 0x986   : > { %4276 = vtanh.f32 %v2847_v24  ;;  %2858 = vst [vmem:[%s4924_s20] sm:$0xff] %v2847_v24 }
 0x987   : > { %v2848_v34 = vadd.f32 %v2846_v27, %v2844_v59  ;;  %4278 = vrcp.f32 %v2828_v41 }
 0x989   : > { %4280 = vtanh.f32 %v2848_v34  ;;  %2859 = vst [vmem:[%s4924_s20 + $0x8] sm:$0xff] %v2848_v34 }
 0x98a   : > { %4475 = shalt.err (!%p4472_p4)
}
 0x98b   : > { %s4476_s20 = scalar_lea.hbm %s5733_s8, 256  ;;  %s4480_s19 = scalar_lea.hbm %s5837_s9, 512 }
 0x98c   : > { %p4477_p6 = scmp.ne.s32.totalorder %s5733_s8, %s4476_s20  ;;  %p4481_p7 = scmp.lt.u32.totalorder %s5733_s8, %s5837_s9 }
 0x98d   : > { %p4482_p12 = scmp.lt.u32.totalorder %s4480_s19, %s4476_s20  ;;  %p4484_p3 = scmp.lt.u32.totalorder %s4476_s20, %s5733_s8 }
 0x98e   : > { %p4478_p11 = pnand %p4477_p6, %p5892_p5 }
 0x98f   : > { %p4483_p10 = por %p4482_p12, %p4481_p7 }
 0x990   : > { %p4479_p0 = pneg %p4478_p11 }
 0x991   : > { %p4485_p13 = por %p4484_p3, %p4483_p10 }
 0x993   : > { %p4486_p1 = pnand %p4485_p13, %p4479_p0 }
 0x995   : > { %4489 = shalt.err (!%p4486_p1)
}
 0x996   : > { %s4611_s26 = smov 128   ;;  %s4612_s12 = smov 8   ;;  %v4275_v0 = vpop.eup %4274 }
 0x997   : > { %3937 = dma.vmem_to_hbm [thread:$0]  (%p5892_p5), %s5735_s14, 256, %s5733_s8, %s2866_s25, %s4611_s26, %s4611_s26, %s4612_s12   ;;  %v4277_v1 = vpop.eup %4276 }
 0x998   : > { %v2851_v4 = vmul.f32 %v4277_v1, %v4275_v0  ;;  %s2882_s28 = sshll.u32 %s4921_s30, 4  ;;  %v4279_v6 = vpop.eup %4278  ;;  %s5893_s16 = sld [smem:[#allocation43_spill]]  ;;  %s5777_s28 = int_to_ptr.vmem [resolvable:$true] %s2882_s28 }
 0x999   : > { %v4281_v8 = vpop.eup %4280  ;;  %s2861_s25 = scalar_lea.sflag [#allocation8], %s4884_s22  ;;  %s4490_s3 = scalar_lea.vmem %s5777_s28, 256 }
 0x99a   : > { %3206 = vst [vmem:[%s5835_s7 + $0x70] sm:$0xff] %v2851_v4  ;;  %2856 = vst [vmem:[%s4921_s30] sm:$0xff] %v2851_v4  ;;  %v2852_v9 = vmul.f32 %v4281_v8, %v4279_v6  ;;  %p4491_p2 = scmp.ne.s32.totalorder %s5777_s28, %s4490_s3  ;;  %s4613_s17 = smov [#allocation14]  }
 0x99b   : > { %s4494_s4 = sshll.u32 %s4613_s17, 4  ;;  %s4495_s4 = int_to_ptr.vmem [resolvable:$false] %s4494_s4 }
 0x99c   : > { %3207 = vst [vmem:[%s5835_s7 + $0x78] sm:$0xff] %v2852_v9  ;;  %2857 = vst [vmem:[%s4921_s30 + $0x8] sm:$0xff] %v2852_v9  ;;  %p4492_p9 = pnand %p4491_p2, %p5892_p5  ;;  %p4497_p4 = scmp.lt.s32.totalorder %s5777_s28, %s4495_s4 }
 0x99e   : > { %s5894_s5 = smov %s5893_s16  ;;  %s5775_s15 = scalar_lea.hbm %s5893_s16, %s3222_s27 }
 0x99f   : > { %p4493_p8 = pneg %p4492_p9  ;;  %s4496_s27 = scalar_lea.vmem %s4495_s4, 512 }
 0x9a0   : > { %p4498_p6 = scmp.lt.s32.totalorder %s4496_s27, %s4490_s3 }
 0x9a2   : > { %p4499_p11 = por %p4498_p6, %p4497_p4 }
 0x9a4   : > { %p4500_p0 = pnand %p4499_p11, %p4493_p8 }
 0x9a6   : > { %4503 = shalt.err (!%p4500_p0)
}
 0x9a7   : > { %s4504_s30 = scalar_lea.hbm %s5775_s15, 256  ;;  %s4508_s20 = scalar_lea.hbm %s5894_s5, 512 }
 0x9a8   : > { %p4505_p7 = scmp.ne.s32.totalorder %s5775_s15, %s4504_s30  ;;  %p4509_p3 = scmp.lt.u32.totalorder %s5775_s15, %s5894_s5 }
 0x9a9   : > { %p4510_p13 = scmp.lt.u32.totalorder %s4508_s20, %s4504_s30  ;;  %p4512_p2 = scmp.lt.u32.totalorder %s4504_s30, %s5775_s15 }
 0x9aa   : > { %p4506_p12 = pnand %p4505_p7, %p5892_p5 }
 0x9ab   : > { %p4511_p1 = por %p4510_p13, %p4509_p3 }
 0x9ac   : > { %p4507_p10 = pneg %p4506_p12 }
 0x9ad   : > { %p4513_p9 = por %p4512_p2, %p4511_p1 }
 0x9af   : > { %p4514_p8 = pnand %p4513_p9, %p4507_p10 }
 0x9b1   : > { %4517 = shalt.err (!%p4514_p8)
}
 0x9b2   : > { %3936 = dma.vmem_to_hbm [thread:$0]  (%p5892_p5), %s5777_s28, 256, %s5775_s15, %s2861_s25, %s4611_s26, %s4611_s26, %s4612_s12  }
 0x9b3 PF: > { %s5895_s19 = sld [smem:[#allocation31_spill]]  ;;  %s5896_s23 = sld [smem:[#allocation37_spill]] }
 0x9b4   : > { %s5897_s11 = sld [smem:[#allocation34_spill]] }
 0x9b9   : > { %s2916_s21 = sand.u32 1, %s5895_s19   ;;  %p5898_p4 = scmp.ne.s32.totalorder %s5896_s23, 0 }
 0x9ba   : > { %p5899_p6 = scmp.ge.s32.totalorder %s5897_s11, 2  ;;  %s2917_s2 = scalar_lea.sflag [#allocation8], %s2916_s21 }
 0x9bc   : > { %p3954_p11 = pnand %p5899_p6, %p5898_p4 }
 0x9be   : > { %4565 = dma.done.wait (!%p3954_p11), %s2917_s2, 256  }
 0x9bf   : > { %4567 = vsyncadd (!%p3954_p11), %s2917_s2, 4294967040  ;;  %s2926_s24 = scalar_lea.sflag [#allocation16], %s2916_s21 }
 0x9c0   : > { %4569 = dma.done.wait (!%p3954_p11), %s2926_s24, 256  }
 0x9c1   : > { %4571 = vsyncadd (!%p3954_p11), %s2926_s24, 4294967040  ;;  %s5900_s16 = sld [smem:[#allocation35_spill]]  ;;  %s5901_s0 = sld [smem:[#allocation32_spill]] }
 0x9c2   : > { %s5902_s14 = sld [smem:[#allocation33_spill]]  ;;  %s5903_s15 = sld [smem:[#allocation36_spill]] }
 0x9c7   : > { %p38_p5 = scmp.ge.s32.totalorder %s5900_s16, 4  }
 0x9c9   :  { %40 = sbr.rel (!%p38_p5) target bundleno = 28 (0x1c), region = 235 }
 0x9d0   :  { %2931 = vsyncpa [#allocation7], 1 }
 0x9d1   :  { %2933 = vsyncpa [#allocation7 + $0x1], 1 }
 0x9d2   :  { %2934 = vsyncpa [#allocation10], 1 }
 0x9d3   :  { %2936 = vsyncpa [#allocation10 + $0x1], 1 }
 0x9d4   :  { %2937 = vsyncpa [#allocation13], 1 }
 0x9d5   :  { %2939 = vsyncpa [#allocation13 + $0x1], 1 }
 0x9d6   :  { %2940 = vsyncpa [#allocation8], 1 }
 0x9d7   :  { %2942 = vsyncpa [#allocation8 + $0x1], 1 }
 0x9d8   :  { %2943 = vsyncpa [#allocation16], 1 }
 0x9d9   :  { %2945 = vsyncpa [#allocation16 + $0x1], 1 }
 0x9da   :  { %2946 = vsyncmov [#allocation3] }
 0x9dd   :  { %s2947_s22 = vpop.sfrf %2946 }
 0x9de   :  { %p3216_p0 = scmp.ne.s32.totalorder %s2947_s22, 0 }
 0x9e0   :  { %2951 = shalt.err (%p3216_p0)  }

</bundles_post_ra>
